<compile_context>
chip_gen: v7x
topology: tpu7x:2x2x1
jax: 0.10.0
libtpu: 0.0.40
codegen_flags: <defaults>
</compile_context>

<pallas_src>
import jax
import jax.numpy as jnp
from jax.experimental import pallas as pl
from jax.experimental.pallas import tpu as pltpu


# ----------------------------- Pallas kernel --------------------------------
def _irdpg_kernel(
    obs_ref,      # (T*B, Do)   time-major flattened observations
    h0_ref,       # (2, B, H)   [h_actor0 ; h_critic0]
    w_in_ref,     # (Do, 6H)    fused [wa_ih | wc_ih_o]
    w_hh_ref,     # (2H, 3H)    stacked [wa_hh ; wc_hh]
    small_ref,    # (2A+3, 6H)  packed small rows (fc weights, wc_ih_a rows, biases)
    out_ref,      # (T, B, A+1) fused [probs | q], time-major
    h_out_ref,    # (2, B, H)   fused [h_actor_T ; h_critic_T]
):
    _, B, H = h0_ref.shape
    T = out_ref.shape[0]
    A = out_ref.shape[2] - 1
    H3 = 3 * H

    # ---- unpack the packed "small rows" slab (layout documented in the wrapper) ----
    small = small_ref[...]
    wfa_t   = small[0:A, :H]                        # (A, H)    actor fc weight, rows = actions
    wc_diff = small[A:2 * A - 1, :H3]               # (A-1, 3H) wc_ih_a[a] - wc_ih_a[A-1]
    wfc_row = small[2 * A - 1:2 * A, :H]            # (1, H)    critic fc weight
    b_in    = small[2 * A:2 * A + 1, :]             # (1, 6H)   [ba_ih | bc_ih + wc_ih_a[A-1]]
    b_hh_a  = small[2 * A + 1:2 * A + 2, :H3]       # (1, 3H)
    b_hh_c  = small[2 * A + 1:2 * A + 2, H3:]       # (1, 3H)
    bfa     = small[2 * A + 2:2 * A + 3, :A]        # (1, A)
    bfc     = small[2 * A + 2:2 * A + 3, A:A + 1]   # (1, 1)

    wa_hh = w_hh_ref[:H, :]                         # (H, 3H)  row slices are 8-aligned
    wc_hh = w_hh_ref[H:, :]                         # (H, 3H)

    # ---- one bulk input projection for both GRUs (off the serial chain) ----
    gi_all = (jnp.dot(obs_ref[...], w_in_ref[...],
                      preferred_element_type=jnp.float32) + b_in)     # (T*B, 6H)

    h_a = h0_ref[0]                                 # (B, H)
    h_c = h0_ref[1]                                 # (B, H)

    def gru_cell(gi, gh, h):
        # PyTorch gate order r, z, n; gi/gh already carry their respective biases.
        r = jax.nn.sigmoid(gi[:, :H] + gh[:, :H])
        z = jax.nn.sigmoid(gi[:, H:2 * H] + gh[:, H:2 * H])
        n = jnp.tanh(gi[:, 2 * H:] + r * gh[:, 2 * H:])
        return (1.0 - z) * n + z * h

    for t in range(T):   # small static T -> fully unrolled; the chain is serial anyway
        # both recurrent matmuls issued back-to-back: the critic one does not depend on
        # probs(t), so it pipelines in the MXU under the actor gate / softmax work below.
        gh_a = jnp.dot(h_a, wa_hh, preferred_element_type=jnp.float32) + b_hh_a
        gh_c = jnp.dot(h_c, wc_hh, preferred_element_type=jnp.float32) + b_hh_c

        gi_t = gi_all[t * B:(t + 1) * B, :]         # (B, 6H), loop-invariant wrt recurrence
        h_a = gru_cell(gi_t[:, :H3], gh_a, h_a)

        # actor fc + softmax on VPU/XLU so the MXU chain stays at one dot per step
        logits = jnp.concatenate(
            [jnp.sum(h_a * wfa_t[a:a + 1, :], axis=-1, keepdims=True) for a in range(A)],
            axis=-1) + bfa                                            # (B, A)
        e = jnp.exp(logits - jnp.max(logits, axis=-1, keepdims=True))
        # TODO(synk): approx=True would move this fully onto the EUP but exceeds the
        #             1e-5 parity target; exact reciprocal kept for correctness.
        probs = e * pl.reciprocal(jnp.sum(e, axis=-1, keepdims=True), approx=False)

        # critic input gates: obs part + folded wc_ih_a[A-1] are already in gi_t;
        # probs sum to one, so only A-1 broadcast terms remain.
        gi_c = gi_t[:, H3:]
        for a in range(A - 1):
            gi_c = gi_c + probs[:, a:a + 1] * wc_diff[a:a + 1, :]
        h_c = gru_cell(gi_c, gh_c, h_c)

        # width-1 critic fc as VPU mul + lane reduce (off the chain); one fused row store
        q_t = jnp.sum(h_c * wfc_row, axis=-1, keepdims=True) + bfc    # (B, 1)
        out_ref[t] = jnp.concatenate([probs, q_t], axis=-1)           # (B, A+1)

    h_out_ref[0] = h_a
    h_out_ref[1] = h_c


# ------------------------------ wrapper --------------------------------------
def irdpg_forward(obs, params, h_actor=None, h_critic=None):
    """obs: (B, T, obs_dim) float32, batch_first like the PyTorch module.
    Returns (action_probs (B,T,A), q_value (B,T,1), h_actor_next (1,B,H), h_critic_next (1,B,H))."""
    B, T, Do = obs.shape
    H = params["wa_hh"].shape[0]
    A = params["wfa"].shape[1]
    f32 = jnp.float32

    # time-major flatten so each timestep is B contiguous rows inside the kernel
    obs_flat = jnp.transpose(obs, (1, 0, 2)).reshape(T * B, Do).astype(f32)

    ha0 = (jnp.zeros((1, B, H), f32) if h_actor is None
           else h_actor.reshape(1, B, H).astype(f32))
    hc0 = (jnp.zeros((1, B, H), f32) if h_critic is None
           else h_critic.reshape(1, B, H).astype(f32))
    h0 = jnp.concatenate([ha0, hc0], axis=0)                               # (2, B, H)

    # fused weights
    w_in = jnp.concatenate([params["wa_ih"], params["wc_ih_o"]], axis=1)   # (Do, 6H)
    w_hh = jnp.concatenate([params["wa_hh"], params["wc_hh"]], axis=0)     # (2H, 3H)

    # "small rows" slab (2A+3, 6H):
    #   rows 0..A-1   actor fc weight^T (zero padded to 6H)
    #   rows A..2A-2  wc_ih_a[a] - wc_ih_a[A-1]  (critic action rows, sum-to-1 trick)
    #   row  2A-1     critic fc weight^T (padded)
    #   row  2A       fused input bias  [ba_ih | bc_ih + wc_ih_a[A-1]]
    #   row  2A+1     fused hidden bias [ba_hh | bc_hh]
    #   row  2A+2     [bfa | bfc] (padded)
    W6 = 6 * H
    wc_a = params["wc_ih_a"]
    wc_last = wc_a[A - 1:A, :]                                             # (1, 3H)
    pad = lambda x: jnp.pad(x, ((0, 0), (0, W6 - x.shape[1])))
    small = jnp.concatenate([
        pad(params["wfa"].T),
        pad(wc_a[:A - 1, :] - wc_last),
        pad(params["wfc"].T),
        jnp.concatenate([params["ba_ih"], params["bc_ih"] + wc_last], axis=1),
        jnp.concatenate([params["ba_hh"], params["bc_hh"]], axis=1),
        pad(jnp.concatenate([params["bfa"], params["bfc"]], axis=1)),
    ], axis=0).astype(f32)

    vmem = pl.BlockSpec(memory_space=pltpu.MemorySpace.VMEM)
    out, h_out = pl.pallas_call(
        _irdpg_kernel,
        out_shape=[
            jax.ShapeDtypeStruct((T, B, A + 1), f32),   # fused [probs | q], time-major
            jax.ShapeDtypeStruct((2, B, H), f32),       # fused [h_actor ; h_critic]
        ],
        in_specs=[vmem] * 5,
        out_specs=[vmem] * 2,
    )(obs_flat, h0, w_in, w_hh, small)

    out_bt = jnp.transpose(out, (1, 0, 2))              # (B, T, A+1)
    action_probs = out_bt[..., :A]                      # (B, T, A)
    q_value = out_bt[..., A:]                           # (B, T, 1)
    return action_probs, q_value, h_out[0:1], h_out[1:2]   # hiddens: (1, B, H)


# --------------------------- parameter construction --------------------------
def make_params(key, obs_dim, action_dim, hidden_dim):
    """Deterministic synthetic parameters with PyTorch-style uniform(-1/sqrt(H), 1/sqrt(H)) init."""
    H, Do, A = hidden_dim, obs_dim, action_dim
    k = iter(jax.random.split(key, 16))
    s = 1.0 / jnp.sqrt(jnp.float32(H))
    u = lambda shape: jax.random.uniform(next(k), shape, jnp.float32, -s, s)

    wc_ih_full = u((Do + A, 3 * H))   # critic GRU input weights (transposed vs torch)
    return {
        # actor GRU (weights stored transposed so the kernel does x @ W)
        "wa_ih": u((Do, 3 * H)), "wa_hh": u((H, 3 * H)),
        "ba_ih": u((1, 3 * H)), "ba_hh": u((1, 3 * H)),
        # actor fc
        "wfa": u((H, A)), "bfa": u((1, A)),
        # critic GRU
        "wc_ih_o": wc_ih_full[:Do], "wc_ih_a": wc_ih_full[Do:],
        "wc_hh": u((H, 3 * H)),
        "bc_ih": u((1, 3 * H)), "bc_hh": u((1, 3 * H)),
        # critic fc
        "wfc": u((H, 1)), "bfc": u((1, 1)),
    }


# ------------------------------ pure-JAX reference ---------------------------
def ref_forward(obs, p):
    B, T, Do = obs.shape
    H = p["wa_hh"].shape[0]

    def gru_cell(gi, h, w_hh, b_hh):
        gh = h @ w_hh + b_hh
        r = jax.nn.sigmoid(gi[:, :H] + gh[:, :H])
        z = jax.nn.sigmoid(gi[:, H:2 * H] + gh[:, H:2 * H])
        n = jnp.tanh(gi[:, 2 * H:] + r * gh[:, 2 * H:])
        return (1.0 - z) * n + z * h

    h_a = jnp.zeros((B, H), jnp.float32)
    h_c = jnp.zeros((B, H), jnp.float32)
    probs_all, q_all = [], []
    for t in range(T):
        x = obs[:, t]
        h_a = gru_cell(x @ p["wa_ih"] + p["ba_ih"], h_a, p["wa_hh"], p["ba_hh"])
        probs = jax.nn.softmax(h_a @ p["wfa"] + p["bfa"], axis=-1)
        gi_c = x @ p["wc_ih_o"] + probs @ p["wc_ih_a"] + p["bc_ih"]
        h_c = gru_cell(gi_c, h_c, p["wc_hh"], p["bc_hh"])
        q = h_c @ p["wfc"] + p["bfc"]
        probs_all.append(probs)
        q_all.append(q)
    return (jnp.stack(probs_all, axis=1), jnp.stack(q_all, axis=1),
            h_a[None], h_c[None])


# ----------------------------------- main -------------------------------------
if __name__ == "__main__":
    B, T, OBS_DIM, ACTION_DIM, HIDDEN = 2, 8, 16, 2, 32

    root = jax.random.PRNGKey(0)
    k_obs, k_par = jax.random.split(root)
    obs = jax.random.normal(k_obs, (B, T, OBS_DIM), jnp.float32)
    params = make_params(k_par, OBS_DIM, ACTION_DIM, HIDDEN)

    action_probs, q_value, h_a_next, h_c_next = irdpg_forward(obs, params)
    jax.block_until_ready((action_probs, q_value, h_a_next, h_c_next))

    # sanity-check against a pure-JAX reference of the same math
    r_probs, r_q, r_ha, r_hc = ref_forward(obs, params)
    assert action_probs.shape == (B, T, ACTION_DIM)
    assert q_value.shape == (B, T, 1)
    assert h_a_next.shape == (1, B, HIDDEN) and h_c_next.shape == (1, B, HIDDEN)
    assert jnp.allclose(action_probs, r_probs, atol=1e-5)
    assert jnp.allclose(q_value, r_q, atol=1e-5)
    assert jnp.allclose(h_a_next, r_ha, atol=1e-5)
    assert jnp.allclose(h_c_next, r_hc, atol=1e-5)

    print("KERNEL_OK")
</pallas_src>

<mosaic_0001>
module attributes {stable_mosaic.version = 11 : i64} {
  func.func @_irdpg_kernel(%arg0: memref<16x16xf32, #tpu.memory_space<vmem>>, %arg1: memref<2x2x32xf32, #tpu.memory_space<vmem>>, %arg2: memref<16x192xf32, #tpu.memory_space<vmem>>, %arg3: memref<64x96xf32, #tpu.memory_space<vmem>>, %arg4: memref<7x192xf32, #tpu.memory_space<vmem>>, %arg5: memref<8x2x3xf32, #tpu.memory_space<vmem>>, %arg6: memref<2x2x32xf32, #tpu.memory_space<vmem>>) attributes {dimension_semantics = [], scalar_prefetch = 0 : i64, scratch_operands = 0 : i64, tpu.core_type = #tpu.core_type<tc>} {
    %c0 = arith.constant 0 : index
    %c0_0 = arith.constant 0 : index
    %0 = vector.load %arg4[%c0, %c0_0] : memref<7x192xf32, #tpu.memory_space<vmem>>, vector<7x192xf32>
    %1 = vector.extract_strided_slice %0 {offsets = [0, 0], sizes = [2, 32], strides = [1, 1]} : vector<7x192xf32> to vector<2x32xf32>
    %2 = vector.extract_strided_slice %0 {offsets = [2, 0], sizes = [1, 96], strides = [1, 1]} : vector<7x192xf32> to vector<1x96xf32>
    %3 = vector.extract_strided_slice %0 {offsets = [3, 0], sizes = [1, 32], strides = [1, 1]} : vector<7x192xf32> to vector<1x32xf32>
    %4 = vector.extract_strided_slice %0 {offsets = [4, 0], sizes = [1, 192], strides = [1, 1]} : vector<7x192xf32> to vector<1x192xf32>
    %5 = vector.extract_strided_slice %0 {offsets = [5, 0], sizes = [1, 96], strides = [1, 1]} : vector<7x192xf32> to vector<1x96xf32>
    %6 = vector.extract_strided_slice %0 {offsets = [5, 96], sizes = [1, 96], strides = [1, 1]} : vector<7x192xf32> to vector<1x96xf32>
    %7 = vector.extract_strided_slice %0 {offsets = [6, 0], sizes = [1, 2], strides = [1, 1]} : vector<7x192xf32> to vector<1x2xf32>
    %8 = vector.extract_strided_slice %0 {offsets = [6, 2], sizes = [1, 1], strides = [1, 1]} : vector<7x192xf32> to vector<1x1xf32>
    %c0_1 = arith.constant 0 : index
    %c0_2 = arith.constant 0 : index
    %9 = vector.load %arg3[%c0_1, %c0_2] : memref<64x96xf32, #tpu.memory_space<vmem>>, vector<32x96xf32>
    %c32 = arith.constant 32 : index
    %c0_3 = arith.constant 0 : index
    %10 = vector.load %arg3[%c32, %c0_3] : memref<64x96xf32, #tpu.memory_space<vmem>>, vector<32x96xf32>
    %c0_4 = arith.constant 0 : index
    %c0_5 = arith.constant 0 : index
    %11 = vector.load %arg0[%c0_4, %c0_5] : memref<16x16xf32, #tpu.memory_space<vmem>>, vector<16x16xf32>
    %c0_6 = arith.constant 0 : index
    %c0_7 = arith.constant 0 : index
    %12 = vector.load %arg2[%c0_6, %c0_7] : memref<16x192xf32, #tpu.memory_space<vmem>>, vector<16x192xf32>
    %cst = arith.constant dense<0.000000e+00> : vector<16x192xf32>
    %13 = tpu.matmul %11, %12, %cst {dimension_numbers = #tpu.dot_dimension_numbers<[1], [0], [0], [1], [0, 0, 1, 1], [], []>} : vector<16x16xf32>, vector<16x192xf32>, vector<16x192xf32> -> vector<16x192xf32>
    %14 = vector.broadcast %4 : vector<1x192xf32> to vector<16x192xf32>
    %15 = arith.addf %13, %14 : vector<16x192xf32>
    %c0_8 = arith.constant 0 : index
    %c0_9 = arith.constant 0 : index
    %c0_10 = arith.constant 0 : index
    %16 = vector.load %arg1[%c0_8, %c0_9, %c0_10] : memref<2x2x32xf32, #tpu.memory_space<vmem>>, vector<1x2x32xf32>
    %17 = vector.shape_cast %16 : vector<1x2x32xf32> to vector<2x32xf32>
    %c1 = arith.constant 1 : index
    %c0_11 = arith.constant 0 : index
    %c0_12 = arith.constant 0 : index
    %18 = vector.load %arg1[%c1, %c0_11, %c0_12] : memref<2x2x32xf32, #tpu.memory_space<vmem>>, vector<1x2x32xf32>
    %19 = vector.shape_cast %18 : vector<1x2x32xf32> to vector<2x32xf32>
    %cst_13 = arith.constant dense<0.000000e+00> : vector<2x96xf32>
    %20 = tpu.matmul %17, %9, %cst_13 {dimension_numbers = #tpu.dot_dimension_numbers<[1], [0], [0], [1], [0, 0, 1, 1], [], []>} : vector<2x32xf32>, vector<32x96xf32>, vector<2x96xf32> -> vector<2x96xf32>
    %21 = vector.broadcast %5 : vector<1x96xf32> to vector<2x96xf32>
    %22 = arith.addf %20, %21 : vector<2x96xf32>
    %cst_14 = arith.constant dense<0.000000e+00> : vector<2x96xf32>
    %23 = tpu.matmul %19, %10, %cst_14 {dimension_numbers = #tpu.dot_dimension_numbers<[1], [0], [0], [1], [0, 0, 1, 1], [], []>} : vector<2x32xf32>, vector<32x96xf32>, vector<2x96xf32> -> vector<2x96xf32>
    %24 = vector.broadcast %6 : vector<1x96xf32> to vector<2x96xf32>
    %25 = arith.addf %23, %24 : vector<2x96xf32>
    %26 = vector.extract_strided_slice %15 {offsets = [0, 0], sizes = [2, 192], strides = [1, 1]} : vector<16x192xf32> to vector<2x192xf32>
    %27 = vector.extract_strided_slice %26 {offsets = [0, 0], sizes = [2, 96], strides = [1, 1]} : vector<2x192xf32> to vector<2x96xf32>
    %28 = vector.extract_strided_slice %27 {offsets = [0, 0], sizes = [2, 32], strides = [1, 1]} : vector<2x96xf32> to vector<2x32xf32>
    %29 = vector.extract_strided_slice %22 {offsets = [0, 0], sizes = [2, 32], strides = [1, 1]} : vector<2x96xf32> to vector<2x32xf32>
    %30 = arith.addf %28, %29 : vector<2x32xf32>
    %31 = arith.negf %30 : vector<2x32xf32>
    %32 = math.exp %31 : vector<2x32xf32>
    %cst_15 = arith.constant 1.000000e+00 : f32
    %33 = vector.broadcast %cst_15 : f32 to vector<2x32xf32>
    %34 = arith.addf %33, %32 : vector<2x32xf32>
    %35 = arith.divf %33, %34 : vector<2x32xf32>
    %36 = vector.extract_strided_slice %27 {offsets = [0, 32], sizes = [2, 32], strides = [1, 1]} : vector<2x96xf32> to vector<2x32xf32>
    %37 = vector.extract_strided_slice %22 {offsets = [0, 32], sizes = [2, 32], strides = [1, 1]} : vector<2x96xf32> to vector<2x32xf32>
    %38 = arith.addf %36, %37 : vector<2x32xf32>
    %39 = arith.negf %38 : vector<2x32xf32>
    %40 = math.exp %39 : vector<2x32xf32>
    %cst_16 = arith.constant 1.000000e+00 : f32
    %41 = vector.broadcast %cst_16 : f32 to vector<2x32xf32>
    %42 = arith.addf %41, %40 : vector<2x32xf32>
    %43 = arith.divf %41, %42 : vector<2x32xf32>
    %44 = vector.extract_strided_slice %27 {offsets = [0, 64], sizes = [2, 32], strides = [1, 1]} : vector<2x96xf32> to vector<2x32xf32>
    %45 = vector.extract_strided_slice %22 {offsets = [0, 64], sizes = [2, 32], strides = [1, 1]} : vector<2x96xf32> to vector<2x32xf32>
    %46 = arith.mulf %35, %45 : vector<2x32xf32>
    %47 = arith.addf %44, %46 : vector<2x32xf32>
    %48 = math.tanh %47 : vector<2x32xf32>
    %cst_17 = arith.constant 1.000000e+00 : f32
    %49 = vector.broadcast %cst_17 : f32 to vector<2x32xf32>
    %50 = arith.subf %49, %43 : vector<2x32xf32>
    %51 = arith.mulf %50, %48 : vector<2x32xf32>
    %52 = arith.mulf %43, %17 : vector<2x32xf32>
    %53 = arith.addf %51, %52 : vector<2x32xf32>
    %54 = vector.extract_strided_slice %1 {offsets = [0, 0], sizes = [1, 32], strides = [1, 1]} : vector<2x32xf32> to vector<1x32xf32>
    %55 = vector.broadcast %54 : vector<1x32xf32> to vector<2x32xf32>
    %56 = arith.mulf %53, %55 : vector<2x32xf32>
    %cst_18 = arith.constant dense<0.000000e+00> : vector<2xf32>
    %57 = vector.multi_reduction <add>, %56, %cst_18 [1] : vector<2x32xf32> to vector<2xf32>
    %58 = vector.shape_cast %57 : vector<2xf32> to vector<2x1xf32>
    %59 = vector.extract_strided_slice %1 {offsets = [1, 0], sizes = [1, 32], strides = [1, 1]} : vector<2x32xf32> to vector<1x32xf32>
    %60 = vector.broadcast %59 : vector<1x32xf32> to vector<2x32xf32>
    %61 = arith.mulf %53, %60 : vector<2x32xf32>
    %cst_19 = arith.constant dense<0.000000e+00> : vector<2xf32>
    %62 = vector.multi_reduction <add>, %61, %cst_19 [1] : vector<2x32xf32> to vector<2xf32>
    %63 = vector.shape_cast %62 : vector<2xf32> to vector<2x1xf32>
    %64 = tpu.concatenate %58, %63 in 1 : vector<2x1xf32>, vector<2x1xf32> -> vector<2x2xf32>
    %65 = vector.broadcast %7 : vector<1x2xf32> to vector<2x2xf32>
    %66 = arith.addf %64, %65 : vector<2x2xf32>
    %cst_20 = arith.constant dense<0xFF800000> : vector<2xf32>
    %67 = vector.multi_reduction <maximumf>, %66, %cst_20 [1] : vector<2x2xf32> to vector<2xf32>
    %68 = vector.shape_cast %67 : vector<2xf32> to vector<2x1xf32>
    %69 = vector.broadcast %68 : vector<2x1xf32> to vector<2x2xf32>
    %70 = arith.subf %66, %69 : vector<2x2xf32>
    %71 = math.exp %70 : vector<2x2xf32>
    %cst_21 = arith.constant dense<0.000000e+00> : vector<2xf32>
    %72 = vector.multi_reduction <add>, %71, %cst_21 [1] : vector<2x2xf32> to vector<2xf32>
    %73 = vector.shape_cast %72 : vector<2xf32> to vector<2x1xf32>
    %74 = tpu.reciprocal %73 : vector<2x1xf32> -> vector<2x1xf32>
    %75 = vector.broadcast %74 : vector<2x1xf32> to vector<2x2xf32>
    %76 = arith.mulf %71, %75 : vector<2x2xf32>
    %77 = vector.extract_strided_slice %26 {offsets = [0, 96], sizes = [2, 96], strides = [1, 1]} : vector<2x192xf32> to vector<2x96xf32>
    %78 = vector.extract_strided_slice %76 {offsets = [0, 0], sizes = [2, 1], strides = [1, 1]} : vector<2x2xf32> to vector<2x1xf32>
    %79 = vector.broadcast %78 : vector<2x1xf32> to vector<2x96xf32>
    %80 = vector.broadcast %2 : vector<1x96xf32> to vector<2x96xf32>
    %81 = arith.mulf %79, %80 : vector<2x96xf32>
    %82 = arith.addf %77, %81 : vector<2x96xf32>
    %83 = vector.extract_strided_slice %82 {offsets = [0, 0], sizes = [2, 32], strides = [1, 1]} : vector<2x96xf32> to vector<2x32xf32>
    %84 = vector.extract_strided_slice %25 {offsets = [0, 0], sizes = [2, 32], strides = [1, 1]} : vector<2x96xf32> to vector<2x32xf32>
    %85 = arith.addf %83, %84 : vector<2x32xf32>
    %86 = arith.negf %85 : vector<2x32xf32>
    %87 = math.exp %86 : vector<2x32xf32>
    %cst_22 = arith.constant 1.000000e+00 : f32
    %88 = vector.broadcast %cst_22 : f32 to vector<2x32xf32>
    %89 = arith.addf %88, %87 : vector<2x32xf32>
    %90 = arith.divf %88, %89 : vector<2x32xf32>
    %91 = vector.extract_strided_slice %82 {offsets = [0, 32], sizes = [2, 32], strides = [1, 1]} : vector<2x96xf32> to vector<2x32xf32>
    %92 = vector.extract_strided_slice %25 {offsets = [0, 32], sizes = [2, 32], strides = [1, 1]} : vector<2x96xf32> to vector<2x32xf32>
    %93 = arith.addf %91, %92 : vector<2x32xf32>
    %94 = arith.negf %93 : vector<2x32xf32>
    %95 = math.exp %94 : vector<2x32xf32>
    %cst_23 = arith.constant 1.000000e+00 : f32
    %96 = vector.broadcast %cst_23 : f32 to vector<2x32xf32>
    %97 = arith.addf %96, %95 : vector<2x32xf32>
    %98 = arith.divf %96, %97 : vector<2x32xf32>
    %99 = vector.extract_strided_slice %82 {offsets = [0, 64], sizes = [2, 32], strides = [1, 1]} : vector<2x96xf32> to vector<2x32xf32>
    %100 = vector.extract_strided_slice %25 {offsets = [0, 64], sizes = [2, 32], strides = [1, 1]} : vector<2x96xf32> to vector<2x32xf32>
    %101 = arith.mulf %90, %100 : vector<2x32xf32>
    %102 = arith.addf %99, %101 : vector<2x32xf32>
    %103 = math.tanh %102 : vector<2x32xf32>
    %cst_24 = arith.constant 1.000000e+00 : f32
    %104 = vector.broadcast %cst_24 : f32 to vector<2x32xf32>
    %105 = arith.subf %104, %98 : vector<2x32xf32>
    %106 = arith.mulf %105, %103 : vector<2x32xf32>
    %107 = arith.mulf %98, %19 : vector<2x32xf32>
    %108 = arith.addf %106, %107 : vector<2x32xf32>
    %109 = vector.broadcast %3 : vector<1x32xf32> to vector<2x32xf32>
    %110 = arith.mulf %108, %109 : vector<2x32xf32>
    %cst_25 = arith.constant dense<0.000000e+00> : vector<2xf32>
    %111 = vector.multi_reduction <add>, %110, %cst_25 [1] : vector<2x32xf32> to vector<2xf32>
    %112 = vector.shape_cast %111 : vector<2xf32> to vector<2x1xf32>
    %113 = vector.broadcast %8 : vector<1x1xf32> to vector<2x1xf32>
    %114 = arith.addf %112, %113 : vector<2x1xf32>
    %115 = tpu.concatenate %76, %114 in 1 : vector<2x2xf32>, vector<2x1xf32> -> vector<2x3xf32>
    %c0_26 = arith.constant 0 : index
    %c0_27 = arith.constant 0 : index
    %c0_28 = arith.constant 0 : index
    %116 = vector.load %arg5[%c0_26, %c0_27, %c0_28] : memref<8x2x3xf32, #tpu.memory_space<vmem>>, vector<1x2x3xf32>
    %117 = vector.shape_cast %116 : vector<1x2x3xf32> to vector<2x3xf32>
    %118 = vector.shape_cast %115 : vector<2x3xf32> to vector<1x2x3xf32>
    tpu.vector_store %arg5[%c0_26, %c0_27, %c0_28], %118 {strides = array<i32>} : memref<8x2x3xf32, #tpu.memory_space<vmem>>, vector<1x2x3xf32>,
    %cst_29 = arith.constant dense<0.000000e+00> : vector<2x96xf32>
    %119 = tpu.matmul %53, %9, %cst_29 {dimension_numbers = #tpu.dot_dimension_numbers<[1], [0], [0], [1], [0, 0, 1, 1], [], []>} : vector<2x32xf32>, vector<32x96xf32>, vector<2x96xf32> -> vector<2x96xf32>
    %120 = vector.broadcast %5 : vector<1x96xf32> to vector<2x96xf32>
    %121 = arith.addf %119, %120 : vector<2x96xf32>
    %cst_30 = arith.constant dense<0.000000e+00> : vector<2x96xf32>
    %122 = tpu.matmul %108, %10, %cst_30 {dimension_numbers = #tpu.dot_dimension_numbers<[1], [0], [0], [1], [0, 0, 1, 1], [], []>} : vector<2x32xf32>, vector<32x96xf32>, vector<2x96xf32> -> vector<2x96xf32>
    %123 = vector.broadcast %6 : vector<1x96xf32> to vector<2x96xf32>
    %124 = arith.addf %122, %123 : vector<2x96xf32>
    %125 = vector.extract_strided_slice %15 {offsets = [2, 0], sizes = [2, 192], strides = [1, 1]} : vector<16x192xf32> to vector<2x192xf32>
    %126 = vector.extract_strided_slice %125 {offsets = [0, 0], sizes = [2, 96], strides = [1, 1]} : vector<2x192xf32> to vector<2x96xf32>
    %127 = vector.extract_strided_slice %126 {offsets = [0, 0], sizes = [2, 32], strides = [1, 1]} : vector<2x96xf32> to vector<2x32xf32>
    %128 = vector.extract_strided_slice %121 {offsets = [0, 0], sizes = [2, 32], strides = [1, 1]} : vector<2x96xf32> to vector<2x32xf32>
    %129 = arith.addf %127, %128 : vector<2x32xf32>
    %130 = arith.negf %129 : vector<2x32xf32>
    %131 = math.exp %130 : vector<2x32xf32>
    %cst_31 = arith.constant 1.000000e+00 : f32
    %132 = vector.broadcast %cst_31 : f32 to vector<2x32xf32>
    %133 = arith.addf %132, %131 : vector<2x32xf32>
    %134 = arith.divf %132, %133 : vector<2x32xf32>
    %135 = vector.extract_strided_slice %126 {offsets = [0, 32], sizes = [2, 32], strides = [1, 1]} : vector<2x96xf32> to vector<2x32xf32>
    %136 = vector.extract_strided_slice %121 {offsets = [0, 32], sizes = [2, 32], strides = [1, 1]} : vector<2x96xf32> to vector<2x32xf32>
    %137 = arith.addf %135, %136 : vector<2x32xf32>
    %138 = arith.negf %137 : vector<2x32xf32>
    %139 = math.exp %138 : vector<2x32xf32>
    %cst_32 = arith.constant 1.000000e+00 : f32
    %140 = vector.broadcast %cst_32 : f32 to vector<2x32xf32>
    %141 = arith.addf %140, %139 : vector<2x32xf32>
    %142 = arith.divf %140, %141 : vector<2x32xf32>
    %143 = vector.extract_strided_slice %126 {offsets = [0, 64], sizes = [2, 32], strides = [1, 1]} : vector<2x96xf32> to vector<2x32xf32>
    %144 = vector.extract_strided_slice %121 {offsets = [0, 64], sizes = [2, 32], strides = [1, 1]} : vector<2x96xf32> to vector<2x32xf32>
    %145 = arith.mulf %134, %144 : vector<2x32xf32>
    %146 = arith.addf %143, %145 : vector<2x32xf32>
    %147 = math.tanh %146 : vector<2x32xf32>
    %cst_33 = arith.constant 1.000000e+00 : f32
    %148 = vector.broadcast %cst_33 : f32 to vector<2x32xf32>
    %149 = arith.subf %148, %142 : vector<2x32xf32>
    %150 = arith.mulf %149, %147 : vector<2x32xf32>
    %151 = arith.mulf %142, %53 : vector<2x32xf32>
    %152 = arith.addf %150, %151 : vector<2x32xf32>
    %153 = vector.extract_strided_slice %1 {offsets = [0, 0], sizes = [1, 32], strides = [1, 1]} : vector<2x32xf32> to vector<1x32xf32>
    %154 = vector.broadcast %153 : vector<1x32xf32> to vector<2x32xf32>
    %155 = arith.mulf %152, %154 : vector<2x32xf32>
    %cst_34 = arith.constant dense<0.000000e+00> : vector<2xf32>
    %156 = vector.multi_reduction <add>, %155, %cst_34 [1] : vector<2x32xf32> to vector<2xf32>
    %157 = vector.shape_cast %156 : vector<2xf32> to vector<2x1xf32>
    %158 = vector.extract_strided_slice %1 {offsets = [1, 0], sizes = [1, 32], strides = [1, 1]} : vector<2x32xf32> to vector<1x32xf32>
    %159 = vector.broadcast %158 : vector<1x32xf32> to vector<2x32xf32>
    %160 = arith.mulf %152, %159 : vector<2x32xf32>
    %cst_35 = arith.constant dense<0.000000e+00> : vector<2xf32>
    %161 = vector.multi_reduction <add>, %160, %cst_35 [1] : vector<2x32xf32> to vector<2xf32>
    %162 = vector.shape_cast %161 : vector<2xf32> to vector<2x1xf32>
    %163 = tpu.concatenate %157, %162 in 1 : vector<2x1xf32>, vector<2x1xf32> -> vector<2x2xf32>
    %164 = vector.broadcast %7 : vector<1x2xf32> to vector<2x2xf32>
    %165 = arith.addf %163, %164 : vector<2x2xf32>
    %cst_36 = arith.constant dense<0xFF800000> : vector<2xf32>
    %166 = vector.multi_reduction <maximumf>, %165, %cst_36 [1] : vector<2x2xf32> to vector<2xf32>
    %167 = vector.shape_cast %166 : vector<2xf32> to vector<2x1xf32>
    %168 = vector.broadcast %167 : vector<2x1xf32> to vector<2x2xf32>
    %169 = arith.subf %165, %168 : vector<2x2xf32>
    %170 = math.exp %169 : vector<2x2xf32>
    %cst_37 = arith.constant dense<0.000000e+00> : vector<2xf32>
    %171 = vector.multi_reduction <add>, %170, %cst_37 [1] : vector<2x2xf32> to vector<2xf32>
    %172 = vector.shape_cast %171 : vector<2xf32> to vector<2x1xf32>
    %173 = tpu.reciprocal %172 : vector<2x1xf32> -> vector<2x1xf32>
    %174 = vector.broadcast %173 : vector<2x1xf32> to vector<2x2xf32>
    %175 = arith.mulf %170, %174 : vector<2x2xf32>
    %176 = vector.extract_strided_slice %125 {offsets = [0, 96], sizes = [2, 96], strides = [1, 1]} : vector<2x192xf32> to vector<2x96xf32>
    %177 = vector.extract_strided_slice %175 {offsets = [0, 0], sizes = [2, 1], strides = [1, 1]} : vector<2x2xf32> to vector<2x1xf32>
    %178 = vector.broadcast %177 : vector<2x1xf32> to vector<2x96xf32>
    %179 = vector.broadcast %2 : vector<1x96xf32> to vector<2x96xf32>
    %180 = arith.mulf %178, %179 : vector<2x96xf32>
    %181 = arith.addf %176, %180 : vector<2x96xf32>
    %182 = vector.extract_strided_slice %181 {offsets = [0, 0], sizes = [2, 32], strides = [1, 1]} : vector<2x96xf32> to vector<2x32xf32>
    %183 = vector.extract_strided_slice %124 {offsets = [0, 0], sizes = [2, 32], strides = [1, 1]} : vector<2x96xf32> to vector<2x32xf32>
    %184 = arith.addf %182, %183 : vector<2x32xf32>
    %185 = arith.negf %184 : vector<2x32xf32>
    %186 = math.exp %185 : vector<2x32xf32>
    %cst_38 = arith.constant 1.000000e+00 : f32
    %187 = vector.broadcast %cst_38 : f32 to vector<2x32xf32>
    %188 = arith.addf %187, %186 : vector<2x32xf32>
    %189 = arith.divf %187, %188 : vector<2x32xf32>
    %190 = vector.extract_strided_slice %181 {offsets = [0, 32], sizes = [2, 32], strides = [1, 1]} : vector<2x96xf32> to vector<2x32xf32>
    %191 = vector.extract_strided_slice %124 {offsets = [0, 32], sizes = [2, 32], strides = [1, 1]} : vector<2x96xf32> to vector<2x32xf32>
    %192 = arith.addf %190, %191 : vector<2x32xf32>
    %193 = arith.negf %192 : vector<2x32xf32>
    %194 = math.exp %193 : vector<2x32xf32>
    %cst_39 = arith.constant 1.000000e+00 : f32
    %195 = vector.broadcast %cst_39 : f32 to vector<2x32xf32>
    %196 = arith.addf %195, %194 : vector<2x32xf32>
    %197 = arith.divf %195, %196 : vector<2x32xf32>
    %198 = vector.extract_strided_slice %181 {offsets = [0, 64], sizes = [2, 32], strides = [1, 1]} : vector<2x96xf32> to vector<2x32xf32>
    %199 = vector.extract_strided_slice %124 {offsets = [0, 64], sizes = [2, 32], strides = [1, 1]} : vector<2x96xf32> to vector<2x32xf32>
    %200 = arith.mulf %189, %199 : vector<2x32xf32>
    %201 = arith.addf %198, %200 : vector<2x32xf32>
    %202 = math.tanh %201 : vector<2x32xf32>
    %cst_40 = arith.constant 1.000000e+00 : f32
    %203 = vector.broadcast %cst_40 : f32 to vector<2x32xf32>
    %204 = arith.subf %203, %197 : vector<2x32xf32>
    %205 = arith.mulf %204, %202 : vector<2x32xf32>
    %206 = arith.mulf %197, %108 : vector<2x32xf32>
    %207 = arith.addf %205, %206 : vector<2x32xf32>
    %208 = vector.broadcast %3 : vector<1x32xf32> to vector<2x32xf32>
    %209 = arith.mulf %207, %208 : vector<2x32xf32>
    %cst_41 = arith.constant dense<0.000000e+00> : vector<2xf32>
    %210 = vector.multi_reduction <add>, %209, %cst_41 [1] : vector<2x32xf32> to vector<2xf32>
    %211 = vector.shape_cast %210 : vector<2xf32> to vector<2x1xf32>
    %212 = vector.broadcast %8 : vector<1x1xf32> to vector<2x1xf32>
    %213 = arith.addf %211, %212 : vector<2x1xf32>
    %214 = tpu.concatenate %175, %213 in 1 : vector<2x2xf32>, vector<2x1xf32> -> vector<2x3xf32>
    %c1_42 = arith.constant 1 : index
    %c0_43 = arith.constant 0 : index
    %c0_44 = arith.constant 0 : index
    %215 = vector.load %arg5[%c1_42, %c0_43, %c0_44] : memref<8x2x3xf32, #tpu.memory_space<vmem>>, vector<1x2x3xf32>
    %216 = vector.shape_cast %215 : vector<1x2x3xf32> to vector<2x3xf32>
    %217 = vector.shape_cast %214 : vector<2x3xf32> to vector<1x2x3xf32>
    tpu.vector_store %arg5[%c1_42, %c0_43, %c0_44], %217 {strides = array<i32>} : memref<8x2x3xf32, #tpu.memory_space<vmem>>, vector<1x2x3xf32>,
    %cst_45 = arith.constant dense<0.000000e+00> : vector<2x96xf32>
    %218 = tpu.matmul %152, %9, %cst_45 {dimension_numbers = #tpu.dot_dimension_numbers<[1], [0], [0], [1], [0, 0, 1, 1], [], []>} : vector<2x32xf32>, vector<32x96xf32>, vector<2x96xf32> -> vector<2x96xf32>
    %219 = vector.broadcast %5 : vector<1x96xf32> to vector<2x96xf32>
    %220 = arith.addf %218, %219 : vector<2x96xf32>
    %cst_46 = arith.constant dense<0.000000e+00> : vector<2x96xf32>
    %221 = tpu.matmul %207, %10, %cst_46 {dimension_numbers = #tpu.dot_dimension_numbers<[1], [0], [0], [1], [0, 0, 1, 1], [], []>} : vector<2x32xf32>, vector<32x96xf32>, vector<2x96xf32> -> vector<2x96xf32>
    %222 = vector.broadcast %6 : vector<1x96xf32> to vector<2x96xf32>
    %223 = arith.addf %221, %222 : vector<2x96xf32>
    %224 = vector.extract_strided_slice %15 {offsets = [4, 0], sizes = [2, 192], strides = [1, 1]} : vector<16x192xf32> to vector<2x192xf32>
    %225 = vector.extract_strided_slice %224 {offsets = [0, 0], sizes = [2, 96], strides = [1, 1]} : vector<2x192xf32> to vector<2x96xf32>
    %226 = vector.extract_strided_slice %225 {offsets = [0, 0], sizes = [2, 32], strides = [1, 1]} : vector<2x96xf32> to vector<2x32xf32>
    %227 = vector.extract_strided_slice %220 {offsets = [0, 0], sizes = [2, 32], strides = [1, 1]} : vector<2x96xf32> to vector<2x32xf32>
    %228 = arith.addf %226, %227 : vector<2x32xf32>
    %229 = arith.negf %228 : vector<2x32xf32>
    %230 = math.exp %229 : vector<2x32xf32>
    %cst_47 = arith.constant 1.000000e+00 : f32
    %231 = vector.broadcast %cst_47 : f32 to vector<2x32xf32>
    %232 = arith.addf %231, %230 : vector<2x32xf32>
    %233 = arith.divf %231, %232 : vector<2x32xf32>
    %234 = vector.extract_strided_slice %225 {offsets = [0, 32], sizes = [2, 32], strides = [1, 1]} : vector<2x96xf32> to vector<2x32xf32>
    %235 = vector.extract_strided_slice %220 {offsets = [0, 32], sizes = [2, 32], strides = [1, 1]} : vector<2x96xf32> to vector<2x32xf32>
    %236 = arith.addf %234, %235 : vector<2x32xf32>
    %237 = arith.negf %236 : vector<2x32xf32>
    %238 = math.exp %237 : vector<2x32xf32>
    %cst_48 = arith.constant 1.000000e+00 : f32
    %239 = vector.broadcast %cst_48 : f32 to vector<2x32xf32>
    %240 = arith.addf %239, %238 : vector<2x32xf32>
    %241 = arith.divf %239, %240 : vector<2x32xf32>
    %242 = vector.extract_strided_slice %225 {offsets = [0, 64], sizes = [2, 32], strides = [1, 1]} : vector<2x96xf32> to vector<2x32xf32>
    %243 = vector.extract_strided_slice %220 {offsets = [0, 64], sizes = [2, 32], strides = [1, 1]} : vector<2x96xf32> to vector<2x32xf32>
    %244 = arith.mulf %233, %243 : vector<2x32xf32>
    %245 = arith.addf %242, %244 : vector<2x32xf32>
    %246 = math.tanh %245 : vector<2x32xf32>
    %cst_49 = arith.constant 1.000000e+00 : f32
    %247 = vector.broadcast %cst_49 : f32 to vector<2x32xf32>
    %248 = arith.subf %247, %241 : vector<2x32xf32>
    %249 = arith.mulf %248, %246 : vector<2x32xf32>
    %250 = arith.mulf %241, %152 : vector<2x32xf32>
    %251 = arith.addf %249, %250 : vector<2x32xf32>
    %252 = vector.extract_strided_slice %1 {offsets = [0, 0], sizes = [1, 32], strides = [1, 1]} : vector<2x32xf32> to vector<1x32xf32>
    %253 = vector.broadcast %252 : vector<1x32xf32> to vector<2x32xf32>
    %254 = arith.mulf %251, %253 : vector<2x32xf32>
    %cst_50 = arith.constant dense<0.000000e+00> : vector<2xf32>
    %255 = vector.multi_reduction <add>, %254, %cst_50 [1] : vector<2x32xf32> to vector<2xf32>
    %256 = vector.shape_cast %255 : vector<2xf32> to vector<2x1xf32>
    %257 = vector.extract_strided_slice %1 {offsets = [1, 0], sizes = [1, 32], strides = [1, 1]} : vector<2x32xf32> to vector<1x32xf32>
    %258 = vector.broadcast %257 : vector<1x32xf32> to vector<2x32xf32>
    %259 = arith.mulf %251, %258 : vector<2x32xf32>
    %cst_51 = arith.constant dense<0.000000e+00> : vector<2xf32>
    %260 = vector.multi_reduction <add>, %259, %cst_51 [1] : vector<2x32xf32> to vector<2xf32>
    %261 = vector.shape_cast %260 : vector<2xf32> to vector<2x1xf32>
    %262 = tpu.concatenate %256, %261 in 1 : vector<2x1xf32>, vector<2x1xf32> -> vector<2x2xf32>
    %263 = vector.broadcast %7 : vector<1x2xf32> to vector<2x2xf32>
    %264 = arith.addf %262, %263 : vector<2x2xf32>
    %cst_52 = arith.constant dense<0xFF800000> : vector<2xf32>
    %265 = vector.multi_reduction <maximumf>, %264, %cst_52 [1] : vector<2x2xf32> to vector<2xf32>
    %266 = vector.shape_cast %265 : vector<2xf32> to vector<2x1xf32>
    %267 = vector.broadcast %266 : vector<2x1xf32> to vector<2x2xf32>
    %268 = arith.subf %264, %267 : vector<2x2xf32>
    %269 = math.exp %268 : vector<2x2xf32>
    %cst_53 = arith.constant dense<0.000000e+00> : vector<2xf32>
    %270 = vector.multi_reduction <add>, %269, %cst_53 [1] : vector<2x2xf32> to vector<2xf32>
    %271 = vector.shape_cast %270 : vector<2xf32> to vector<2x1xf32>
    %272 = tpu.reciprocal %271 : vector<2x1xf32> -> vector<2x1xf32>
    %273 = vector.broadcast %272 : vector<2x1xf32> to vector<2x2xf32>
    %274 = arith.mulf %269, %273 : vector<2x2xf32>
    %275 = vector.extract_strided_slice %224 {offsets = [0, 96], sizes = [2, 96], strides = [1, 1]} : vector<2x192xf32> to vector<2x96xf32>
    %276 = vector.extract_strided_slice %274 {offsets = [0, 0], sizes = [2, 1], strides = [1, 1]} : vector<2x2xf32> to vector<2x1xf32>
    %277 = vector.broadcast %276 : vector<2x1xf32> to vector<2x96xf32>
    %278 = vector.broadcast %2 : vector<1x96xf32> to vector<2x96xf32>
    %279 = arith.mulf %277, %278 : vector<2x96xf32>
    %280 = arith.addf %275, %279 : vector<2x96xf32>
    %281 = vector.extract_strided_slice %280 {offsets = [0, 0], sizes = [2, 32], strides = [1, 1]} : vector<2x96xf32> to vector<2x32xf32>
    %282 = vector.extract_strided_slice %223 {offsets = [0, 0], sizes = [2, 32], strides = [1, 1]} : vector<2x96xf32> to vector<2x32xf32>
    %283 = arith.addf %281, %282 : vector<2x32xf32>
    %284 = arith.negf %283 : vector<2x32xf32>
    %285 = math.exp %284 : vector<2x32xf32>
    %cst_54 = arith.constant 1.000000e+00 : f32
    %286 = vector.broadcast %cst_54 : f32 to vector<2x32xf32>
    %287 = arith.addf %286, %285 : vector<2x32xf32>
    %288 = arith.divf %286, %287 : vector<2x32xf32>
    %289 = vector.extract_strided_slice %280 {offsets = [0, 32], sizes = [2, 32], strides = [1, 1]} : vector<2x96xf32> to vector<2x32xf32>
    %290 = vector.extract_strided_slice %223 {offsets = [0, 32], sizes = [2, 32], strides = [1, 1]} : vector<2x96xf32> to vector<2x32xf32>
    %291 = arith.addf %289, %290 : vector<2x32xf32>
    %292 = arith.negf %291 : vector<2x32xf32>
    %293 = math.exp %292 : vector<2x32xf32>
    %cst_55 = arith.constant 1.000000e+00 : f32
    %294 = vector.broadcast %cst_55 : f32 to vector<2x32xf32>
    %295 = arith.addf %294, %293 : vector<2x32xf32>
    %296 = arith.divf %294, %295 : vector<2x32xf32>
    %297 = vector.extract_strided_slice %280 {offsets = [0, 64], sizes = [2, 32], strides = [1, 1]} : vector<2x96xf32> to vector<2x32xf32>
    %298 = vector.extract_strided_slice %223 {offsets = [0, 64], sizes = [2, 32], strides = [1, 1]} : vector<2x96xf32> to vector<2x32xf32>
    %299 = arith.mulf %288, %298 : vector<2x32xf32>
    %300 = arith.addf %297, %299 : vector<2x32xf32>
    %301 = math.tanh %300 : vector<2x32xf32>
    %cst_56 = arith.constant 1.000000e+00 : f32
    %302 = vector.broadcast %cst_56 : f32 to vector<2x32xf32>
    %303 = arith.subf %302, %296 : vector<2x32xf32>
    %304 = arith.mulf %303, %301 : vector<2x32xf32>
    %305 = arith.mulf %296, %207 : vector<2x32xf32>
    %306 = arith.addf %304, %305 : vector<2x32xf32>
    %307 = vector.broadcast %3 : vector<1x32xf32> to vector<2x32xf32>
    %308 = arith.mulf %306, %307 : vector<2x32xf32>
    %cst_57 = arith.constant dense<0.000000e+00> : vector<2xf32>
    %309 = vector.multi_reduction <add>, %308, %cst_57 [1] : vector<2x32xf32> to vector<2xf32>
    %310 = vector.shape_cast %309 : vector<2xf32> to vector<2x1xf32>
    %311 = vector.broadcast %8 : vector<1x1xf32> to vector<2x1xf32>
    %312 = arith.addf %310, %311 : vector<2x1xf32>
    %313 = tpu.concatenate %274, %312 in 1 : vector<2x2xf32>, vector<2x1xf32> -> vector<2x3xf32>
    %c2 = arith.constant 2 : index
    %c0_58 = arith.constant 0 : index
    %c0_59 = arith.constant 0 : index
    %314 = vector.load %arg5[%c2, %c0_58, %c0_59] : memref<8x2x3xf32, #tpu.memory_space<vmem>>, vector<1x2x3xf32>
    %315 = vector.shape_cast %314 : vector<1x2x3xf32> to vector<2x3xf32>
    %316 = vector.shape_cast %313 : vector<2x3xf32> to vector<1x2x3xf32>
    tpu.vector_store %arg5[%c2, %c0_58, %c0_59], %316 {strides = array<i32>} : memref<8x2x3xf32, #tpu.memory_space<vmem>>, vector<1x2x3xf32>,
    %cst_60 = arith.constant dense<0.000000e+00> : vector<2x96xf32>
    %317 = tpu.matmul %251, %9, %cst_60 {dimension_numbers = #tpu.dot_dimension_numbers<[1], [0], [0], [1], [0, 0, 1, 1], [], []>} : vector<2x32xf32>, vector<32x96xf32>, vector<2x96xf32> -> vector<2x96xf32>
    %318 = vector.broadcast %5 : vector<1x96xf32> to vector<2x96xf32>
    %319 = arith.addf %317, %318 : vector<2x96xf32>
    %cst_61 = arith.constant dense<0.000000e+00> : vector<2x96xf32>
    %320 = tpu.matmul %306, %10, %cst_61 {dimension_numbers = #tpu.dot_dimension_numbers<[1], [0], [0], [1], [0, 0, 1, 1], [], []>} : vector<2x32xf32>, vector<32x96xf32>, vector<2x96xf32> -> vector<2x96xf32>
    %321 = vector.broadcast %6 : vector<1x96xf32> to vector<2x96xf32>
    %322 = arith.addf %320, %321 : vector<2x96xf32>
    %323 = vector.extract_strided_slice %15 {offsets = [6, 0], sizes = [2, 192], strides = [1, 1]} : vector<16x192xf32> to vector<2x192xf32>
    %324 = vector.extract_strided_slice %323 {offsets = [0, 0], sizes = [2, 96], strides = [1, 1]} : vector<2x192xf32> to vector<2x96xf32>
    %325 = vector.extract_strided_slice %324 {offsets = [0, 0], sizes = [2, 32], strides = [1, 1]} : vector<2x96xf32> to vector<2x32xf32>
    %326 = vector.extract_strided_slice %319 {offsets = [0, 0], sizes = [2, 32], strides = [1, 1]} : vector<2x96xf32> to vector<2x32xf32>
    %327 = arith.addf %325, %326 : vector<2x32xf32>
    %328 = arith.negf %327 : vector<2x32xf32>
    %329 = math.exp %328 : vector<2x32xf32>
    %cst_62 = arith.constant 1.000000e+00 : f32
    %330 = vector.broadcast %cst_62 : f32 to vector<2x32xf32>
    %331 = arith.addf %330, %329 : vector<2x32xf32>
    %332 = arith.divf %330, %331 : vector<2x32xf32>
    %333 = vector.extract_strided_slice %324 {offsets = [0, 32], sizes = [2, 32], strides = [1, 1]} : vector<2x96xf32> to vector<2x32xf32>
    %334 = vector.extract_strided_slice %319 {offsets = [0, 32], sizes = [2, 32], strides = [1, 1]} : vector<2x96xf32> to vector<2x32xf32>
    %335 = arith.addf %333, %334 : vector<2x32xf32>
    %336 = arith.negf %335 : vector<2x32xf32>
    %337 = math.exp %336 : vector<2x32xf32>
    %cst_63 = arith.constant 1.000000e+00 : f32
    %338 = vector.broadcast %cst_63 : f32 to vector<2x32xf32>
    %339 = arith.addf %338, %337 : vector<2x32xf32>
    %340 = arith.divf %338, %339 : vector<2x32xf32>
    %341 = vector.extract_strided_slice %324 {offsets = [0, 64], sizes = [2, 32], strides = [1, 1]} : vector<2x96xf32> to vector<2x32xf32>
    %342 = vector.extract_strided_slice %319 {offsets = [0, 64], sizes = [2, 32], strides = [1, 1]} : vector<2x96xf32> to vector<2x32xf32>
    %343 = arith.mulf %332, %342 : vector<2x32xf32>
    %344 = arith.addf %341, %343 : vector<2x32xf32>
    %345 = math.tanh %344 : vector<2x32xf32>
    %cst_64 = arith.constant 1.000000e+00 : f32
    %346 = vector.broadcast %cst_64 : f32 to vector<2x32xf32>
    %347 = arith.subf %346, %340 : vector<2x32xf32>
    %348 = arith.mulf %347, %345 : vector<2x32xf32>
    %349 = arith.mulf %340, %251 : vector<2x32xf32>
    %350 = arith.addf %348, %349 : vector<2x32xf32>
    %351 = vector.extract_strided_slice %1 {offsets = [0, 0], sizes = [1, 32], strides = [1, 1]} : vector<2x32xf32> to vector<1x32xf32>
    %352 = vector.broadcast %351 : vector<1x32xf32> to vector<2x32xf32>
    %353 = arith.mulf %350, %352 : vector<2x32xf32>
    %cst_65 = arith.constant dense<0.000000e+00> : vector<2xf32>
    %354 = vector.multi_reduction <add>, %353, %cst_65 [1] : vector<2x32xf32> to vector<2xf32>
    %355 = vector.shape_cast %354 : vector<2xf32> to vector<2x1xf32>
    %356 = vector.extract_strided_slice %1 {offsets = [1, 0], sizes = [1, 32], strides = [1, 1]} : vector<2x32xf32> to vector<1x32xf32>
    %357 = vector.broadcast %356 : vector<1x32xf32> to vector<2x32xf32>
    %358 = arith.mulf %350, %357 : vector<2x32xf32>
    %cst_66 = arith.constant dense<0.000000e+00> : vector<2xf32>
    %359 = vector.multi_reduction <add>, %358, %cst_66 [1] : vector<2x32xf32> to vector<2xf32>
    %360 = vector.shape_cast %359 : vector<2xf32> to vector<2x1xf32>
    %361 = tpu.concatenate %355, %360 in 1 : vector<2x1xf32>, vector<2x1xf32> -> vector<2x2xf32>
    %362 = vector.broadcast %7 : vector<1x2xf32> to vector<2x2xf32>
    %363 = arith.addf %361, %362 : vector<2x2xf32>
    %cst_67 = arith.constant dense<0xFF800000> : vector<2xf32>
    %364 = vector.multi_reduction <maximumf>, %363, %cst_67 [1] : vector<2x2xf32> to vector<2xf32>
    %365 = vector.shape_cast %364 : vector<2xf32> to vector<2x1xf32>
    %366 = vector.broadcast %365 : vector<2x1xf32> to vector<2x2xf32>
    %367 = arith.subf %363, %366 : vector<2x2xf32>
    %368 = math.exp %367 : vector<2x2xf32>
    %cst_68 = arith.constant dense<0.000000e+00> : vector<2xf32>
    %369 = vector.multi_reduction <add>, %368, %cst_68 [1] : vector<2x2xf32> to vector<2xf32>
    %370 = vector.shape_cast %369 : vector<2xf32> to vector<2x1xf32>
    %371 = tpu.reciprocal %370 : vector<2x1xf32> -> vector<2x1xf32>
    %372 = vector.broadcast %371 : vector<2x1xf32> to vector<2x2xf32>
    %373 = arith.mulf %368, %372 : vector<2x2xf32>
    %374 = vector.extract_strided_slice %323 {offsets = [0, 96], sizes = [2, 96], strides = [1, 1]} : vector<2x192xf32> to vector<2x96xf32>
    %375 = vector.extract_strided_slice %373 {offsets = [0, 0], sizes = [2, 1], strides = [1, 1]} : vector<2x2xf32> to vector<2x1xf32>
    %376 = vector.broadcast %375 : vector<2x1xf32> to vector<2x96xf32>
    %377 = vector.broadcast %2 : vector<1x96xf32> to vector<2x96xf32>
    %378 = arith.mulf %376, %377 : vector<2x96xf32>
    %379 = arith.addf %374, %378 : vector<2x96xf32>
    %380 = vector.extract_strided_slice %379 {offsets = [0, 0], sizes = [2, 32], strides = [1, 1]} : vector<2x96xf32> to vector<2x32xf32>
    %381 = vector.extract_strided_slice %322 {offsets = [0, 0], sizes = [2, 32], strides = [1, 1]} : vector<2x96xf32> to vector<2x32xf32>
    %382 = arith.addf %380, %381 : vector<2x32xf32>
    %383 = arith.negf %382 : vector<2x32xf32>
    %384 = math.exp %383 : vector<2x32xf32>
    %cst_69 = arith.constant 1.000000e+00 : f32
    %385 = vector.broadcast %cst_69 : f32 to vector<2x32xf32>
    %386 = arith.addf %385, %384 : vector<2x32xf32>
    %387 = arith.divf %385, %386 : vector<2x32xf32>
    %388 = vector.extract_strided_slice %379 {offsets = [0, 32], sizes = [2, 32], strides = [1, 1]} : vector<2x96xf32> to vector<2x32xf32>
    %389 = vector.extract_strided_slice %322 {offsets = [0, 32], sizes = [2, 32], strides = [1, 1]} : vector<2x96xf32> to vector<2x32xf32>
    %390 = arith.addf %388, %389 : vector<2x32xf32>
    %391 = arith.negf %390 : vector<2x32xf32>
    %392 = math.exp %391 : vector<2x32xf32>
    %cst_70 = arith.constant 1.000000e+00 : f32
    %393 = vector.broadcast %cst_70 : f32 to vector<2x32xf32>
    %394 = arith.addf %393, %392 : vector<2x32xf32>
    %395 = arith.divf %393, %394 : vector<2x32xf32>
    %396 = vector.extract_strided_slice %379 {offsets = [0, 64], sizes = [2, 32], strides = [1, 1]} : vector<2x96xf32> to vector<2x32xf32>
    %397 = vector.extract_strided_slice %322 {offsets = [0, 64], sizes = [2, 32], strides = [1, 1]} : vector<2x96xf32> to vector<2x32xf32>
    %398 = arith.mulf %387, %397 : vector<2x32xf32>
    %399 = arith.addf %396, %398 : vector<2x32xf32>
    %400 = math.tanh %399 : vector<2x32xf32>
    %cst_71 = arith.constant 1.000000e+00 : f32
    %401 = vector.broadcast %cst_71 : f32 to vector<2x32xf32>
    %402 = arith.subf %401, %395 : vector<2x32xf32>
    %403 = arith.mulf %402, %400 : vector<2x32xf32>
    %404 = arith.mulf %395, %306 : vector<2x32xf32>
    %405 = arith.addf %403, %404 : vector<2x32xf32>
    %406 = vector.broadcast %3 : vector<1x32xf32> to vector<2x32xf32>
    %407 = arith.mulf %405, %406 : vector<2x32xf32>
    %cst_72 = arith.constant dense<0.000000e+00> : vector<2xf32>
    %408 = vector.multi_reduction <add>, %407, %cst_72 [1] : vector<2x32xf32> to vector<2xf32>
    %409 = vector.shape_cast %408 : vector<2xf32> to vector<2x1xf32>
    %410 = vector.broadcast %8 : vector<1x1xf32> to vector<2x1xf32>
    %411 = arith.addf %409, %410 : vector<2x1xf32>
    %412 = tpu.concatenate %373, %411 in 1 : vector<2x2xf32>, vector<2x1xf32> -> vector<2x3xf32>
    %c3 = arith.constant 3 : index
    %c0_73 = arith.constant 0 : index
    %c0_74 = arith.constant 0 : index
    %413 = vector.load %arg5[%c3, %c0_73, %c0_74] : memref<8x2x3xf32, #tpu.memory_space<vmem>>, vector<1x2x3xf32>
    %414 = vector.shape_cast %413 : vector<1x2x3xf32> to vector<2x3xf32>
    %415 = vector.shape_cast %412 : vector<2x3xf32> to vector<1x2x3xf32>
    tpu.vector_store %arg5[%c3, %c0_73, %c0_74], %415 {strides = array<i32>} : memref<8x2x3xf32, #tpu.memory_space<vmem>>, vector<1x2x3xf32>,
    %cst_75 = arith.constant dense<0.000000e+00> : vector<2x96xf32>
    %416 = tpu.matmul %350, %9, %cst_75 {dimension_numbers = #tpu.dot_dimension_numbers<[1], [0], [0], [1], [0, 0, 1, 1], [], []>} : vector<2x32xf32>, vector<32x96xf32>, vector<2x96xf32> -> vector<2x96xf32>
    %417 = vector.broadcast %5 : vector<1x96xf32> to vector<2x96xf32>
    %418 = arith.addf %416, %417 : vector<2x96xf32>
    %cst_76 = arith.constant dense<0.000000e+00> : vector<2x96xf32>
    %419 = tpu.matmul %405, %10, %cst_76 {dimension_numbers = #tpu.dot_dimension_numbers<[1], [0], [0], [1], [0, 0, 1, 1], [], []>} : vector<2x32xf32>, vector<32x96xf32>, vector<2x96xf32> -> vector<2x96xf32>
    %420 = vector.broadcast %6 : vector<1x96xf32> to vector<2x96xf32>
    %421 = arith.addf %419, %420 : vector<2x96xf32>
    %422 = vector.extract_strided_slice %15 {offsets = [8, 0], sizes = [2, 192], strides = [1, 1]} : vector<16x192xf32> to vector<2x192xf32>
    %423 = vector.extract_strided_slice %422 {offsets = [0, 0], sizes = [2, 96], strides = [1, 1]} : vector<2x192xf32> to vector<2x96xf32>
    %424 = vector.extract_strided_slice %423 {offsets = [0, 0], sizes = [2, 32], strides = [1, 1]} : vector<2x96xf32> to vector<2x32xf32>
    %425 = vector.extract_strided_slice %418 {offsets = [0, 0], sizes = [2, 32], strides = [1, 1]} : vector<2x96xf32> to vector<2x32xf32>
    %426 = arith.addf %424, %425 : vector<2x32xf32>
    %427 = arith.negf %426 : vector<2x32xf32>
    %428 = math.exp %427 : vector<2x32xf32>
    %cst_77 = arith.constant 1.000000e+00 : f32
    %429 = vector.broadcast %cst_77 : f32 to vector<2x32xf32>
    %430 = arith.addf %429, %428 : vector<2x32xf32>
    %431 = arith.divf %429, %430 : vector<2x32xf32>
    %432 = vector.extract_strided_slice %423 {offsets = [0, 32], sizes = [2, 32], strides = [1, 1]} : vector<2x96xf32> to vector<2x32xf32>
    %433 = vector.extract_strided_slice %418 {offsets = [0, 32], sizes = [2, 32], strides = [1, 1]} : vector<2x96xf32> to vector<2x32xf32>
    %434 = arith.addf %432, %433 : vector<2x32xf32>
    %435 = arith.negf %434 : vector<2x32xf32>
    %436 = math.exp %435 : vector<2x32xf32>
    %cst_78 = arith.constant 1.000000e+00 : f32
    %437 = vector.broadcast %cst_78 : f32 to vector<2x32xf32>
    %438 = arith.addf %437, %436 : vector<2x32xf32>
    %439 = arith.divf %437, %438 : vector<2x32xf32>
    %440 = vector.extract_strided_slice %423 {offsets = [0, 64], sizes = [2, 32], strides = [1, 1]} : vector<2x96xf32> to vector<2x32xf32>
    %441 = vector.extract_strided_slice %418 {offsets = [0, 64], sizes = [2, 32], strides = [1, 1]} : vector<2x96xf32> to vector<2x32xf32>
    %442 = arith.mulf %431, %441 : vector<2x32xf32>
    %443 = arith.addf %440, %442 : vector<2x32xf32>
    %444 = math.tanh %443 : vector<2x32xf32>
    %cst_79 = arith.constant 1.000000e+00 : f32
    %445 = vector.broadcast %cst_79 : f32 to vector<2x32xf32>
    %446 = arith.subf %445, %439 : vector<2x32xf32>
    %447 = arith.mulf %446, %444 : vector<2x32xf32>
    %448 = arith.mulf %439, %350 : vector<2x32xf32>
    %449 = arith.addf %447, %448 : vector<2x32xf32>
    %450 = vector.extract_strided_slice %1 {offsets = [0, 0], sizes = [1, 32], strides = [1, 1]} : vector<2x32xf32> to vector<1x32xf32>
    %451 = vector.broadcast %450 : vector<1x32xf32> to vector<2x32xf32>
    %452 = arith.mulf %449, %451 : vector<2x32xf32>
    %cst_80 = arith.constant dense<0.000000e+00> : vector<2xf32>
    %453 = vector.multi_reduction <add>, %452, %cst_80 [1] : vector<2x32xf32> to vector<2xf32>
    %454 = vector.shape_cast %453 : vector<2xf32> to vector<2x1xf32>
    %455 = vector.extract_strided_slice %1 {offsets = [1, 0], sizes = [1, 32], strides = [1, 1]} : vector<2x32xf32> to vector<1x32xf32>
    %456 = vector.broadcast %455 : vector<1x32xf32> to vector<2x32xf32>
    %457 = arith.mulf %449, %456 : vector<2x32xf32>
    %cst_81 = arith.constant dense<0.000000e+00> : vector<2xf32>
    %458 = vector.multi_reduction <add>, %457, %cst_81 [1] : vector<2x32xf32> to vector<2xf32>
    %459 = vector.shape_cast %458 : vector<2xf32> to vector<2x1xf32>
    %460 = tpu.concatenate %454, %459 in 1 : vector<2x1xf32>, vector<2x1xf32> -> vector<2x2xf32>
    %461 = vector.broadcast %7 : vector<1x2xf32> to vector<2x2xf32>
    %462 = arith.addf %460, %461 : vector<2x2xf32>
    %cst_82 = arith.constant dense<0xFF800000> : vector<2xf32>
    %463 = vector.multi_reduction <maximumf>, %462, %cst_82 [1] : vector<2x2xf32> to vector<2xf32>
    %464 = vector.shape_cast %463 : vector<2xf32> to vector<2x1xf32>
    %465 = vector.broadcast %464 : vector<2x1xf32> to vector<2x2xf32>
    %466 = arith.subf %462, %465 : vector<2x2xf32>
    %467 = math.exp %466 : vector<2x2xf32>
    %cst_83 = arith.constant dense<0.000000e+00> : vector<2xf32>
    %468 = vector.multi_reduction <add>, %467, %cst_83 [1] : vector<2x2xf32> to vector<2xf32>
    %469 = vector.shape_cast %468 : vector<2xf32> to vector<2x1xf32>
    %470 = tpu.reciprocal %469 : vector<2x1xf32> -> vector<2x1xf32>
    %471 = vector.broadcast %470 : vector<2x1xf32> to vector<2x2xf32>
    %472 = arith.mulf %467, %471 : vector<2x2xf32>
    %473 = vector.extract_strided_slice %422 {offsets = [0, 96], sizes = [2, 96], strides = [1, 1]} : vector<2x192xf32> to vector<2x96xf32>
    %474 = vector.extract_strided_slice %472 {offsets = [0, 0], sizes = [2, 1], strides = [1, 1]} : vector<2x2xf32> to vector<2x1xf32>
    %475 = vector.broadcast %474 : vector<2x1xf32> to vector<2x96xf32>
    %476 = vector.broadcast %2 : vector<1x96xf32> to vector<2x96xf32>
    %477 = arith.mulf %475, %476 : vector<2x96xf32>
    %478 = arith.addf %473, %477 : vector<2x96xf32>
    %479 = vector.extract_strided_slice %478 {offsets = [0, 0], sizes = [2, 32], strides = [1, 1]} : vector<2x96xf32> to vector<2x32xf32>
    %480 = vector.extract_strided_slice %421 {offsets = [0, 0], sizes = [2, 32], strides = [1, 1]} : vector<2x96xf32> to vector<2x32xf32>
    %481 = arith.addf %479, %480 : vector<2x32xf32>
    %482 = arith.negf %481 : vector<2x32xf32>
    %483 = math.exp %482 : vector<2x32xf32>
    %cst_84 = arith.constant 1.000000e+00 : f32
    %484 = vector.broadcast %cst_84 : f32 to vector<2x32xf32>
    %485 = arith.addf %484, %483 : vector<2x32xf32>
    %486 = arith.divf %484, %485 : vector<2x32xf32>
    %487 = vector.extract_strided_slice %478 {offsets = [0, 32], sizes = [2, 32], strides = [1, 1]} : vector<2x96xf32> to vector<2x32xf32>
    %488 = vector.extract_strided_slice %421 {offsets = [0, 32], sizes = [2, 32], strides = [1, 1]} : vector<2x96xf32> to vector<2x32xf32>
    %489 = arith.addf %487, %488 : vector<2x32xf32>
    %490 = arith.negf %489 : vector<2x32xf32>
    %491 = math.exp %490 : vector<2x32xf32>
    %cst_85 = arith.constant 1.000000e+00 : f32
    %492 = vector.broadcast %cst_85 : f32 to vector<2x32xf32>
    %493 = arith.addf %492, %491 : vector<2x32xf32>
    %494 = arith.divf %492, %493 : vector<2x32xf32>
    %495 = vector.extract_strided_slice %478 {offsets = [0, 64], sizes = [2, 32], strides = [1, 1]} : vector<2x96xf32> to vector<2x32xf32>
    %496 = vector.extract_strided_slice %421 {offsets = [0, 64], sizes = [2, 32], strides = [1, 1]} : vector<2x96xf32> to vector<2x32xf32>
    %497 = arith.mulf %486, %496 : vector<2x32xf32>
    %498 = arith.addf %495, %497 : vector<2x32xf32>
    %499 = math.tanh %498 : vector<2x32xf32>
    %cst_86 = arith.constant 1.000000e+00 : f32
    %500 = vector.broadcast %cst_86 : f32 to vector<2x32xf32>
    %501 = arith.subf %500, %494 : vector<2x32xf32>
    %502 = arith.mulf %501, %499 : vector<2x32xf32>
    %503 = arith.mulf %494, %405 : vector<2x32xf32>
    %504 = arith.addf %502, %503 : vector<2x32xf32>
    %505 = vector.broadcast %3 : vector<1x32xf32> to vector<2x32xf32>
    %506 = arith.mulf %504, %505 : vector<2x32xf32>
    %cst_87 = arith.constant dense<0.000000e+00> : vector<2xf32>
    %507 = vector.multi_reduction <add>, %506, %cst_87 [1] : vector<2x32xf32> to vector<2xf32>
    %508 = vector.shape_cast %507 : vector<2xf32> to vector<2x1xf32>
    %509 = vector.broadcast %8 : vector<1x1xf32> to vector<2x1xf32>
    %510 = arith.addf %508, %509 : vector<2x1xf32>
    %511 = tpu.concatenate %472, %510 in 1 : vector<2x2xf32>, vector<2x1xf32> -> vector<2x3xf32>
    %c4 = arith.constant 4 : index
    %c0_88 = arith.constant 0 : index
    %c0_89 = arith.constant 0 : index
    %512 = vector.load %arg5[%c4, %c0_88, %c0_89] : memref<8x2x3xf32, #tpu.memory_space<vmem>>, vector<1x2x3xf32>
    %513 = vector.shape_cast %512 : vector<1x2x3xf32> to vector<2x3xf32>
    %514 = vector.shape_cast %511 : vector<2x3xf32> to vector<1x2x3xf32>
    tpu.vector_store %arg5[%c4, %c0_88, %c0_89], %514 {strides = array<i32>} : memref<8x2x3xf32, #tpu.memory_space<vmem>>, vector<1x2x3xf32>,
    %cst_90 = arith.constant dense<0.000000e+00> : vector<2x96xf32>
    %515 = tpu.matmul %449, %9, %cst_90 {dimension_numbers = #tpu.dot_dimension_numbers<[1], [0], [0], [1], [0, 0, 1, 1], [], []>} : vector<2x32xf32>, vector<32x96xf32>, vector<2x96xf32> -> vector<2x96xf32>
    %516 = vector.broadcast %5 : vector<1x96xf32> to vector<2x96xf32>
    %517 = arith.addf %515, %516 : vector<2x96xf32>
    %cst_91 = arith.constant dense<0.000000e+00> : vector<2x96xf32>
    %518 = tpu.matmul %504, %10, %cst_91 {dimension_numbers = #tpu.dot_dimension_numbers<[1], [0], [0], [1], [0, 0, 1, 1], [], []>} : vector<2x32xf32>, vector<32x96xf32>, vector<2x96xf32> -> vector<2x96xf32>
    %519 = vector.broadcast %6 : vector<1x96xf32> to vector<2x96xf32>
    %520 = arith.addf %518, %519 : vector<2x96xf32>
    %521 = vector.extract_strided_slice %15 {offsets = [10, 0], sizes = [2, 192], strides = [1, 1]} : vector<16x192xf32> to vector<2x192xf32>
    %522 = vector.extract_strided_slice %521 {offsets = [0, 0], sizes = [2, 96], strides = [1, 1]} : vector<2x192xf32> to vector<2x96xf32>
    %523 = vector.extract_strided_slice %522 {offsets = [0, 0], sizes = [2, 32], strides = [1, 1]} : vector<2x96xf32> to vector<2x32xf32>
    %524 = vector.extract_strided_slice %517 {offsets = [0, 0], sizes = [2, 32], strides = [1, 1]} : vector<2x96xf32> to vector<2x32xf32>
    %525 = arith.addf %523, %524 : vector<2x32xf32>
    %526 = arith.negf %525 : vector<2x32xf32>
    %527 = math.exp %526 : vector<2x32xf32>
    %cst_92 = arith.constant 1.000000e+00 : f32
    %528 = vector.broadcast %cst_92 : f32 to vector<2x32xf32>
    %529 = arith.addf %528, %527 : vector<2x32xf32>
    %530 = arith.divf %528, %529 : vector<2x32xf32>
    %531 = vector.extract_strided_slice %522 {offsets = [0, 32], sizes = [2, 32], strides = [1, 1]} : vector<2x96xf32> to vector<2x32xf32>
    %532 = vector.extract_strided_slice %517 {offsets = [0, 32], sizes = [2, 32], strides = [1, 1]} : vector<2x96xf32> to vector<2x32xf32>
    %533 = arith.addf %531, %532 : vector<2x32xf32>
    %534 = arith.negf %533 : vector<2x32xf32>
    %535 = math.exp %534 : vector<2x32xf32>
    %cst_93 = arith.constant 1.000000e+00 : f32
    %536 = vector.broadcast %cst_93 : f32 to vector<2x32xf32>
    %537 = arith.addf %536, %535 : vector<2x32xf32>
    %538 = arith.divf %536, %537 : vector<2x32xf32>
    %539 = vector.extract_strided_slice %522 {offsets = [0, 64], sizes = [2, 32], strides = [1, 1]} : vector<2x96xf32> to vector<2x32xf32>
    %540 = vector.extract_strided_slice %517 {offsets = [0, 64], sizes = [2, 32], strides = [1, 1]} : vector<2x96xf32> to vector<2x32xf32>
    %541 = arith.mulf %530, %540 : vector<2x32xf32>
    %542 = arith.addf %539, %541 : vector<2x32xf32>
    %543 = math.tanh %542 : vector<2x32xf32>
    %cst_94 = arith.constant 1.000000e+00 : f32
    %544 = vector.broadcast %cst_94 : f32 to vector<2x32xf32>
    %545 = arith.subf %544, %538 : vector<2x32xf32>
    %546 = arith.mulf %545, %543 : vector<2x32xf32>
    %547 = arith.mulf %538, %449 : vector<2x32xf32>
    %548 = arith.addf %546, %547 : vector<2x32xf32>
    %549 = vector.extract_strided_slice %1 {offsets = [0, 0], sizes = [1, 32], strides = [1, 1]} : vector<2x32xf32> to vector<1x32xf32>
    %550 = vector.broadcast %549 : vector<1x32xf32> to vector<2x32xf32>
    %551 = arith.mulf %548, %550 : vector<2x32xf32>
    %cst_95 = arith.constant dense<0.000000e+00> : vector<2xf32>
    %552 = vector.multi_reduction <add>, %551, %cst_95 [1] : vector<2x32xf32> to vector<2xf32>
    %553 = vector.shape_cast %552 : vector<2xf32> to vector<2x1xf32>
    %554 = vector.extract_strided_slice %1 {offsets = [1, 0], sizes = [1, 32], strides = [1, 1]} : vector<2x32xf32> to vector<1x32xf32>
    %555 = vector.broadcast %554 : vector<1x32xf32> to vector<2x32xf32>
    %556 = arith.mulf %548, %555 : vector<2x32xf32>
    %cst_96 = arith.constant dense<0.000000e+00> : vector<2xf32>
    %557 = vector.multi_reduction <add>, %556, %cst_96 [1] : vector<2x32xf32> to vector<2xf32>
    %558 = vector.shape_cast %557 : vector<2xf32> to vector<2x1xf32>
    %559 = tpu.concatenate %553, %558 in 1 : vector<2x1xf32>, vector<2x1xf32> -> vector<2x2xf32>
    %560 = vector.broadcast %7 : vector<1x2xf32> to vector<2x2xf32>
    %561 = arith.addf %559, %560 : vector<2x2xf32>
    %cst_97 = arith.constant dense<0xFF800000> : vector<2xf32>
    %562 = vector.multi_reduction <maximumf>, %561, %cst_97 [1] : vector<2x2xf32> to vector<2xf32>
    %563 = vector.shape_cast %562 : vector<2xf32> to vector<2x1xf32>
    %564 = vector.broadcast %563 : vector<2x1xf32> to vector<2x2xf32>
    %565 = arith.subf %561, %564 : vector<2x2xf32>
    %566 = math.exp %565 : vector<2x2xf32>
    %cst_98 = arith.constant dense<0.000000e+00> : vector<2xf32>
    %567 = vector.multi_reduction <add>, %566, %cst_98 [1] : vector<2x2xf32> to vector<2xf32>
    %568 = vector.shape_cast %567 : vector<2xf32> to vector<2x1xf32>
    %569 = tpu.reciprocal %568 : vector<2x1xf32> -> vector<2x1xf32>
    %570 = vector.broadcast %569 : vector<2x1xf32> to vector<2x2xf32>
    %571 = arith.mulf %566, %570 : vector<2x2xf32>
    %572 = vector.extract_strided_slice %521 {offsets = [0, 96], sizes = [2, 96], strides = [1, 1]} : vector<2x192xf32> to vector<2x96xf32>
    %573 = vector.extract_strided_slice %571 {offsets = [0, 0], sizes = [2, 1], strides = [1, 1]} : vector<2x2xf32> to vector<2x1xf32>
    %574 = vector.broadcast %573 : vector<2x1xf32> to vector<2x96xf32>
    %575 = vector.broadcast %2 : vector<1x96xf32> to vector<2x96xf32>
    %576 = arith.mulf %574, %575 : vector<2x96xf32>
    %577 = arith.addf %572, %576 : vector<2x96xf32>
    %578 = vector.extract_strided_slice %577 {offsets = [0, 0], sizes = [2, 32], strides = [1, 1]} : vector<2x96xf32> to vector<2x32xf32>
    %579 = vector.extract_strided_slice %520 {offsets = [0, 0], sizes = [2, 32], strides = [1, 1]} : vector<2x96xf32> to vector<2x32xf32>
    %580 = arith.addf %578, %579 : vector<2x32xf32>
    %581 = arith.negf %580 : vector<2x32xf32>
    %582 = math.exp %581 : vector<2x32xf32>
    %cst_99 = arith.constant 1.000000e+00 : f32
    %583 = vector.broadcast %cst_99 : f32 to vector<2x32xf32>
    %584 = arith.addf %583, %582 : vector<2x32xf32>
    %585 = arith.divf %583, %584 : vector<2x32xf32>
    %586 = vector.extract_strided_slice %577 {offsets = [0, 32], sizes = [2, 32], strides = [1, 1]} : vector<2x96xf32> to vector<2x32xf32>
    %587 = vector.extract_strided_slice %520 {offsets = [0, 32], sizes = [2, 32], strides = [1, 1]} : vector<2x96xf32> to vector<2x32xf32>
    %588 = arith.addf %586, %587 : vector<2x32xf32>
    %589 = arith.negf %588 : vector<2x32xf32>
    %590 = math.exp %589 : vector<2x32xf32>
    %cst_100 = arith.constant 1.000000e+00 : f32
    %591 = vector.broadcast %cst_100 : f32 to vector<2x32xf32>
    %592 = arith.addf %591, %590 : vector<2x32xf32>
    %593 = arith.divf %591, %592 : vector<2x32xf32>
    %594 = vector.extract_strided_slice %577 {offsets = [0, 64], sizes = [2, 32], strides = [1, 1]} : vector<2x96xf32> to vector<2x32xf32>
    %595 = vector.extract_strided_slice %520 {offsets = [0, 64], sizes = [2, 32], strides = [1, 1]} : vector<2x96xf32> to vector<2x32xf32>
    %596 = arith.mulf %585, %595 : vector<2x32xf32>
    %597 = arith.addf %594, %596 : vector<2x32xf32>
    %598 = math.tanh %597 : vector<2x32xf32>
    %cst_101 = arith.constant 1.000000e+00 : f32
    %599 = vector.broadcast %cst_101 : f32 to vector<2x32xf32>
    %600 = arith.subf %599, %593 : vector<2x32xf32>
    %601 = arith.mulf %600, %598 : vector<2x32xf32>
    %602 = arith.mulf %593, %504 : vector<2x32xf32>
    %603 = arith.addf %601, %602 : vector<2x32xf32>
    %604 = vector.broadcast %3 : vector<1x32xf32> to vector<2x32xf32>
    %605 = arith.mulf %603, %604 : vector<2x32xf32>
    %cst_102 = arith.constant dense<0.000000e+00> : vector<2xf32>
    %606 = vector.multi_reduction <add>, %605, %cst_102 [1] : vector<2x32xf32> to vector<2xf32>
    %607 = vector.shape_cast %606 : vector<2xf32> to vector<2x1xf32>
    %608 = vector.broadcast %8 : vector<1x1xf32> to vector<2x1xf32>
    %609 = arith.addf %607, %608 : vector<2x1xf32>
    %610 = tpu.concatenate %571, %609 in 1 : vector<2x2xf32>, vector<2x1xf32> -> vector<2x3xf32>
    %c5 = arith.constant 5 : index
    %c0_103 = arith.constant 0 : index
    %c0_104 = arith.constant 0 : index
    %611 = vector.load %arg5[%c5, %c0_103, %c0_104] : memref<8x2x3xf32, #tpu.memory_space<vmem>>, vector<1x2x3xf32>
    %612 = vector.shape_cast %611 : vector<1x2x3xf32> to vector<2x3xf32>
    %613 = vector.shape_cast %610 : vector<2x3xf32> to vector<1x2x3xf32>
    tpu.vector_store %arg5[%c5, %c0_103, %c0_104], %613 {strides = array<i32>} : memref<8x2x3xf32, #tpu.memory_space<vmem>>, vector<1x2x3xf32>,
    %cst_105 = arith.constant dense<0.000000e+00> : vector<2x96xf32>
    %614 = tpu.matmul %548, %9, %cst_105 {dimension_numbers = #tpu.dot_dimension_numbers<[1], [0], [0], [1], [0, 0, 1, 1], [], []>} : vector<2x32xf32>, vector<32x96xf32>, vector<2x96xf32> -> vector<2x96xf32>
    %615 = vector.broadcast %5 : vector<1x96xf32> to vector<2x96xf32>
    %616 = arith.addf %614, %615 : vector<2x96xf32>
    %cst_106 = arith.constant dense<0.000000e+00> : vector<2x96xf32>
    %617 = tpu.matmul %603, %10, %cst_106 {dimension_numbers = #tpu.dot_dimension_numbers<[1], [0], [0], [1], [0, 0, 1, 1], [], []>} : vector<2x32xf32>, vector<32x96xf32>, vector<2x96xf32> -> vector<2x96xf32>
    %618 = vector.broadcast %6 : vector<1x96xf32> to vector<2x96xf32>
    %619 = arith.addf %617, %618 : vector<2x96xf32>
    %620 = vector.extract_strided_slice %15 {offsets = [12, 0], sizes = [2, 192], strides = [1, 1]} : vector<16x192xf32> to vector<2x192xf32>
    %621 = vector.extract_strided_slice %620 {offsets = [0, 0], sizes = [2, 96], strides = [1, 1]} : vector<2x192xf32> to vector<2x96xf32>
    %622 = vector.extract_strided_slice %621 {offsets = [0, 0], sizes = [2, 32], strides = [1, 1]} : vector<2x96xf32> to vector<2x32xf32>
    %623 = vector.extract_strided_slice %616 {offsets = [0, 0], sizes = [2, 32], strides = [1, 1]} : vector<2x96xf32> to vector<2x32xf32>
    %624 = arith.addf %622, %623 : vector<2x32xf32>
    %625 = arith.negf %624 : vector<2x32xf32>
    %626 = math.exp %625 : vector<2x32xf32>
    %cst_107 = arith.constant 1.000000e+00 : f32
    %627 = vector.broadcast %cst_107 : f32 to vector<2x32xf32>
    %628 = arith.addf %627, %626 : vector<2x32xf32>
    %629 = arith.divf %627, %628 : vector<2x32xf32>
    %630 = vector.extract_strided_slice %621 {offsets = [0, 32], sizes = [2, 32], strides = [1, 1]} : vector<2x96xf32> to vector<2x32xf32>
    %631 = vector.extract_strided_slice %616 {offsets = [0, 32], sizes = [2, 32], strides = [1, 1]} : vector<2x96xf32> to vector<2x32xf32>
    %632 = arith.addf %630, %631 : vector<2x32xf32>
    %633 = arith.negf %632 : vector<2x32xf32>
    %634 = math.exp %633 : vector<2x32xf32>
    %cst_108 = arith.constant 1.000000e+00 : f32
    %635 = vector.broadcast %cst_108 : f32 to vector<2x32xf32>
    %636 = arith.addf %635, %634 : vector<2x32xf32>
    %637 = arith.divf %635, %636 : vector<2x32xf32>
    %638 = vector.extract_strided_slice %621 {offsets = [0, 64], sizes = [2, 32], strides = [1, 1]} : vector<2x96xf32> to vector<2x32xf32>
    %639 = vector.extract_strided_slice %616 {offsets = [0, 64], sizes = [2, 32], strides = [1, 1]} : vector<2x96xf32> to vector<2x32xf32>
    %640 = arith.mulf %629, %639 : vector<2x32xf32>
    %641 = arith.addf %638, %640 : vector<2x32xf32>
    %642 = math.tanh %641 : vector<2x32xf32>
    %cst_109 = arith.constant 1.000000e+00 : f32
    %643 = vector.broadcast %cst_109 : f32 to vector<2x32xf32>
    %644 = arith.subf %643, %637 : vector<2x32xf32>
    %645 = arith.mulf %644, %642 : vector<2x32xf32>
    %646 = arith.mulf %637, %548 : vector<2x32xf32>
    %647 = arith.addf %645, %646 : vector<2x32xf32>
    %648 = vector.extract_strided_slice %1 {offsets = [0, 0], sizes = [1, 32], strides = [1, 1]} : vector<2x32xf32> to vector<1x32xf32>
    %649 = vector.broadcast %648 : vector<1x32xf32> to vector<2x32xf32>
    %650 = arith.mulf %647, %649 : vector<2x32xf32>
    %cst_110 = arith.constant dense<0.000000e+00> : vector<2xf32>
    %651 = vector.multi_reduction <add>, %650, %cst_110 [1] : vector<2x32xf32> to vector<2xf32>
    %652 = vector.shape_cast %651 : vector<2xf32> to vector<2x1xf32>
    %653 = vector.extract_strided_slice %1 {offsets = [1, 0], sizes = [1, 32], strides = [1, 1]} : vector<2x32xf32> to vector<1x32xf32>
    %654 = vector.broadcast %653 : vector<1x32xf32> to vector<2x32xf32>
    %655 = arith.mulf %647, %654 : vector<2x32xf32>
    %cst_111 = arith.constant dense<0.000000e+00> : vector<2xf32>
    %656 = vector.multi_reduction <add>, %655, %cst_111 [1] : vector<2x32xf32> to vector<2xf32>
    %657 = vector.shape_cast %656 : vector<2xf32> to vector<2x1xf32>
    %658 = tpu.concatenate %652, %657 in 1 : vector<2x1xf32>, vector<2x1xf32> -> vector<2x2xf32>
    %659 = vector.broadcast %7 : vector<1x2xf32> to vector<2x2xf32>
    %660 = arith.addf %658, %659 : vector<2x2xf32>
    %cst_112 = arith.constant dense<0xFF800000> : vector<2xf32>
    %661 = vector.multi_reduction <maximumf>, %660, %cst_112 [1] : vector<2x2xf32> to vector<2xf32>
    %662 = vector.shape_cast %661 : vector<2xf32> to vector<2x1xf32>
    %663 = vector.broadcast %662 : vector<2x1xf32> to vector<2x2xf32>
    %664 = arith.subf %660, %663 : vector<2x2xf32>
    %665 = math.exp %664 : vector<2x2xf32>
    %cst_113 = arith.constant dense<0.000000e+00> : vector<2xf32>
    %666 = vector.multi_reduction <add>, %665, %cst_113 [1] : vector<2x2xf32> to vector<2xf32>
    %667 = vector.shape_cast %666 : vector<2xf32> to vector<2x1xf32>
    %668 = tpu.reciprocal %667 : vector<2x1xf32> -> vector<2x1xf32>
    %669 = vector.broadcast %668 : vector<2x1xf32> to vector<2x2xf32>
    %670 = arith.mulf %665, %669 : vector<2x2xf32>
    %671 = vector.extract_strided_slice %620 {offsets = [0, 96], sizes = [2, 96], strides = [1, 1]} : vector<2x192xf32> to vector<2x96xf32>
    %672 = vector.extract_strided_slice %670 {offsets = [0, 0], sizes = [2, 1], strides = [1, 1]} : vector<2x2xf32> to vector<2x1xf32>
    %673 = vector.broadcast %672 : vector<2x1xf32> to vector<2x96xf32>
    %674 = vector.broadcast %2 : vector<1x96xf32> to vector<2x96xf32>
    %675 = arith.mulf %673, %674 : vector<2x96xf32>
    %676 = arith.addf %671, %675 : vector<2x96xf32>
    %677 = vector.extract_strided_slice %676 {offsets = [0, 0], sizes = [2, 32], strides = [1, 1]} : vector<2x96xf32> to vector<2x32xf32>
    %678 = vector.extract_strided_slice %619 {offsets = [0, 0], sizes = [2, 32], strides = [1, 1]} : vector<2x96xf32> to vector<2x32xf32>
    %679 = arith.addf %677, %678 : vector<2x32xf32>
    %680 = arith.negf %679 : vector<2x32xf32>
    %681 = math.exp %680 : vector<2x32xf32>
    %cst_114 = arith.constant 1.000000e+00 : f32
    %682 = vector.broadcast %cst_114 : f32 to vector<2x32xf32>
    %683 = arith.addf %682, %681 : vector<2x32xf32>
    %684 = arith.divf %682, %683 : vector<2x32xf32>
    %685 = vector.extract_strided_slice %676 {offsets = [0, 32], sizes = [2, 32], strides = [1, 1]} : vector<2x96xf32> to vector<2x32xf32>
    %686 = vector.extract_strided_slice %619 {offsets = [0, 32], sizes = [2, 32], strides = [1, 1]} : vector<2x96xf32> to vector<2x32xf32>
    %687 = arith.addf %685, %686 : vector<2x32xf32>
    %688 = arith.negf %687 : vector<2x32xf32>
    %689 = math.exp %688 : vector<2x32xf32>
    %cst_115 = arith.constant 1.000000e+00 : f32
    %690 = vector.broadcast %cst_115 : f32 to vector<2x32xf32>
    %691 = arith.addf %690, %689 : vector<2x32xf32>
    %692 = arith.divf %690, %691 : vector<2x32xf32>
    %693 = vector.extract_strided_slice %676 {offsets = [0, 64], sizes = [2, 32], strides = [1, 1]} : vector<2x96xf32> to vector<2x32xf32>
    %694 = vector.extract_strided_slice %619 {offsets = [0, 64], sizes = [2, 32], strides = [1, 1]} : vector<2x96xf32> to vector<2x32xf32>
    %695 = arith.mulf %684, %694 : vector<2x32xf32>
    %696 = arith.addf %693, %695 : vector<2x32xf32>
    %697 = math.tanh %696 : vector<2x32xf32>
    %cst_116 = arith.constant 1.000000e+00 : f32
    %698 = vector.broadcast %cst_116 : f32 to vector<2x32xf32>
    %699 = arith.subf %698, %692 : vector<2x32xf32>
    %700 = arith.mulf %699, %697 : vector<2x32xf32>
    %701 = arith.mulf %692, %603 : vector<2x32xf32>
    %702 = arith.addf %700, %701 : vector<2x32xf32>
    %703 = vector.broadcast %3 : vector<1x32xf32> to vector<2x32xf32>
    %704 = arith.mulf %702, %703 : vector<2x32xf32>
    %cst_117 = arith.constant dense<0.000000e+00> : vector<2xf32>
    %705 = vector.multi_reduction <add>, %704, %cst_117 [1] : vector<2x32xf32> to vector<2xf32>
    %706 = vector.shape_cast %705 : vector<2xf32> to vector<2x1xf32>
    %707 = vector.broadcast %8 : vector<1x1xf32> to vector<2x1xf32>
    %708 = arith.addf %706, %707 : vector<2x1xf32>
    %709 = tpu.concatenate %670, %708 in 1 : vector<2x2xf32>, vector<2x1xf32> -> vector<2x3xf32>
    %c6 = arith.constant 6 : index
    %c0_118 = arith.constant 0 : index
    %c0_119 = arith.constant 0 : index
    %710 = vector.load %arg5[%c6, %c0_118, %c0_119] : memref<8x2x3xf32, #tpu.memory_space<vmem>>, vector<1x2x3xf32>
    %711 = vector.shape_cast %710 : vector<1x2x3xf32> to vector<2x3xf32>
    %712 = vector.shape_cast %709 : vector<2x3xf32> to vector<1x2x3xf32>
    tpu.vector_store %arg5[%c6, %c0_118, %c0_119], %712 {strides = array<i32>} : memref<8x2x3xf32, #tpu.memory_space<vmem>>, vector<1x2x3xf32>,
    %cst_120 = arith.constant dense<0.000000e+00> : vector<2x96xf32>
    %713 = tpu.matmul %647, %9, %cst_120 {dimension_numbers = #tpu.dot_dimension_numbers<[1], [0], [0], [1], [0, 0, 1, 1], [], []>} : vector<2x32xf32>, vector<32x96xf32>, vector<2x96xf32> -> vector<2x96xf32>
    %714 = vector.broadcast %5 : vector<1x96xf32> to vector<2x96xf32>
    %715 = arith.addf %713, %714 : vector<2x96xf32>
    %cst_121 = arith.constant dense<0.000000e+00> : vector<2x96xf32>
    %716 = tpu.matmul %702, %10, %cst_121 {dimension_numbers = #tpu.dot_dimension_numbers<[1], [0], [0], [1], [0, 0, 1, 1], [], []>} : vector<2x32xf32>, vector<32x96xf32>, vector<2x96xf32> -> vector<2x96xf32>
    %717 = vector.broadcast %6 : vector<1x96xf32> to vector<2x96xf32>
    %718 = arith.addf %716, %717 : vector<2x96xf32>
    %719 = vector.extract_strided_slice %15 {offsets = [14, 0], sizes = [2, 192], strides = [1, 1]} : vector<16x192xf32> to vector<2x192xf32>
    %720 = vector.extract_strided_slice %719 {offsets = [0, 0], sizes = [2, 96], strides = [1, 1]} : vector<2x192xf32> to vector<2x96xf32>
    %721 = vector.extract_strided_slice %720 {offsets = [0, 0], sizes = [2, 32], strides = [1, 1]} : vector<2x96xf32> to vector<2x32xf32>
    %722 = vector.extract_strided_slice %715 {offsets = [0, 0], sizes = [2, 32], strides = [1, 1]} : vector<2x96xf32> to vector<2x32xf32>
    %723 = arith.addf %721, %722 : vector<2x32xf32>
    %724 = arith.negf %723 : vector<2x32xf32>
    %725 = math.exp %724 : vector<2x32xf32>
    %cst_122 = arith.constant 1.000000e+00 : f32
    %726 = vector.broadcast %cst_122 : f32 to vector<2x32xf32>
    %727 = arith.addf %726, %725 : vector<2x32xf32>
    %728 = arith.divf %726, %727 : vector<2x32xf32>
    %729 = vector.extract_strided_slice %720 {offsets = [0, 32], sizes = [2, 32], strides = [1, 1]} : vector<2x96xf32> to vector<2x32xf32>
    %730 = vector.extract_strided_slice %715 {offsets = [0, 32], sizes = [2, 32], strides = [1, 1]} : vector<2x96xf32> to vector<2x32xf32>
    %731 = arith.addf %729, %730 : vector<2x32xf32>
    %732 = arith.negf %731 : vector<2x32xf32>
    %733 = math.exp %732 : vector<2x32xf32>
    %cst_123 = arith.constant 1.000000e+00 : f32
    %734 = vector.broadcast %cst_123 : f32 to vector<2x32xf32>
    %735 = arith.addf %734, %733 : vector<2x32xf32>
    %736 = arith.divf %734, %735 : vector<2x32xf32>
    %737 = vector.extract_strided_slice %720 {offsets = [0, 64], sizes = [2, 32], strides = [1, 1]} : vector<2x96xf32> to vector<2x32xf32>
    %738 = vector.extract_strided_slice %715 {offsets = [0, 64], sizes = [2, 32], strides = [1, 1]} : vector<2x96xf32> to vector<2x32xf32>
    %739 = arith.mulf %728, %738 : vector<2x32xf32>
    %740 = arith.addf %737, %739 : vector<2x32xf32>
    %741 = math.tanh %740 : vector<2x32xf32>
    %cst_124 = arith.constant 1.000000e+00 : f32
    %742 = vector.broadcast %cst_124 : f32 to vector<2x32xf32>
    %743 = arith.subf %742, %736 : vector<2x32xf32>
    %744 = arith.mulf %743, %741 : vector<2x32xf32>
    %745 = arith.mulf %736, %647 : vector<2x32xf32>
    %746 = arith.addf %744, %745 : vector<2x32xf32>
    %747 = vector.extract_strided_slice %1 {offsets = [0, 0], sizes = [1, 32], strides = [1, 1]} : vector<2x32xf32> to vector<1x32xf32>
    %748 = vector.broadcast %747 : vector<1x32xf32> to vector<2x32xf32>
    %749 = arith.mulf %746, %748 : vector<2x32xf32>
    %cst_125 = arith.constant dense<0.000000e+00> : vector<2xf32>
    %750 = vector.multi_reduction <add>, %749, %cst_125 [1] : vector<2x32xf32> to vector<2xf32>
    %751 = vector.shape_cast %750 : vector<2xf32> to vector<2x1xf32>
    %752 = vector.extract_strided_slice %1 {offsets = [1, 0], sizes = [1, 32], strides = [1, 1]} : vector<2x32xf32> to vector<1x32xf32>
    %753 = vector.broadcast %752 : vector<1x32xf32> to vector<2x32xf32>
    %754 = arith.mulf %746, %753 : vector<2x32xf32>
    %cst_126 = arith.constant dense<0.000000e+00> : vector<2xf32>
    %755 = vector.multi_reduction <add>, %754, %cst_126 [1] : vector<2x32xf32> to vector<2xf32>
    %756 = vector.shape_cast %755 : vector<2xf32> to vector<2x1xf32>
    %757 = tpu.concatenate %751, %756 in 1 : vector<2x1xf32>, vector<2x1xf32> -> vector<2x2xf32>
    %758 = vector.broadcast %7 : vector<1x2xf32> to vector<2x2xf32>
    %759 = arith.addf %757, %758 : vector<2x2xf32>
    %cst_127 = arith.constant dense<0xFF800000> : vector<2xf32>
    %760 = vector.multi_reduction <maximumf>, %759, %cst_127 [1] : vector<2x2xf32> to vector<2xf32>
    %761 = vector.shape_cast %760 : vector<2xf32> to vector<2x1xf32>
    %762 = vector.broadcast %761 : vector<2x1xf32> to vector<2x2xf32>
    %763 = arith.subf %759, %762 : vector<2x2xf32>
    %764 = math.exp %763 : vector<2x2xf32>
    %cst_128 = arith.constant dense<0.000000e+00> : vector<2xf32>
    %765 = vector.multi_reduction <add>, %764, %cst_128 [1] : vector<2x2xf32> to vector<2xf32>
    %766 = vector.shape_cast %765 : vector<2xf32> to vector<2x1xf32>
    %767 = tpu.reciprocal %766 : vector<2x1xf32> -> vector<2x1xf32>
    %768 = vector.broadcast %767 : vector<2x1xf32> to vector<2x2xf32>
    %769 = arith.mulf %764, %768 : vector<2x2xf32>
    %770 = vector.extract_strided_slice %719 {offsets = [0, 96], sizes = [2, 96], strides = [1, 1]} : vector<2x192xf32> to vector<2x96xf32>
    %771 = vector.extract_strided_slice %769 {offsets = [0, 0], sizes = [2, 1], strides = [1, 1]} : vector<2x2xf32> to vector<2x1xf32>
    %772 = vector.broadcast %771 : vector<2x1xf32> to vector<2x96xf32>
    %773 = vector.broadcast %2 : vector<1x96xf32> to vector<2x96xf32>
    %774 = arith.mulf %772, %773 : vector<2x96xf32>
    %775 = arith.addf %770, %774 : vector<2x96xf32>
    %776 = vector.extract_strided_slice %775 {offsets = [0, 0], sizes = [2, 32], strides = [1, 1]} : vector<2x96xf32> to vector<2x32xf32>
    %777 = vector.extract_strided_slice %718 {offsets = [0, 0], sizes = [2, 32], strides = [1, 1]} : vector<2x96xf32> to vector<2x32xf32>
    %778 = arith.addf %776, %777 : vector<2x32xf32>
    %779 = arith.negf %778 : vector<2x32xf32>
    %780 = math.exp %779 : vector<2x32xf32>
    %cst_129 = arith.constant 1.000000e+00 : f32
    %781 = vector.broadcast %cst_129 : f32 to vector<2x32xf32>
    %782 = arith.addf %781, %780 : vector<2x32xf32>
    %783 = arith.divf %781, %782 : vector<2x32xf32>
    %784 = vector.extract_strided_slice %775 {offsets = [0, 32], sizes = [2, 32], strides = [1, 1]} : vector<2x96xf32> to vector<2x32xf32>
    %785 = vector.extract_strided_slice %718 {offsets = [0, 32], sizes = [2, 32], strides = [1, 1]} : vector<2x96xf32> to vector<2x32xf32>
    %786 = arith.addf %784, %785 : vector<2x32xf32>
    %787 = arith.negf %786 : vector<2x32xf32>
    %788 = math.exp %787 : vector<2x32xf32>
    %cst_130 = arith.constant 1.000000e+00 : f32
    %789 = vector.broadcast %cst_130 : f32 to vector<2x32xf32>
    %790 = arith.addf %789, %788 : vector<2x32xf32>
    %791 = arith.divf %789, %790 : vector<2x32xf32>
    %792 = vector.extract_strided_slice %775 {offsets = [0, 64], sizes = [2, 32], strides = [1, 1]} : vector<2x96xf32> to vector<2x32xf32>
    %793 = vector.extract_strided_slice %718 {offsets = [0, 64], sizes = [2, 32], strides = [1, 1]} : vector<2x96xf32> to vector<2x32xf32>
    %794 = arith.mulf %783, %793 : vector<2x32xf32>
    %795 = arith.addf %792, %794 : vector<2x32xf32>
    %796 = math.tanh %795 : vector<2x32xf32>
    %cst_131 = arith.constant 1.000000e+00 : f32
    %797 = vector.broadcast %cst_131 : f32 to vector<2x32xf32>
    %798 = arith.subf %797, %791 : vector<2x32xf32>
    %799 = arith.mulf %798, %796 : vector<2x32xf32>
    %800 = arith.mulf %791, %702 : vector<2x32xf32>
    %801 = arith.addf %799, %800 : vector<2x32xf32>
    %802 = vector.broadcast %3 : vector<1x32xf32> to vector<2x32xf32>
    %803 = arith.mulf %801, %802 : vector<2x32xf32>
    %cst_132 = arith.constant dense<0.000000e+00> : vector<2xf32>
    %804 = vector.multi_reduction <add>, %803, %cst_132 [1] : vector<2x32xf32> to vector<2xf32>
    %805 = vector.shape_cast %804 : vector<2xf32> to vector<2x1xf32>
    %806 = vector.broadcast %8 : vector<1x1xf32> to vector<2x1xf32>
    %807 = arith.addf %805, %806 : vector<2x1xf32>
    %808 = tpu.concatenate %769, %807 in 1 : vector<2x2xf32>, vector<2x1xf32> -> vector<2x3xf32>
    %c7 = arith.constant 7 : index
    %c0_133 = arith.constant 0 : index
    %c0_134 = arith.constant 0 : index
    %809 = vector.load %arg5[%c7, %c0_133, %c0_134] : memref<8x2x3xf32, #tpu.memory_space<vmem>>, vector<1x2x3xf32>
    %810 = vector.shape_cast %809 : vector<1x2x3xf32> to vector<2x3xf32>
    %811 = vector.shape_cast %808 : vector<2x3xf32> to vector<1x2x3xf32>
    tpu.vector_store %arg5[%c7, %c0_133, %c0_134], %811 {strides = array<i32>} : memref<8x2x3xf32, #tpu.memory_space<vmem>>, vector<1x2x3xf32>,
    %c0_135 = arith.constant 0 : index
    %c0_136 = arith.constant 0 : index
    %c0_137 = arith.constant 0 : index
    %812 = vector.load %arg6[%c0_135, %c0_136, %c0_137] : memref<2x2x32xf32, #tpu.memory_space<vmem>>, vector<1x2x32xf32>
    %813 = vector.shape_cast %812 : vector<1x2x32xf32> to vector<2x32xf32>
    %814 = vector.shape_cast %746 : vector<2x32xf32> to vector<1x2x32xf32>
    tpu.vector_store %arg6[%c0_135, %c0_136, %c0_137], %814 {strides = array<i32>} : memref<2x2x32xf32, #tpu.memory_space<vmem>>, vector<1x2x32xf32>,
    %c1_138 = arith.constant 1 : index
    %c0_139 = arith.constant 0 : index
    %c0_140 = arith.constant 0 : index
    %815 = vector.load %arg6[%c1_138, %c0_139, %c0_140] : memref<2x2x32xf32, #tpu.memory_space<vmem>>, vector<1x2x32xf32>
    %816 = vector.shape_cast %815 : vector<1x2x32xf32> to vector<2x32xf32>
    %817 = vector.shape_cast %801 : vector<2x32xf32> to vector<1x2x32xf32>
    tpu.vector_store %arg6[%c1_138, %c0_139, %c0_140], %817 {strides = array<i32>} : memref<2x2x32xf32, #tpu.memory_space<vmem>>, vector<1x2x32xf32>,
    return
  }
}

</mosaic_0001>

<bundles_post_ra>
// kernel: tpu_custom_call.1
= control target key start
LH: loop header
LB: loop body
LE: loop exit
PB: predicated region body
PF: predicated region fallthrough
CT: control target
= control target key end

     0   :  { %12 = vsyncpa [#allocation3], 0  ;;  %s3873_s0 = inlined_call_operand.hbm [shape: f32[16,16], index: 0, kind: input, shape index: {}]   ;;  %s3874_s1 = inlined_call_operand.hbm [shape: f32[2,2,32], index: 1, kind: input, shape index: {}]   ;;  %s3875_s2 = inlined_call_operand.hbm [shape: f32[16,192], index: 2, kind: input, shape index: {}]   ;;  %s3876_s3 = inlined_call_operand.hbm [shape: f32[64,96], index: 3, kind: input, shape index: {}]   ;;  %s3877_s4 = inlined_call_operand.hbm [shape: f32[7,192], index: 4, kind: input, shape index: {}]   ;;  %s3878_s5 = inlined_call_operand.vmem [shape: f32[8,2,3], index: 5, kind: output, shape index: {0}]   ;;  %s3879_s6 = inlined_call_operand.hbm [shape: f32[2,2,32], index: 6, kind: output, shape index: {1}]  }
   0x1   :  { %13 = vsyncpa [#allocation6], 0 }
   0x2   :  { %14 = vsyncpa [#allocation9], 0 }
   0x3   :  { %15 = vsyncpa [#allocation4], 0  ;;  %s3141_s21 = smov [#allocation5]   ;;  %s3001_s25 = scalar_lea.hbm %s3874_s1, 64 }
   0x4   :  { %s33_s22 = sshll.u32 %s3141_s21, 4  ;;  %p3002_p0 = scmp.ne.s32.totalorder %s3874_s1, %s3001_s25  ;;  %s34_s22 = int_to_ptr.vmem [resolvable:$true] %s33_s22 }
   0x5   :  { %p3005_p1 = scmp.lt.u32.totalorder %s3001_s25, %s3874_s1 }
   0x7   :  { %p3007_p2 = pnand %p3005_p1, %p3002_p0 }
   0x9   :  { %3010 = shalt.err (!%p3007_p2)
}
   0xa   :  { %s3011_s30 = scalar_lea.vmem %s34_s22, 64  ;;  %p3016_p4 = scmp.lt.s32.totalorder %s34_s22, %s34_s22 }
   0xb   :  { %p3012_p3 = scmp.ne.s32.totalorder %s34_s22, %s3011_s30  ;;  %p3017_p5 = scmp.lt.s32.totalorder %s3011_s30, %s3011_s30 }
   0xd   :  { %p3018_p6 = por %p3017_p5, %p3016_p4 }
   0xf   :  { %p3019_p7 = pnand %p3018_p6, %p3012_p3 }
  0x11   :  { %3022 = shalt.err (!%p3019_p7)
}
  0x12   :  { %s3142_s7 = smov 32   ;;  %s3143_s8 = smov 2  }
  0x13   :  { %39 = dma.hbm_to_vmem [thread:$0]  %s3874_s1, 64, %s34_s22, [#allocation6], %s3142_s7, %s3142_s7, %s3143_s8  }
  0x14   :  { %s3144_s11 = smov [#allocation8]   ;;  %s3145_s13 = smov [#allocation2]  }
  0x15   :  { %s57_s12 = sshll.u32 %s3144_s11, 4  ;;  %s21_s14 = sshll.u32 %s3145_s13, 4  ;;  %s58_s12 = int_to_ptr.vmem [resolvable:$true] %s57_s12  ;;  %s22_s14 = int_to_ptr.vmem [resolvable:$true] %s21_s14 }
  0x16   :  { %s3023_s17 = scalar_lea.hbm %s3876_s3, 1024 }
  0x17   :  { %p3024_p8 = scmp.ne.s32.totalorder %s3876_s3, %s3023_s17  ;;  %p3027_p9 = scmp.lt.u32.totalorder %s3023_s17, %s3876_s3 }
  0x19   :  { %p3029_p10 = pnand %p3027_p9, %p3024_p8 }
  0x1b   :  { %3032 = shalt.err (!%p3029_p10)
}
  0x1c   :  { %s3033_s1 = scalar_lea.vmem %s58_s12, 1024  ;;  %p3038_p12 = scmp.lt.s32.totalorder %s58_s12, %s58_s12 }
  0x1d   :  { %p3034_p11 = scmp.ne.s32.totalorder %s58_s12, %s3033_s1  ;;  %p3039_p13 = scmp.lt.s32.totalorder %s3033_s1, %s3033_s1 }
  0x1f   :  { %p3040_p0 = por %p3039_p13, %p3038_p12 }
  0x21   :  { %p3041_p1 = pnand %p3040_p0, %p3034_p11 }
  0x23   :  { %3044 = shalt.err (!%p3041_p1)
}
  0x24   :  { %s3146_s22 = smov 128   ;;  %s3147_s23 = smov 8  }
  0x25   :  { %63 = dma.hbm_to_vmem [thread:$0]  %s3876_s3, 1024, %s58_s12, [#allocation9], %s3146_s22, %s3146_s22, %s3147_s23  }
  0x26   :  { %s3045_s28 = scalar_lea.hbm %s3873_s0, 256 }
  0x27   :  { %p3046_p2 = scmp.ne.s32.totalorder %s3873_s0, %s3045_s28  ;;  %p3049_p3 = scmp.lt.u32.totalorder %s3045_s28, %s3873_s0 }
  0x29   :  { %p3051_p4 = pnand %p3049_p3, %p3046_p2 }
  0x2b   :  { %3054 = shalt.err (!%p3051_p4)
}
  0x2c   :  { %s3055_s11 = scalar_lea.vmem %s22_s14, 256  ;;  %p3060_p6 = scmp.lt.s32.totalorder %s22_s14, %s22_s14 }
  0x2d   :  { %p3056_p5 = scmp.ne.s32.totalorder %s22_s14, %s3055_s11  ;;  %p3061_p7 = scmp.lt.s32.totalorder %s3055_s11, %s3055_s11 }
  0x2f   :  { %p3062_p8 = por %p3061_p7, %p3060_p6 }
  0x31   :  { %p3063_p9 = pnand %p3062_p8, %p3056_p5 }
  0x33   :  { %3066 = shalt.err (!%p3063_p9)
}
  0x34   :  { %27 = dma.hbm_to_vmem [thread:$0]  %s3873_s0, 256, %s22_s14, [#allocation3], %s3146_s22, %s3146_s22, %s3147_s23  }
  0x35   :  { %s3148_s13 = smov [#allocation7]   ;;  %s3067_s18 = scalar_lea.hbm %s3875_s2, 512 }
  0x36   :  { %s45_s15 = sshll.u32 %s3148_s13, 4  ;;  %p3068_p10 = scmp.ne.s32.totalorder %s3875_s2, %s3067_s18  ;;  %s46_s15 = int_to_ptr.vmem [resolvable:$true] %s45_s15 }
  0x37   :  { %p3071_p11 = scmp.lt.u32.totalorder %s3067_s18, %s3875_s2 }
  0x39   :  { %p3073_p12 = pnand %p3071_p11, %p3068_p10 }
  0x3b   :  { %3076 = shalt.err (!%p3073_p12)
}
  0x3c   :  { %s3077_s24 = scalar_lea.vmem %s46_s15, 512  ;;  %p3082_p0 = scmp.lt.s32.totalorder %s46_s15, %s46_s15 }
  0x3d   :  { %p3078_p13 = scmp.ne.s32.totalorder %s46_s15, %s3077_s24  ;;  %p3083_p1 = scmp.lt.s32.totalorder %s3077_s24, %s3077_s24 }
  0x3f   :  { %p3084_p2 = por %p3083_p1, %p3082_p0 }
  0x41   :  { %p3085_p3 = pnand %p3084_p2, %p3078_p13 }
  0x43   :  { %3088 = shalt.err (!%p3085_p3)
}
  0x44   :  { %s3149_s0 = smov 256   ;;  %s3150_s14 = smov 16  }
  0x45   :  { %51 = dma.hbm_to_vmem [thread:$0]  %s3875_s2, 512, %s46_s15, [#allocation6], %s3149_s0, %s3149_s0, %s3150_s14  }
  0x46   :  { %s3151_s25 = smov [#allocation10]   ;;  %s3089_s29 = scalar_lea.hbm %s3877_s4, 256 }
  0x47   :  { %s70_s26 = sshll.u32 %s3151_s25, 4  ;;  %p3090_p4 = scmp.ne.s32.totalorder %s3877_s4, %s3089_s29  ;;  %s71_s26 = int_to_ptr.vmem [resolvable:$true] %s70_s26 }
  0x48   :  { %p3093_p5 = scmp.lt.u32.totalorder %s3089_s29, %s3877_s4 }
  0x4a   :  { %p3095_p6 = pnand %p3093_p5, %p3090_p4 }
  0x4c   :  { %3098 = shalt.err (!%p3095_p6)
}
  0x4d   :  { %s3099_s3 = scalar_lea.vmem %s71_s26, 256  ;;  %p3104_p8 = scmp.lt.s32.totalorder %s71_s26, %s71_s26 }
  0x4e   :  { %p3100_p7 = scmp.ne.s32.totalorder %s71_s26, %s3099_s3  ;;  %p3105_p9 = scmp.lt.s32.totalorder %s3099_s3, %s3099_s3 }
  0x50   :  { %p3106_p10 = por %p3105_p9, %p3104_p8 }
  0x52   :  { %p3107_p11 = pnand %p3106_p10, %p3100_p7 }
  0x54   :  { %3110 = shalt.err (!%p3107_p11)
}
  0x55   :  { %73 = dma.hbm_to_vmem [thread:$0]  %s3877_s4, 256, %s71_s26, [#allocation9]  }
  0x56   :  { %3133 = dma.done.wait [#allocation3], 256  }
  0x57   :  { %3134 = vsyncadd [#allocation3], 4294967040 }
  0x58   :  { %3135 = dma.done.wait [#allocation6], 576  }
  0x59   :  { %3136 = vsyncadd [#allocation6], 4294966720 }
  0x5a   :  { %3137 = dma.done.wait [#allocation9], 1280  }
  0x5b   :  { %3138 = vsyncadd [#allocation9], 4294966016  ;;  %v3152_v0 = vmov 0.0|0.0   ;;  %v3153_v1 = vmov 0.0   ;;  %vm3154_vm0 = vmmov 0   ;;  %v91_v2 = vld [vmem:[#allocation8] sm:$0xff]  ;;  %v105_v16 = vlaneseq }
  0x5c   :  { %2724 = vmatprep.subr.bf16.mxu1 %v3152_v0  ;;  %184 = vmatprep.mubr.f32.mxu0 %v3153_v1  ;;  %v92_v3 = vld [vmem:[#allocation8 + $0x8] sm:$0xff]  ;;  %v104_v6 = vld [vmem:[#allocation7 + $0x18] sm:$0xff]  ;;  %v101_v7 = vld [vmem:[#allocation7] sm:$0xff]  ;;  %vm113_vm1 = vcmask 130048   ;;  %vm204_vm2 = vcmask 261120   ;;  %s3155_s4 = smov 64  }
  0x5d   :  { %2552 = vmatprep.mubr.msk.f32.mxu1 %vm3154_vm0, %v3153_v1  ;;  %v102_v4 = vld [vmem:[#allocation7 + $0x8] sm:$0xff]  ;;  %v3261_v5 = vpack.c.bf16 %v92_v3, %v91_v2  ;;  %v103_v8 = vld [vmem:[#allocation7 + $0x10] sm:$0xff]  ;;  %v94_v12 = vld [vmem:[#allocation8 + $0x18] sm:$0xff]  ;;  %v3279_v17 = vshrl.u32 %v105_v16, 7  ;;  %s3156_s13 = smov 96   ;;  %vm405_vm3 = vcmask 254976  }
  0x5e   :  { %v2720_v9 = vpack.c.bf16 %v104_v6, %v102_v4  ;;  %v2722_v10 = vpack.c.bf16 %v103_v8, %v101_v7  ;;  %v93_v11 = vld [vmem:[#allocation8 + $0x10] sm:$0xff]  ;;  %v197_v15 = vld [vmem:[#allocation5] sm:$0x3]  ;;  %v3282_v19 = vld [vmem:[#allocation10] sm:$0x7f]  ;;  %vm425_vm4 = vcmask 7168  }
  0x5f   :  { %2726 = vmatpush3.bf16.msra.mxu1 %v3261_v5  ;;  %v3264_v13 = vpack.c.bf16 %v94_v12, %v93_v11  ;;  %v99_v14 = vld [vmem:[#allocation2] sm:$0xff]  ;;  %v202_v18 = vsub.s32 5, %v3279_v17  ;;  %v107_v26 = vsub.s32 4, %v3279_v17  ;;  %v394_v39 = vsub.s32 0, %v3279_v17  ;;  %s3158_s23 = smov [#allocation11]  }
  0x60   :  { %2721 = vmatprep.subr.bf16.mxu0 %v2720_v9  ;;  %2727 = vmatprep.subr.bf16.mxu1 %v3152_v0  ;;  %v411_v46 = vsub.s32 1, %v3279_v17  ;;  %v429_v9 = vsub.s32 6, %v3279_v17  ;;  %vm432_vm5 = vcmask 9216   ;;  %vm692_vm6 = vcmask 257026   ;;  %s2399_s25 = sshll.u32 %s3158_s23, 4  ;;  %s2400_s25 = int_to_ptr.vmem [resolvable:$true] %s2399_s25 }
  0x61   :  { %2723 = vmatpush1.bf16.msra.mxu0 %v2722_v10  ;;  %v3287_v20 = vrot.slane %v3282_v19, %v202_v18  ;;  %v3297_v27 = vrot.slane %v3282_v19, %v107_v26  ;;  %v395_v40 = vrot.slane %v3282_v19, %v394_v39  ;;  %vm706_vm7 = vcmask 11266   ;;  %s3111_s28 = scalar_lea.vmem %s2400_s25, 64  ;;  %p3116_p13 = scmp.lt.s32.totalorder %s2400_s25, %s2400_s25 }
  0x62   :  { %2730 = vmatprep.subr.bf16.mxu0 %v3152_v0  ;;  %v412_v50 = vrot.slane %v3282_v19, %v411_v46  ;;  %v3342_v10 = vrot.slane %v3282_v19, %v429_v9  ;;  %vm963_vm8 = vcmask 259076   ;;  %vm977_vm9 = vcmask 13316   ;;  %p3112_p12 = scmp.ne.s32.totalorder %s2400_s25, %s3111_s28  ;;  %p3117_p0 = scmp.lt.s32.totalorder %s3111_s28, %s3111_s28 }
  0x63   :  { %2729 = vmatpush3.bf16.msra.mxu1 %v3264_v13  ;;  %vm1234_vm10 = vcmask 261126   ;;  %vm1248_vm11 = vcmask 15366   ;;  %vm505_vm12 = vcmask 15360   ;;  %vm507_vm13 = vcmask 17408  }
  0x64   :  { %2415 = vmatmul.mubr.msk.f32.vlgmr.msra.gmra.mrb[0].mxu0 %vm113_vm1, %v99_v14  ;;  %2736 = vmatprep.subr.bf16.mxu1 %v3152_v0  ;;  %vm1047_vm14 = vcmask 21508   ;;  %vm1318_vm15 = vcmask 23558   ;;  %p3118_p1 = por %p3117_p0, %p3116_p13 }
  0x65   :  { %190 = vmatprep.mubr.f32.mxu0 %v3153_v1 }
  0x66   :  { %2553 = vmatmul.mubr.msk.f32.vlgmr.msra.gmra.mrb[0].mxu1 %vm204_vm2, %v197_v15  ;;  %p3119_p2 = pnand %p3118_p1, %p3112_p12 }
  0x67   :  { %2738 = vmatpush3.bf16.msra.mxu1 %v3261_v5  ;;  %2574 = vmatprep.mubr.msk.f32.mxu1 %vm3154_vm0, %v3153_v1 }
  0x68   :  { %2739 = vmatprep.subr.bf16.mxu1 %v3152_v0 }
  0x6b   :  { %2741 = vmatpush3.bf16.msra.mxu1 %v3264_v13 }
  0x6c   :  { %2748 = vmatprep.subr.bf16.mxu1 %v3152_v0 }
 0x137   :  { %v186_v21 = vpop.f32.mrb[0].mxu0 }
 0x138   :  { %v3289_v22 = vpop.f32.mrb[1].mxu0  ;;  %v3300_v28 = vadd.f32 %v186_v21, %v3297_v27 }
 0x139   :  { %v274_v23 = vpop.f32.mrb[0].mxu1 }
 0x13a   :  { %v275_v24 = vadd.f32 %v274_v23, %v3287_v20  ;;  %v2554_v25 = vpop.f32.mrb[1].mxu1  ;;  %v95_v23 = vld [vmem:[#allocation8 + $0x20] sm:$0xff] }
 0x13b   :  { %v100_v25 = vld [vmem:[#allocation2 + $0x8] sm:$0xff] }
 0x13c   :  { %371 = vrot.lane.b32.xlu0 %v275_v24, %s3155_s4  ;;  %v363_v29 = vadd.f32 %v275_v24, %v3300_v28  ;;  %v96_v24 = vld [vmem:[#allocation8 + $0x28] sm:$0xff]  ;;  %2416 = vmatmul.mubr.msk.f32.gmra.mrb[2].mxu0 %vm113_vm1, %v100_v25 }
 0x13d   :  { %2563 = vmatprep.mubr.msk.f32.mxu0 %vm3154_vm0, %v3153_v1 }
 0x13e   :  { %v2419_v30 = vmul.f32 -1.442695, %v363_v29  ;;  %v3348_v29 = vpack.c.bf16 %v96_v24, %v95_v23 }
 0x140   :  { %2840 = vpow2.f32 %v2419_v30  ;;  %v97_v30 = vld [vmem:[#allocation8 + $0x30] sm:$0xff]  ;;  %2732 = vmatpush3.bf16.msra.mxu0 %v3348_v29 }
 0x141   :  { %2733 = vmatprep.subr.bf16.mxu0 %v3152_v0 }
 0x14a   :  { %v2841_v31 = vpop.eup %2840 }
 0x14b   :  { %v367_v32 = vadd.f32 1.0, %v2841_v31  ;;  %v98_v31 = vld [vmem:[#allocation8 + $0x38] sm:$0xff] }
 0x14d   :  { %2842 = vrcp.f32 %v367_v32  ;;  %v3354_v32 = vpack.c.bf16 %v98_v31, %v97_v30 }
 0x14f   :  { %2735 = vmatpush3.bf16.msra.mxu0 %v3354_v32 }
 0x150   :  { %2742 = vmatprep.subr.bf16.mxu0 %v3152_v0 }
 0x157   :  { %v2843_v33 = vpop.eup %2842 }
 0x158   :  { %v381_v42 = vsub.f32 1.0, %v2843_v33 }
 0x1ae   :  { %v372_v34 = vpop.permute.xlu0 %371 }
 0x1af   :  { %v374_v35 = vmul.f32 %v2843_v33, %v372_v34  ;;  %v3359_v34 = vld [vmem:[#allocation5 + $0x2] sm:$0x3] }
 0x1b0   :  { %2564 = vmatmul.mubr.msk.f32.vlgmr.msra.gmra.mrb[4].mxu0 %vm204_vm2, %v3359_v34 }
 0x1b1   :  { %376 = vrot.lane.b32.xlu0 %v374_v35, %s3155_s4  ;;  %2744 = vmatpush3.bf16.msra.mxu0 %v3348_v29 }
 0x1b2   :  { %2585 = vmatprep.mubr.msk.f32.mxu0 %vm3154_vm0, %v3153_v1  ;;  %2745 = vmatprep.subr.bf16.mxu0 %v3152_v0 }
 0x1b5   :  { %2747 = vmatpush3.bf16.msra.mxu0 %v3354_v32 }
 0x1b6   :  { %2754 = vmatprep.subr.bf16.mxu0 %v3152_v0 }
 0x223   :  { %v377_v36 = vpop.permute.xlu0 %376 }
 0x224   :  { %v379_v37 = vadd.f32 %v377_v36, %v3300_v28 }
 0x226   :  { %2844 = vtanh.f32 %v379_v37 }
 0x230   :  { %v2845_v38 = vpop.eup %2844 }
 0x231   :  { %383 = vrot.lane.b32.xlu1 %v2845_v38, %s3156_s13 }
 0x235   :  { %387 = vrot.lane.b32.xlu1 %v197_v15, %s3142_s7 }
 0x239   :  { %397 = vrot.lane.b32.xlu1 %v395_v40, %s3142_s7  ;;  %v3157_v40 = vmov 0  }
 0x23a   :  { %2838 = vset.pattern.permute.xlu0 %v3157_v40  ;;  %2839 = vset.pattern.permute.xlu1 %v3157_v40 }
 0x2a3   :  { %v384_v41 = vpop.permute.xlu1 %383 }
 0x2a4   :  { %v386_v44 = vmul.f32 %v384_v41, %v381_v42 }
 0x2a7   :  { %v388_v43 = vpop.permute.xlu1 %387 }
 0x2a8   :  { %v390_v45 = vmul.f32 %v2843_v33, %v388_v43 }
 0x2aa   :  { %v3311_v47 = vadd.f32 %v390_v45, %v386_v44 }
 0x2ab   :  { %v3313_v48 = vpop.permute.xlu1 %397 }
 0x2ac   :  { %510 = vrot.lane.b32.xlu0 %v3311_v47, %s3156_s13  ;;  %v400_v49 = vmul.f32 %v3313_v48, %v3311_v47  ;;  %v683_v42 = vrot.slane %v3311_v47, 6 }
 0x2ae   :  { %402 = vrot.lane.b32.xlu1 %v400_v49, %s3156_s13 }
 0x2b0   :  { %414 = vrot.lane.b32.xlu0 %v412_v50, %s3142_s7  ;;  %v3376_v50 = vld [vmem:[#allocation10 + $0x8] sm:$0x7f] }
 0x2b1   :  { %v3426_v40 = vrot.slane %v3376_v50, %v107_v26 }
 0x31e   :  { %v511_v51 = vpop.permute.xlu0 %510 }
 0x31f   :  { %2575 = vmatmul.mubr.msk.f32.vlgmr.msra.gmra.mrb[2].mxu1 %vm204_vm2, %v511_v51  ;;  %v281_v51 = vrot.slane %v3376_v50, %v202_v18  ;;  %v451_v18 = vsub.s32 2, %v3279_v17 }
 0x320   :  { %v403_v52 = vpop.permute.xlu1 %402  ;;  %2750 = vmatpush3.bf16.msra.mxu1 %v3261_v5  ;;  %2596 = vmatprep.mubr.msk.f32.mxu1 %vm3154_vm0, %v3153_v1 }
 0x321   :  { %v406_v53 = vsel %vm405_vm3, %v403_v52, 0.0  ;;  %2751 = vmatprep.subr.bf16.mxu1 %v3152_v0 }
 0x322   :  { %v3328_v54 = vpop.permute.xlu0 %414  ;;  %407 = vadd.xlane.f32.xlu1 %v406_v53 }
 0x323   :  { %v417_v55 = vmul.f32 %v3328_v54, %v3311_v47  ;;  %v3384_v47 = vpop.f32.mrb[2].mxu0 }
 0x324   :  { %2753 = vmatpush3.bf16.msra.mxu1 %v3264_v13  ;;  %v3386_v52 = vpop.f32.mrb[3].mxu0 }
 0x325   :  { %419 = vrot.lane.b32.xlu0 %v417_v55, %s3156_s13  ;;  %2760 = vmatprep.subr.bf16.mxu1 %v3152_v0  ;;  %v359_v55 = vpop.f32.mrb[4].mxu0 }
 0x397   :  { %v420_v56 = vpop.permute.xlu0 %419 }
 0x398   :  { %v422_v57 = vsel %vm405_vm3, %v420_v56, 0.0  ;;  %v2565_v56 = vpop.f32.mrb[5].mxu0 }
 0x399   :  { %423 = vadd.xlane.f32.xlu0 %v422_v57 }
 0x3af   :  { %v408_v11 = vpop.xlane.xlu1 %407 }
 0x3f2   :  { %v580_v58 = vpop.f32.mrb[2].mxu1 }
 0x3f3   :  { %v581_v59 = vadd.f32 %v580_v58, %v3287_v20  ;;  %v2576_v60 = vpop.f32.mrb[3].mxu1 }
 0x3f5   :  { %v658_v61 = vrot.slane %v581_v59, 6 }
 0x3f7   :  { %667 = vrot.lane.b32.xlu0 %v658_v61, %s3155_s4  ;;  %v660_v62 = vadd.f32 %v658_v61, %v3300_v28  ;;  %v3400_v61 = vrot.slane %v3282_v19, %v451_v18 }
 0x3f9   :  { %v2424_v63 = vmul.f32 -1.442695, %v660_v62 }
 0x3fb   :  { %2846 = vpow2.f32 %v2424_v63 }
 0x405   :  { %v2847_v2 = vpop.eup %2846 }
 0x406   :  { %v664_v3 = vadd.f32 1.0, %v2847_v2 }
 0x408   :  { %2848 = vrcp.f32 %v664_v3 }
 0x412   :  { %v2849_v6 = vpop.eup %2848 }
 0x413   :  { %v677_v41 = vsub.f32 1.0, %v2849_v6  ;;  %v685_v44 = vmul.f32 %v2849_v6, %v683_v42 }
 0x426   :  { %v424_v4 = vpop.xlane.xlu0 %423 }
 0x427   :  { %v426_v12 = vsel %vm425_vm4, %v408_v11, %v424_v4 }
 0x428   :  { %v431_v14 = vadd.f32 %v3342_v10, %v426_v12 }
 0x42a   :  { %v433_v15 = vsel %vm432_vm5, %v431_v14, -inf }
 0x469   :  { %v668_v7 = vpop.permute.xlu0 %667 }
 0x46a   :  { %v670_v8 = vmul.f32 %v2849_v6, %v668_v7 }
 0x46c   :  { %672 = vrot.lane.b32.xlu1 %v670_v8, %s3155_s4 }
 0x490   :  { %434 = vmax.xlane.f32.xlu1 %v433_v15 }
 0x4de   :  { %v673_v16 = vpop.permute.xlu1 %672 }
 0x4df   :  { %v675_v21 = vadd.f32 %v673_v16, %v3300_v28 }
 0x4e1   :  { %2850 = vtanh.f32 %v675_v21 }
 0x4eb   :  { %v2851_v33 = vpop.eup %2850 }
 0x4ec   :  { %679 = vrot.lane.b32.xlu0 %v2851_v33, %s3156_s13 }
 0x51d   :  { %v435_v35 = vpop.xlane.xlu1 %434 }
 0x51e   :  { %v436_v36 = vsub.f32 %v431_v14, %v435_v35 }
 0x520   :  { %v437_v37 = vmul.f32 1.442695, %v436_v36 }
 0x522   :  { %2852 = vpow2.f32 %v437_v37 }
 0x52c   :  { %v2853_v38 = vpop.eup %2852 }
 0x52d   :  { %v439_v39 = vsel %vm432_vm5, %v2853_v38, 0.0 }
 0x52e   :  { %440 = vadd.xlane.f32.xlu0 %v439_v39 }
 0x55e   :  { %v680_v43 = vpop.permute.xlu0 %679 }
 0x55f   :  { %v682_v45 = vmul.f32 %v680_v43, %v677_v41  ;;  %v3430_v41 = vadd.f32 %v3289_v22, %v3426_v40 }
 0x561   :  { %v3372_v46 = vadd.f32 %v685_v44, %v682_v45 }
 0x563   :  { %v779_v49 = vrot.slane %v3372_v46, 2  ;;  %v687_v6 = vmul.f32 %v3372_v46, %v3313_v48  ;;  %v696_v19 = vmul.f32 %v3372_v46, %v3328_v54 }
 0x565   :  { %780 = vrot.lane.b32.xlu1 %v779_v49, %s3156_s13 }
 0x569   :  { %284 = vrot.lane.b32.xlu1 %v3287_v20, %s3142_s7 }
 0x56d   :  { %286 = vrot.lane.b32.xlu1 %v281_v51, %s3142_s7 }
 0x5bb   :  { %v441_v53 = vpop.xlane.xlu0 %440 }
 0x5bc   :  { %2854 = vrcp.f32 %v441_v53 }
 0x5c6   :  { %v2855_v57 = vpop.eup %2854 }
 0x5c7   :  { %v3388_v58 = vmul.f32 %v2855_v57, %v2853_v38 }
 0x5c9   :  { %446 = vperm.xlu0 %2838, %v3388_v58  }
 0x5d7   :  { %v781_v59 = vpop.permute.xlu1 %780 }
 0x5d8   :  { %2597 = vmatmul.mubr.msk.f32.vlgmr.msra.gmra.mrb[4].mxu1 %vm204_vm2, %v781_v59 }
 0x5d9   :  { %2762 = vmatpush3.bf16.msra.mxu1 %v3261_v5  ;;  %2618 = vmatprep.mubr.msk.f32.mxu1 %vm3154_vm0, %v3153_v1 }
 0x5da   :  { %2763 = vmatprep.subr.bf16.mxu1 %v3152_v0 }
 0x5db   :  { %v285_v60 = vpop.permute.xlu1 %284 }
 0x5dd   :  { %2765 = vmatpush3.bf16.msra.mxu1 %v3264_v13 }
 0x5de   :  { %2772 = vmatprep.subr.bf16.mxu1 %v3152_v0 }
 0x5df   :  { %v287_v62 = vpop.permute.xlu1 %286 }
 0x5e0   :  { %v3404_v3 = vsel %vm204_vm2, %v285_v60, %v287_v62 }
 0x5e1   :  { %v360_v4 = vadd.f32 %v359_v55, %v3404_v3 }
 0x648   :  { %v447_v63 = vpop.permute.xlu0 %446 }
 0x649   :  { %v453_v2 = vmul.f32 %v3400_v61, %v447_v63 }
 0x64b   :  { %455 = vrot.lane.b32.xlu1 %v453_v2, %s3156_s13 }
 0x64f   :  { %461 = vrot.lane.b32.xlu1 %v360_v4, %s3156_s13 }
 0x653   :  { %478 = vrot.lane.b32.xlu1 %v360_v4, %s3142_s7 }
 0x657   :  { %689 = vrot.lane.b32.xlu1 %v687_v6, %s3156_s13 }
 0x65b   :  { %698 = vrot.lane.b32.xlu1 %v696_v19, %s3156_s13 }
 0x6ab   :  { %v850_v7 = vpop.f32.mrb[4].mxu1 }
 0x6ac   :  { %v2598_v8 = vpop.f32.mrb[5].mxu1  ;;  %v851_v30 = vadd.f32 %v850_v7, %v3287_v20 }
 0x6ae   :  { %v929_v35 = vrot.slane %v851_v30, 4 }
 0x6b0   :  { %v931_v38 = vadd.f32 %v929_v35, %v3300_v28 }
 0x6b2   :  { %v2430_v39 = vmul.f32 -1.442695, %v931_v38 }
 0x6bd   :  { %v456_v9 = vpop.permute.xlu1 %455 }
 0x6be   :  { %v458_v11 = vadd.f32 %v456_v9, %v3300_v28  ;;  %v459_v43 = vadd.f32 %v456_v9, %v3430_v41 }
 0x6c1   :  { %v462_v12 = vpop.permute.xlu1 %461 }
 0x6c2   :  { %v464_v14 = vadd.f32 %v462_v12, %v458_v11  ;;  %v471_v18 = vadd.f32 %v462_v12, %v459_v43 }
 0x6c4   :  { %v2420_v15 = vmul.f32 -1.442695, %v464_v14  ;;  %v2421_v60 = vmul.f32 -1.442695, %v471_v18 }
 0x6c5   :  { %v479_v16 = vpop.permute.xlu1 %478 }
 0x6c6   :  { %2856 = vpow2.f32 %v2420_v15 }
 0x6c9   :  { %v690_v21 = vpop.permute.xlu1 %689 }
 0x6ca   :  { %v693_v23 = vsel %vm692_vm6, %v690_v21, 0.0 }
 0x6cb   :  { %694 = vadd.xlane.f32.xlu0 %v693_v23 }
 0x6cd   :  { %v699_v36 = vpop.permute.xlu1 %698 }
 0x6ce   :  { %v701_v37 = vsel %vm692_vm6, %v699_v36, 0.0 }
 0x6d0   :  { %v2857_v24 = vpop.eup %2856 }
 0x6d1   :  { %v468_v25 = vadd.f32 1.0, %v2857_v24  ;;  %v954_v24 = vrot.slane %v3372_v46, 6 }
 0x6d3   :  { %2858 = vrcp.f32 %v468_v25 }
 0x6d4   :  { %2860 = vpow2.f32 %v2430_v39 }
 0x6dd   :  { %v2859_v31 = vpop.eup %2858 }
 0x6de   :  { %v481_v33 = vmul.f32 %v2859_v31, %v479_v16  ;;  %v2861_v42 = vpop.eup %2860 }
 0x6df   :  { %v935_v45 = vadd.f32 1.0, %v2861_v42 }
 0x6e0   :  { %483 = vrot.lane.b32.xlu1 %v481_v33, %s3155_s4 }
 0x6e1   :  { %938 = vrot.lane.b32.xlu0 %v929_v35, %s3155_s4 }
 0x704   :  { %702 = vadd.xlane.f32.xlu1 %v701_v37 }
 0x752   :  { %v484_v44 = vpop.permute.xlu1 %483 }
 0x753   :  { %v486_v49 = vadd.f32 %v484_v44, %v459_v43 }
 0x755   :  { %2862 = vtanh.f32 %v486_v49 }
 0x756   :  { %2864 = vrcp.f32 %v935_v45 }
 0x757   :  { %2866 = vpow2.f32 %v2421_v60 }
 0x758   :  { %v695_v51 = vpop.xlane.xlu0 %694 }
 0x75c   :  { %v939_v55 = vpop.permute.xlu0 %938 }
 0x75f   :  { %v2863_v53 = vpop.eup %2862 }
 0x760   :  { %490 = vrot.lane.b32.xlu1 %v2863_v53, %s3156_s13  ;;  %v2865_v56 = vpop.eup %2864 }
 0x761   :  { %v941_v26 = vmul.f32 %v2865_v56, %v939_v55  ;;  %v2867_v62 = vpop.eup %2866  ;;  %v948_v23 = vsub.f32 1.0, %v2865_v56  ;;  %v956_v30 = vmul.f32 %v2865_v56, %v954_v24 }
 0x762   :  { %v475_v63 = vadd.f32 1.0, %v2867_v62 }
 0x764   :  { %943 = vrot.lane.b32.xlu1 %v941_v26, %s3155_s4  ;;  %2868 = vrcp.f32 %v475_v63 }
 0x76e   :  { %v2869_v2 = vpop.eup %2868 }
 0x76f   :  { %v488_v4 = vsub.f32 1.0, %v2869_v2  ;;  %v494_v19 = vmul.f32 %v2869_v2, %v3359_v34 }
 0x791   :  { %v703_v50 = vpop.xlane.xlu1 %702 }
 0x792   :  { %v704_v22 = vsel %vm425_vm4, %v695_v51, %v703_v50 }
 0x793   :  { %v705_v57 = vadd.f32 %v704_v22, %v3342_v10 }
 0x795   :  { %v707_v59 = vsel %vm706_vm7, %v705_v57, -inf }
 0x796   :  { %708 = vmax.xlane.f32.xlu0 %v707_v59 }
 0x7d2   :  { %v491_v6 = vpop.permute.xlu1 %490 }
 0x7d3   :  { %v493_v7 = vmul.f32 %v491_v6, %v488_v4 }
 0x7d5   :  { %v3439_v8 = vadd.f32 %v494_v19, %v493_v7 }
 0x7d6   :  { %v944_v9 = vpop.permute.xlu1 %943 }
 0x7d7   :  { %v946_v11 = vadd.f32 %v944_v9, %v3300_v28  ;;  %2586 = vmatmul.mubr.msk.f32.vlgmr.msra.gmra.mrb[6].mxu0 %vm204_vm2, %v3439_v8 }
 0x7d8   :  { %2756 = vmatpush3.bf16.msra.mxu0 %v3348_v29  ;;  %2607 = vmatprep.mubr.msk.f32.mxu0 %vm3154_vm0, %v3153_v1 }
 0x7d9   :  { %2870 = vtanh.f32 %v946_v11  ;;  %2757 = vmatprep.subr.bf16.mxu0 %v3152_v0 }
 0x7dc   :  { %2759 = vmatpush3.bf16.msra.mxu0 %v3354_v32 }
 0x7dd   :  { %2766 = vmatprep.subr.bf16.mxu0 %v3152_v0 }
 0x7e3   :  { %v2871_v34 = vpop.eup %2870 }
 0x7e4   :  { %950 = vrot.lane.b32.xlu0 %v2871_v34, %s3156_s13 }
 0x823   :  { %v709_v12 = vpop.xlane.xlu0 %708 }
 0x824   :  { %v710_v14 = vsub.f32 %v705_v57, %v709_v12 }
 0x826   :  { %v711_v15 = vmul.f32 1.442695, %v710_v14 }
 0x828   :  { %2872 = vpow2.f32 %v711_v15 }
 0x832   :  { %v2873_v16 = vpop.eup %2872 }
 0x833   :  { %v713_v21 = vsel %vm706_vm7, %v2873_v16, 0.0 }
 0x834   :  { %714 = vadd.xlane.f32.xlu1 %v713_v21 }
 0x856   :  { %v951_v25 = vpop.permute.xlu0 %950 }
 0x857   :  { %v953_v31 = vmul.f32 %v951_v25, %v948_v23 }
 0x859   :  { %v3453_v33 = vadd.f32 %v956_v30, %v953_v31 }
 0x85b   :  { %v1050_v35 = vrot.slane %v3453_v33, 4  ;;  %v958_v42 = vmul.f32 %v3453_v33, %v3313_v48  ;;  %v967_v53 = vmul.f32 %v3453_v33, %v3328_v54 }
 0x85d   :  { %1051 = vrot.lane.b32.xlu1 %v1050_v35, %s3156_s13 }
 0x8aa   :  { %v653_v36 = vpop.f32.mrb[6].mxu0 }
 0x8ab   :  { %v654_v37 = vadd.f32 %v653_v36, %v3404_v3  ;;  %v2587_v38 = vpop.f32.mrb[7].mxu0 }
 0x8ad   :  { %v731_v39 = vrot.slane %v654_v37, 6 }
 0x8af   :  { %732 = vrot.lane.b32.xlu1 %v731_v39, %s3156_s13 }
 0x8b3   :  { %960 = vrot.lane.b32.xlu1 %v958_v42, %s3156_s13 }
 0x8c1   :  { %v715_v46 = vpop.xlane.xlu1 %714 }
 0x8c2   :  { %2874 = vrcp.f32 %v715_v46 }
 0x8cc   :  { %v2875_v43 = vpop.eup %2874 }
 0x8cd   :  { %v3462_v44 = vmul.f32 %v2875_v43, %v2873_v16 }
 0x8cf   :  { %720 = vperm.xlu0 %2838, %v3462_v44   ;;  %v1052_v45 = vpop.permute.xlu1 %1051 }
 0x8d0   :  { %2619 = vmatmul.mubr.msk.f32.vlgmr.msra.gmra.mrb[6].mxu1 %vm204_vm2, %v1052_v45 }
 0x8d1   :  { %2774 = vmatpush3.bf16.msra.mxu1 %v3261_v5  ;;  %2640 = vmatprep.mubr.msk.f32.mxu1 %vm3154_vm0, %v3153_v1 }
 0x8d2   :  { %2775 = vmatprep.subr.bf16.mxu1 %v3152_v0 }
 0x8d5   :  { %2777 = vmatpush3.bf16.msra.mxu1 %v3264_v13 }
 0x8d6   :  { %2784 = vmatprep.subr.bf16.mxu1 %v3152_v0 }
 0x921   :  { %v733_v55 = vpop.permute.xlu1 %732 }
 0x925   :  { %v961_v56 = vpop.permute.xlu1 %960 }
 0x926   :  { %v964_v26 = vsel %vm963_vm8, %v961_v56, 0.0 }
 0x94e   :  { %v721_v49 = vpop.permute.xlu0 %720 }
 0x94f   :  { %v723_v51 = vmul.f32 %v721_v49, %v3400_v61 }
 0x951   :  { %725 = vrot.lane.b32.xlu0 %v723_v51, %s3156_s13 }
 0x955   :  { %749 = vrot.lane.b32.xlu0 %v731_v39, %s3142_s7 }
 0x959   :  { %969 = vrot.lane.b32.xlu0 %v967_v53, %s3156_s13  ;;  %v765_v53 = vrot.slane %v3439_v8, 6 }
 0x978   :  { %965 = vadd.xlane.f32.xlu0 %v964_v26 }
 0x9a3   :  { %v1121_v50 = vpop.f32.mrb[6].mxu1 }
 0x9a4   :  { %v2620_v22 = vpop.f32.mrb[7].mxu1  ;;  %v1122_v9 = vadd.f32 %v1121_v50, %v3287_v20 }
 0x9a6   :  { %v1200_v11 = vrot.slane %v1122_v9, 2 }
 0x9a8   :  { %v1202_v16 = vadd.f32 %v1200_v11, %v3300_v28 }
 0x9aa   :  { %v2436_v21 = vmul.f32 -1.442695, %v1202_v16 }
 0x9c3   :  { %v726_v57 = vpop.permute.xlu0 %725 }
 0x9c4   :  { %v728_v59 = vadd.f32 %v726_v57, %v3300_v28  ;;  %v729_v34 = vadd.f32 %v726_v57, %v3430_v41 }
 0x9c6   :  { %v735_v18 = vadd.f32 %v733_v55, %v728_v59  ;;  %v742_v42 = vadd.f32 %v733_v55, %v729_v34 }
 0x9c7   :  { %v750_v4 = vpop.permute.xlu0 %749 }
 0x9c8   :  { %v2425_v60 = vmul.f32 -1.442695, %v735_v18  ;;  %v2426_v46 = vmul.f32 -1.442695, %v742_v42 }
 0x9ca   :  { %2876 = vpow2.f32 %v2425_v60 }
 0x9cb   :  { %v970_v19 = vpop.permute.xlu0 %969 }
 0x9cc   :  { %v972_v7 = vsel %vm963_vm8, %v970_v19, 0.0  ;;  %v1225_v19 = vrot.slane %v3453_v33, 6 }
 0x9d4   :  { %v2877_v62 = vpop.eup %2876 }
 0x9d5   :  { %v739_v63 = vadd.f32 1.0, %v2877_v62 }
 0x9d7   :  { %2878 = vrcp.f32 %v739_v63 }
 0x9e1   :  { %v2879_v2 = vpop.eup %2878 }
 0x9e2   :  { %v752_v6 = vmul.f32 %v2879_v2, %v750_v4 }
 0x9e4   :  { %754 = vrot.lane.b32.xlu1 %v752_v6, %s3155_s4 }
 0xa05   :  { %v966_v25 = vpop.xlane.xlu0 %965 }
 0xa08   :  { %973 = vadd.xlane.f32.xlu1 %v972_v7 }
 0xa19   :  { %1209 = vrot.lane.b32.xlu1 %v1200_v11, %s3155_s4 }
 0xa56   :  { %v755_v12 = vpop.permute.xlu1 %754 }
 0xa57   :  { %v757_v14 = vadd.f32 %v755_v12, %v729_v34 }
 0xa59   :  { %2880 = vtanh.f32 %v757_v14 }
 0xa5a   :  { %2882 = vpow2.f32 %v2436_v21 }
 0xa63   :  { %v2881_v15 = vpop.eup %2880 }
 0xa64   :  { %761 = vrot.lane.b32.xlu0 %v2881_v15, %s3156_s13  ;;  %v2883_v23 = vpop.eup %2882 }
 0xa65   :  { %v1206_v24 = vadd.f32 1.0, %v2883_v23 }
 0xa67   :  { %2884 = vrcp.f32 %v1206_v24 }
 0xa68   :  { %2886 = vpow2.f32 %v2426_v46 }
 0xa71   :  { %v2885_v36 = vpop.eup %2884 }
 0xa72   :  { %v2887_v43 = vpop.eup %2886  ;;  %v1219_v6 = vsub.f32 1.0, %v2885_v36  ;;  %v1227_v9 = vmul.f32 %v2885_v36, %v1225_v19 }
 0xa73   :  { %v746_v45 = vadd.f32 1.0, %v2887_v43 }
 0xa75   :  { %2888 = vrcp.f32 %v746_v45 }
 0xa7f   :  { %v2889_v49 = vpop.eup %2888 }
 0xa80   :  { %v759_v51 = vsub.f32 1.0, %v2889_v49  ;;  %v767_v26 = vmul.f32 %v2889_v49, %v765_v53 }
 0xa95   :  { %v974_v30 = vpop.xlane.xlu1 %973 }
 0xa96   :  { %v975_v31 = vsel %vm425_vm4, %v966_v25, %v974_v30 }
 0xa97   :  { %v976_v35 = vadd.f32 %v975_v31, %v3342_v10 }
 0xa99   :  { %v1210_v37 = vpop.permute.xlu1 %1209  ;;  %v978_v38 = vsel %vm977_vm9, %v976_v35, -inf }
 0xa9a   :  { %v1212_v39 = vmul.f32 %v2885_v36, %v1210_v37  ;;  %979 = vmax.xlane.f32.xlu0 %v978_v38 }
 0xa9c   :  { %1214 = vrot.lane.b32.xlu1 %v1212_v39, %s3155_s4 }
 0xad6   :  { %v762_v56 = vpop.permute.xlu0 %761 }
 0xad7   :  { %v764_v50 = vmul.f32 %v762_v56, %v759_v51 }
 0xad9   :  { %v3492_v22 = vadd.f32 %v767_v26, %v764_v50 }
 0xadb   :  { %v855_v57 = vrot.slane %v3492_v22, 2 }
 0xadd   :  { %2608 = vmatmul.mubr.msk.f32.vlgmr.msra.gmra.mrb[8].mxu0 %vm204_vm2, %v855_v57 }
 0xade   :  { %2768 = vmatpush3.bf16.msra.mxu0 %v3348_v29  ;;  %2629 = vmatprep.mubr.msk.f32.mxu0 %vm3154_vm0, %v3153_v1 }
 0xadf   :  { %2769 = vmatprep.subr.bf16.mxu0 %v3152_v0 }
 0xae2   :  { %2771 = vmatpush3.bf16.msra.mxu0 %v3354_v32 }
 0xae3   :  { %2778 = vmatprep.subr.bf16.mxu0 %v3152_v0 }
 0xb0e   :  { %v1215_v55 = vpop.permute.xlu1 %1214 }
 0xb0f   :  { %v1217_v59 = vadd.f32 %v1215_v55, %v3300_v28 }
 0xb11   :  { %2890 = vtanh.f32 %v1217_v59 }
 0xb1b   :  { %v2891_v18 = vpop.eup %2890 }
 0xb1c   :  { %1221 = vrot.lane.b32.xlu0 %v2891_v18, %s3156_s13 }
 0xb27   :  { %v980_v60 = vpop.xlane.xlu0 %979 }
 0xb28   :  { %v981_v62 = vsub.f32 %v976_v35, %v980_v60 }
 0xb2a   :  { %v982_v63 = vmul.f32 1.442695, %v981_v62 }
 0xb2c   :  { %2892 = vpow2.f32 %v982_v63 }
 0xb36   :  { %v2893_v2 = vpop.eup %2892 }
 0xb37   :  { %v984_v4 = vsel %vm977_vm9, %v2893_v2, 0.0 }
 0xb38   :  { %985 = vadd.xlane.f32.xlu1 %v984_v4 }
 0xb8e   :  { %v1222_v7 = vpop.permute.xlu0 %1221 }
 0xb8f   :  { %v1224_v11 = vmul.f32 %v1222_v7, %v1219_v6 }
 0xb91   :  { %v3506_v34 = vadd.f32 %v1227_v9, %v1224_v11 }
 0xb93   :  { %v1321_v12 = vrot.slane %v3506_v34, 6  ;;  %v1229_v25 = vmul.f32 %v3506_v34, %v3313_v48  ;;  %v1238_v36 = vmul.f32 %v3506_v34, %v3328_v54 }
 0xb95   :  { %1322 = vrot.lane.b32.xlu0 %v1321_v12, %s3156_s13 }
 0xbb0   :  { %v924_v14 = vpop.f32.mrb[8].mxu0 }
 0xbb1   :  { %v2609_v15 = vpop.f32.mrb[9].mxu0  ;;  %v925_v23 = vadd.f32 %v924_v14, %v3404_v3 }
 0xbb3   :  { %v1002_v33 = vrot.slane %v925_v23, 4 }
 0xbc5   :  { %v986_v16 = vpop.xlane.xlu1 %985 }
 0xbc6   :  { %2894 = vrcp.f32 %v986_v16 }
 0xbd0   :  { %v2895_v21 = vpop.eup %2894 }
 0xbd1   :  { %v3513_v24 = vmul.f32 %v2895_v21, %v2893_v2 }
 0xbd3   :  { %991 = vperm.xlu1 %2839, %v3513_v24  }
 0xbd7   :  { %1003 = vrot.lane.b32.xlu1 %v1002_v33, %s3156_s13 }
 0xbdb   :  { %1231 = vrot.lane.b32.xlu1 %v1229_v25, %s3156_s13 }
 0xc07   :  { %v1323_v30 = vpop.permute.xlu0 %1322 }
 0xc08   :  { %2641 = vmatmul.mubr.msk.f32.vlgmr.msra.gmra.mrb[8].mxu1 %vm204_vm2, %v1323_v30 }
 0xc09   :  { %2786 = vmatpush3.bf16.msra.mxu1 %v3261_v5  ;;  %2662 = vmatprep.mubr.msk.f32.mxu1 %vm3154_vm0, %v3153_v1 }
 0xc0a   :  { %2787 = vmatprep.subr.bf16.mxu1 %v3152_v0 }
 0xc0d   :  { %2789 = vmatpush3.bf16.msra.mxu1 %v3264_v13 }
 0xc0e   :  { %2796 = vmatprep.subr.bf16.mxu1 %v3152_v0 }
 0xc52   :  { %v992_v31 = vpop.permute.xlu1 %991 }
 0xc53   :  { %v994_v35 = vmul.f32 %v992_v31, %v3400_v61 }
 0xc55   :  { %996 = vrot.lane.b32.xlu0 %v994_v35, %s3156_s13 }
 0xc56   :  { %v1004_v37 = vpop.permute.xlu1 %1003 }
 0xc59   :  { %1020 = vrot.lane.b32.xlu0 %v1002_v33, %s3142_s7  ;;  %v1036_v33 = vrot.slane %v3492_v22, 6 }
 0xc5a   :  { %v1232_v38 = vpop.permute.xlu1 %1231 }
 0xc5b   :  { %v1235_v39 = vsel %vm1234_vm10, %v1232_v38, 0.0 }
 0xc5d   :  { %1240 = vrot.lane.b32.xlu0 %v1238_v36, %s3156_s13 }
 0xc7c   :  { %1236 = vadd.xlane.f32.xlu0 %v1235_v39 }
 0xcc7   :  { %v997_v42 = vpop.permute.xlu0 %996 }
 0xcc8   :  { %v999_v46 = vadd.f32 %v997_v42, %v3300_v28  ;;  %v1000_v18 = vadd.f32 %v997_v42, %v3430_v41 }
 0xcca   :  { %v1006_v43 = vadd.f32 %v1004_v37, %v999_v46  ;;  %v1013_v11 = vadd.f32 %v1004_v37, %v1000_v18  ;;  %v3557_v37 = vadd.f32 %v3384_v47, %v3297_v27 }
 0xccb   :  { %v1021_v50 = vpop.permute.xlu0 %1020 }
 0xccc   :  { %v2431_v45 = vmul.f32 -1.442695, %v1006_v43  ;;  %v2432_v14 = vmul.f32 -1.442695, %v1013_v11 }
 0xcce   :  { %2896 = vpow2.f32 %v2431_v45 }
 0xccf   :  { %v1241_v55 = vpop.permute.xlu0 %1240 }
 0xcd0   :  { %v1243_v59 = vsel %vm1234_vm10, %v1241_v55, 0.0 }
 0xcd8   :  { %v2897_v49 = vpop.eup %2896 }
 0xcd9   :  { %v1010_v51 = vadd.f32 1.0, %v2897_v49 }
 0xcdb   :  { %2898 = vrcp.f32 %v1010_v51  ;;  %v1392_v53 = vpop.f32.mrb[8].mxu1 }
 0xcdc   :  { %v2642_v56 = vpop.f32.mrb[9].mxu1  ;;  %v1393_v9 = vadd.f32 %v1392_v53, %v3287_v20 }
 0xcde   :  { %v1470_v38 = vadd.f32 %v1393_v9, %v3557_v37 }
 0xce0   :  { %v2442_v39 = vmul.f32 -1.442695, %v1470_v38 }
 0xce5   :  { %v2899_v26 = vpop.eup %2898 }
 0xce6   :  { %v1023_v57 = vmul.f32 %v2899_v26, %v1021_v50 }
 0xce8   :  { %1025 = vrot.lane.b32.xlu1 %v1023_v57, %s3155_s4 }
 0xd09   :  { %v1237_v2 = vpop.xlane.xlu0 %1236 }
 0xd0c   :  { %1244 = vadd.xlane.f32.xlu1 %v1243_v59 }
 0xd5a   :  { %v1026_v60 = vpop.permute.xlu1 %1025 }
 0xd5b   :  { %v1028_v62 = vadd.f32 %v1026_v60, %v1000_v18 }
 0xd5d   :  { %2900 = vtanh.f32 %v1028_v62 }
 0xd5e   :  { %2902 = vpow2.f32 %v2432_v14 }
 0xd67   :  { %v2901_v63 = vpop.eup %2900 }
 0xd68   :  { %1032 = vrot.lane.b32.xlu0 %v2901_v63, %s3156_s13  ;;  %v2903_v15 = vpop.eup %2902 }
 0xd69   :  { %v1017_v16 = vadd.f32 1.0, %v2903_v15 }
 0xd6b   :  { %2904 = vrcp.f32 %v1017_v16 }
 0xd6c   :  { %2906 = vpow2.f32 %v2442_v39 }
 0xd75   :  { %v2905_v21 = vpop.eup %2904 }
 0xd76   :  { %v1030_v23 = vsub.f32 1.0, %v2905_v21  ;;  %v1038_v30 = vmul.f32 %v2905_v21, %v1036_v33  ;;  %v2907_v42 = vpop.eup %2906 }
 0xd77   :  { %v1474_v46 = vadd.f32 1.0, %v2907_v42 }
 0xd79   :  { %2908 = vrcp.f32 %v1474_v46 }
 0xd83   :  { %v2909_v45 = vpop.eup %2908 }
 0xd84   :  { %v1488_v63 = vsub.f32 1.0, %v2909_v45 }
 0xd99   :  { %v1245_v4 = vpop.xlane.xlu1 %1244 }
 0xd9a   :  { %v1246_v6 = vsel %vm425_vm4, %v1237_v2, %v1245_v4  ;;  %v1495_v4 = vmul.f32 %v2909_v45, %v1321_v12 }
 0xd9b   :  { %v1247_v19 = vadd.f32 %v1246_v6, %v3342_v10 }
 0xd9d   :  { %v1249_v7 = vsel %vm1248_vm11, %v1247_v19, -inf }
 0xd9e   :  { %1250 = vmax.xlane.f32.xlu1 %v1249_v7 }
 0xdaf   :  { %1478 = vrot.lane.b32.xlu1 %v1393_v9, %s3155_s4 }
 0xdda   :  { %v1033_v25 = vpop.permute.xlu0 %1032 }
 0xddb   :  { %v1035_v31 = vmul.f32 %v1033_v25, %v1030_v23 }
 0xddd   :  { %v3545_v35 = vadd.f32 %v1038_v30, %v1035_v31 }
 0xddf   :  { %v1126_v36 = vrot.slane %v3545_v35, 4 }
 0xde1   :  { %2630 = vmatmul.mubr.msk.f32.vlgmr.msra.gmra.mrb[10].mxu0 %vm204_vm2, %v1126_v36 }
 0xde2   :  { %2780 = vmatpush3.bf16.msra.mxu0 %v3348_v29  ;;  %2651 = vmatprep.mubr.msk.f32.mxu0 %vm3154_vm0, %v3153_v1 }
 0xde3   :  { %2781 = vmatprep.subr.bf16.mxu0 %v3152_v0 }
 0xde6   :  { %2783 = vmatpush3.bf16.msra.mxu0 %v3354_v32 }
 0xde7   :  { %2790 = vmatprep.subr.bf16.mxu0 %v3152_v0 }
 0xe2b   :  { %v1251_v43 = vpop.xlane.xlu1 %1250 }
 0xe2c   :  { %v1252_v53 = vsub.f32 %v1247_v19, %v1251_v43 }
 0xe2e   :  { %v1253_v56 = vmul.f32 1.442695, %v1252_v53 }
 0xe2f   :  { %v1479_v49 = vpop.permute.xlu1 %1478 }
 0xe30   :  { %v1481_v51 = vmul.f32 %v2909_v45, %v1479_v49  ;;  %2910 = vpow2.f32 %v1253_v56 }
 0xe32   :  { %1483 = vrot.lane.b32.xlu0 %v1481_v51, %s3155_s4 }
 0xe3a   :  { %v2911_v26 = vpop.eup %2910 }
 0xe3b   :  { %v1255_v27 = vsel %vm1248_vm11, %v2911_v26, 0.0 }
 0xe51   :  { %1256 = vadd.xlane.f32.xlu0 %v1255_v27 }
 0xea4   :  { %v1484_v47 = vpop.permute.xlu0 %1483 }
 0xea5   :  { %v1486_v50 = vadd.f32 %v1484_v47, %v3557_v37 }
 0xea7   :  { %2912 = vtanh.f32 %v1486_v50 }
 0xeb1   :  { %v2913_v57 = vpop.eup %2912 }
 0xeb2   :  { %1490 = vrot.lane.b32.xlu1 %v2913_v57, %s3156_s13 }
 0xeb4   :  { %v1195_v55 = vpop.f32.mrb[10].mxu0 }
 0xeb5   :  { %v2631_v59 = vpop.f32.mrb[11].mxu0  ;;  %v1196_v9 = vadd.f32 %v1195_v55, %v3404_v3 }
 0xeb7   :  { %v1273_v14 = vrot.slane %v1196_v9, 2 }
 0xede   :  { %v1257_v18 = vpop.xlane.xlu0 %1256 }
 0xedf   :  { %2914 = vrcp.f32 %v1257_v18 }
 0xee9   :  { %v2915_v60 = vpop.eup %2914 }
 0xeea   :  { %v3564_v62 = vmul.f32 %v2915_v60, %v2911_v26 }
 0xeec   :  { %1262 = vperm.xlu1 %2839, %v3564_v62  }
 0xf24   :  { %v1491_v2 = vpop.permute.xlu1 %1490 }
 0xf25   :  { %v1493_v6 = vmul.f32 %v1491_v2, %v1488_v63 }
 0xf27   :  { %v3569_v19 = vadd.f32 %v1495_v4, %v1493_v6 }
 0xf29   :  { %1584 = vrot.lane.b32.xlu1 %v3569_v19, %s3156_s13  ;;  %v1497_v34 = vmul.f32 %v3569_v19, %v3313_v48  ;;  %v1505_v12 = vmul.f32 %v3569_v19, %v3328_v54 }
 0xf6b   :  { %v1263_v7 = vpop.permute.xlu1 %1262 }
 0xf6c   :  { %v1265_v11 = vmul.f32 %v1263_v7, %v3400_v61 }
 0xf6e   :  { %1267 = vrot.lane.b32.xlu1 %v1265_v11, %s3156_s13 }
 0xf72   :  { %1274 = vrot.lane.b32.xlu1 %v1273_v14, %s3156_s13 }
 0xf76   :  { %1291 = vrot.lane.b32.xlu1 %v1273_v14, %s3142_s7 }
 0xf7a   :  { %1499 = vrot.lane.b32.xlu1 %v1497_v34, %s3156_s13 }
 0xf7e   :  { %1507 = vrot.lane.b32.xlu1 %v1505_v12, %s3156_s13 }
 0xf9b   :  { %v1585_v15 = vpop.permute.xlu1 %1584 }
 0xf9c   :  { %2663 = vmatmul.mubr.msk.f32.vlgmr.msra.gmra.mrb[10].mxu1 %vm204_vm2, %v1585_v15 }
 0xf9d   :  { %2798 = vmatpush3.bf16.msra.mxu1 %v3261_v5  ;;  %2684 = vmatprep.mubr.msk.f32.mxu1 %vm3154_vm0, %v3153_v1 }
 0xf9e   :  { %2799 = vmatprep.subr.bf16.mxu1 %v3152_v0 }
 0xfa1   :  { %2801 = vmatpush3.bf16.msra.mxu1 %v3264_v13 }
 0xfa2   :  { %2808 = vmatprep.subr.bf16.mxu1 %v3152_v0 }
 0xfe0   :  { %v1268_v16 = vpop.permute.xlu1 %1267 }
 0xfe1   :  { %v1270_v21 = vadd.f32 %v1268_v16, %v3300_v28  ;;  %v1271_v23 = vadd.f32 %v1268_v16, %v3430_v41  ;;  %v1307_v41 = vrot.slane %v3545_v35, 6 }
 0xfe4   :  { %v1275_v33 = vpop.permute.xlu1 %1274 }
 0xfe5   :  { %v1277_v25 = vadd.f32 %v1275_v33, %v1270_v21  ;;  %v1284_v30 = vadd.f32 %v1275_v33, %v1271_v23 }
 0xfe7   :  { %v2437_v31 = vmul.f32 -1.442695, %v1277_v25  ;;  %v2438_v36 = vmul.f32 -1.442695, %v1284_v30 }
 0xfe8   :  { %v1292_v38 = vpop.permute.xlu1 %1291 }
 0xfe9   :  { %2916 = vpow2.f32 %v2437_v31 }
 0xfea   :  { %2918 = vpow2.f32 %v2438_v36 }
 0xfec   :  { %v1500_v39 = vpop.permute.xlu1 %1499 }
 0xfed   :  { %v1502_v42 = vsel %vm405_vm3, %v1500_v39, 0.0 }
 0xfee   :  { %1503 = vadd.xlane.f32.xlu1 %v1502_v42 }
 0xff0   :  { %v1508_v26 = vpop.permute.xlu1 %1507 }
 0xff1   :  { %v1510_v27 = vsel %vm405_vm3, %v1508_v26, 0.0 }
 0xff3   :  { %v2917_v46 = vpop.eup %2916 }
 0xff4   :  { %v2919_v43 = vpop.eup %2918  ;;  %v1281_v45 = vadd.f32 1.0, %v2917_v46 }
 0xff5   :  { %v1288_v49 = vadd.f32 1.0, %v2919_v43 }
 0xff6   :  { %2920 = vrcp.f32 %v1281_v45 }
 0xff7   :  { %2922 = vrcp.f32 %v1288_v49 }
0x1000   :  { %v2921_v28 = vpop.eup %2920 }
0x1001   :  { %v2923_v51 = vpop.eup %2922  ;;  %v1294_v53 = vmul.f32 %v2921_v28, %v1292_v38 }
0x1002   :  { %v1309_v56 = vmul.f32 %v2923_v51, %v1307_v41  ;;  %v1301_v12 = vsub.f32 1.0, %v2923_v51 }
0x1003   :  { %1296 = vrot.lane.b32.xlu0 %v1294_v53, %s3155_s4 }
0x1022   :  { %1511 = vadd.xlane.f32.xlu0 %v1510_v27  ;;  %v1757_v27 = vrot.slane %v3569_v19, 6 }
0x106f   :  { %v1654_v47 = vpop.f32.mrb[10].mxu1 }
0x1070   :  { %v2664_v50 = vpop.f32.mrb[11].mxu1  ;;  %v1655_v59 = vadd.f32 %v1654_v47, %v3287_v20 }
0x1072   :  { %v1732_v60 = vrot.slane %v1655_v59, 6 }
0x1074   :  { %v1734_v9 = vadd.f32 %v1732_v60, %v3557_v37 }
0x1075   :  { %v1297_v57 = vpop.permute.xlu0 %1296 }
0x1076   :  { %v1299_v55 = vadd.f32 %v1297_v57, %v1271_v23  ;;  %v2448_v11 = vmul.f32 -1.442695, %v1734_v9 }
0x1078   :  { %2924 = vtanh.f32 %v1299_v55 }
0x1079   :  { %2926 = vpow2.f32 %v2448_v11 }
0x107b   :  { %v1504_v63 = vpop.xlane.xlu1 %1503 }
0x1082   :  { %v2925_v18 = vpop.eup %2924 }
0x1083   :  { %1303 = vrot.lane.b32.xlu1 %v2925_v18, %s3156_s13  ;;  %v2927_v14 = vpop.eup %2926 }
0x1084   :  { %v1738_v34 = vadd.f32 1.0, %v2927_v14 }
0x1086   :  { %2928 = vrcp.f32 %v1738_v34 }
0x1087   :  { %1741 = vrot.lane.b32.xlu1 %v1732_v60, %s3155_s4 }
0x1090   :  { %v2929_v23 = vpop.eup %2928 }
0x1091   :  { %v1751_v26 = vsub.f32 1.0, %v2929_v23  ;;  %v1759_v50 = vmul.f32 %v2929_v23, %v1757_v27 }
0x10af   :  { %v1512_v2 = vpop.xlane.xlu0 %1511 }
0x10b0   :  { %v1513_v4 = vsel %vm425_vm4, %v1504_v63, %v1512_v2 }
0x10b1   :  { %v1514_v6 = vadd.f32 %v1513_v4, %v3342_v10 }
0x10b3   :  { %v1515_v7 = vsel %vm432_vm5, %v1514_v6, -inf }
0x10b4   :  { %1516 = vmax.xlane.f32.xlu0 %v1515_v7 }
0x10f5   :  { %v1304_v15 = vpop.permute.xlu1 %1303 }
0x10f6   :  { %v1306_v16 = vmul.f32 %v1304_v15, %v1301_v12 }
0x10f8   :  { %v3604_v21 = vadd.f32 %v1309_v56, %v1306_v16 }
0x10f9   :  { %v1742_v33 = vpop.permute.xlu1 %1741 }
0x10fa   :  { %v1397_v25 = vrot.slane %v3604_v21, 6  ;;  %v1744_v30 = vmul.f32 %v2929_v23, %v1742_v33 }
0x10fc   :  { %2652 = vmatmul.mubr.msk.f32.vlgmr.msra.gmra.mrb[12].mxu0 %vm204_vm2, %v1397_v25  ;;  %1746 = vrot.lane.b32.xlu1 %v1744_v30, %s3155_s4 }
0x10fd   :  { %2792 = vmatpush3.bf16.msra.mxu0 %v3348_v29  ;;  %2673 = vmatprep.mubr.msk.f32.mxu0 %vm3154_vm0, %v3153_v1 }
0x10fe   :  { %2793 = vmatprep.subr.bf16.mxu0 %v3152_v0 }
0x1101   :  { %2795 = vmatpush3.bf16.msra.mxu0 %v3354_v32 }
0x1102   :  { %2802 = vmatprep.subr.bf16.mxu0 %v3152_v0 }
0x1141   :  { %v1517_v31 = vpop.xlane.xlu0 %1516 }
0x1142   :  { %v1518_v36 = vsub.f32 %v1514_v6, %v1517_v31 }
0x1144   :  { %v1519_v38 = vmul.f32 1.442695, %v1518_v36 }
0x1146   :  { %2930 = vpow2.f32 %v1519_v38 }
0x1150   :  { %v2931_v39 = vpop.eup %2930 }
0x1151   :  { %v1521_v42 = vsel %vm432_vm5, %v2931_v39, 0.0 }
0x1152   :  { %1522 = vadd.xlane.f32.xlu0 %v1521_v42 }
0x116e   :  { %v1747_v46 = vpop.permute.xlu1 %1746 }
0x116f   :  { %v1749_v43 = vadd.f32 %v1747_v46, %v3557_v37 }
0x1171   :  { %2932 = vtanh.f32 %v1749_v43 }
0x117b   :  { %v2933_v45 = vpop.eup %2932 }
0x117c   :  { %1753 = vrot.lane.b32.xlu1 %v2933_v45, %s3156_s13 }
0x11cf   :  { %v1466_v49 = vpop.f32.mrb[12].mxu0 }
0x11d0   :  { %v1467_v28 = vadd.f32 %v1466_v49, %v3404_v3  ;;  %v2653_v41 = vpop.f32.mrb[13].mxu0 }
0x11d2   :  { %1539 = vrot.lane.b32.xlu1 %v1467_v28, %s3156_s13 }
0x11df   :  { %v1523_v51 = vpop.xlane.xlu0 %1522 }
0x11e0   :  { %2934 = vrcp.f32 %v1523_v51 }
0x11ea   :  { %v2935_v53 = vpop.eup %2934 }
0x11eb   :  { %v3622_v56 = vmul.f32 %v2935_v53, %v2931_v39 }
0x11ed   :  { %1528 = vperm.xlu0 %2838, %v3622_v56  }
0x11ee   :  { %v1754_v47 = vpop.permute.xlu1 %1753 }
0x11ef   :  { %v1756_v57 = vmul.f32 %v1754_v47, %v1751_v26 }
0x11f1   :  { %v3626_v55 = vadd.f32 %v1759_v50, %v1756_v57 }
0x11f3   :  { %v1761_v59 = vmul.f32 %v3626_v55, %v3313_v48  ;;  %v1850_v63 = vrot.slane %v3626_v55, 2  ;;  %v1769_v19 = vmul.f32 %v3626_v55, %v3328_v54 }
0x11f5   :  { %1763 = vrot.lane.b32.xlu0 %v1761_v59, %s3156_s13 }
0x1244   :  { %v1540_v6 = vpop.permute.xlu1 %1539 }
0x126c   :  { %v1529_v18 = vpop.permute.xlu0 %1528 }
0x126d   :  { %v1531_v60 = vmul.f32 %v1529_v18, %v3400_v61 }
0x126f   :  { %1533 = vrot.lane.b32.xlu1 %v1531_v60, %s3156_s13 }
0x1270   :  { %v1764_v2 = vpop.permute.xlu0 %1763 }
0x1271   :  { %v1766_v4 = vsel %vm692_vm6, %v1764_v2, 0.0 }
0x1273   :  { %1851 = vrot.lane.b32.xlu1 %v1850_v63, %s3156_s13 }
0x1277   :  { %1556 = vrot.lane.b32.xlu1 %v1467_v28, %s3142_s7 }
0x127b   :  { %1771 = vrot.lane.b32.xlu1 %v1769_v19, %s3156_s13 }
0x129f   :  { %1767 = vadd.xlane.f32.xlu1 %v1766_v4 }
0x12e1   :  { %v1534_v7 = vpop.permute.xlu1 %1533 }
0x12e2   :  { %v1536_v9 = vadd.f32 %v1534_v7, %v3557_v37 }
0x12e4   :  { %v1542_v11 = vadd.f32 %v1540_v6, %v1536_v9 }
0x12e5   :  { %v1852_v14 = vpop.permute.xlu1 %1851 }
0x12e6   :  { %v2443_v34 = vmul.f32 -1.442695, %v1542_v11  ;;  %2685 = vmatmul.mubr.msk.f32.vlgmr.msra.gmra.mrb[12].mxu1 %vm204_vm2, %v1852_v14 }
0x12e7   :  { %2810 = vmatpush3.bf16.msra.mxu1 %v3261_v5  ;;  %2706 = vmatprep.mubr.msk.f32.mxu1 %vm3154_vm0, %v3153_v1  ;;  %v3651_v5 = vadd.f32 %v3386_v52, %v3426_v40 }
0x12e8   :  { %2936 = vpow2.f32 %v2443_v34  ;;  %2811 = vmatprep.subr.bf16.mxu1 %v3152_v0 }
0x12e9   :  { %v1557_v23 = vpop.permute.xlu1 %1556  ;;  %v1537_v36 = vadd.f32 %v1534_v7, %v3651_v5 }
0x12eb   :  { %2813 = vmatpush3.bf16.msra.mxu1 %v3264_v13  ;;  %v1549_v51 = vadd.f32 %v1540_v6, %v1537_v36 }
0x12ed   :  { %v1772_v30 = vpop.permute.xlu1 %1771  ;;  %v2444_v53 = vmul.f32 -1.442695, %v1549_v51 }
0x12ee   :  { %v1774_v31 = vsel %vm692_vm6, %v1772_v30, 0.0 }
0x12f2   :  { %v2937_v12 = vpop.eup %2936 }
0x12f3   :  { %v1546_v15 = vadd.f32 1.0, %v2937_v12 }
0x12f5   :  { %2938 = vrcp.f32 %v1546_v15 }
0x12ff   :  { %v2939_v16 = vpop.eup %2938 }
0x1300   :  { %v1559_v33 = vmul.f32 %v2939_v16, %v1557_v23 }
0x1302   :  { %1561 = vrot.lane.b32.xlu0 %v1559_v33, %s3155_s4 }
0x1321   :  { %1775 = vadd.xlane.f32.xlu0 %v1774_v31 }
0x132c   :  { %v1768_v42 = vpop.xlane.xlu1 %1767 }
0x1374   :  { %v1562_v38 = vpop.permute.xlu0 %1561 }
0x1375   :  { %v1564_v13 = vadd.f32 %v1562_v38, %v1537_v36 }
0x1377   :  { %2940 = vtanh.f32 %v1564_v13 }
0x1378   :  { %2942 = vpow2.f32 %v2444_v53 }
0x1381   :  { %v2941_v39 = vpop.eup %2940 }
0x1382   :  { %1568 = vrot.lane.b32.xlu0 %v2941_v39, %s3156_s13  ;;  %v2943_v26 = vpop.eup %2942 }
0x1383   :  { %v1553_v27 = vadd.f32 1.0, %v2943_v26 }
0x1385   :  { %2944 = vrcp.f32 %v1553_v27 }
0x138f   :  { %v2945_v47 = vpop.eup %2944 }
0x1390   :  { %v1566_v50 = vsub.f32 1.0, %v2945_v47  ;;  %v1573_v59 = vmul.f32 %v2945_v47, %v1397_v25 }
0x13ae   :  { %v1776_v46 = vpop.xlane.xlu0 %1775 }
0x13af   :  { %v1777_v43 = vsel %vm425_vm4, %v1768_v42, %v1776_v46 }
0x13b0   :  { %v1778_v45 = vadd.f32 %v1777_v43, %v3342_v10  ;;  %v2025_v43 = vrot.slane %v3626_v55, 6 }
0x13b2   :  { %v1779_v49 = vsel %vm706_vm7, %v1778_v45, -inf }
0x13b3   :  { %1780 = vmax.xlane.f32.xlu1 %v1779_v49 }
0x13b9   :  { %v1921_v28 = vpop.f32.mrb[12].mxu1 }
0x13ba   :  { %v2686_v52 = vpop.f32.mrb[13].mxu1  ;;  %v1922_v40 = vadd.f32 %v1921_v28, %v3287_v20 }
0x13bc   :  { %v2000_v41 = vrot.slane %v1922_v40, 4 }
0x13be   :  { %v2002_v63 = vadd.f32 %v2000_v41, %v3557_v37 }
0x13c0   :  { %v2454_v25 = vmul.f32 -1.442695, %v2002_v63 }
0x13c2   :  { %2946 = vpow2.f32 %v2454_v25 }
0x13c4   :  { %2009 = vrot.lane.b32.xlu1 %v2000_v41, %s3155_s4 }
0x13cc   :  { %v2947_v19 = vpop.eup %2946 }
0x13cd   :  { %v2006_v2 = vadd.f32 1.0, %v2947_v19 }
0x13cf   :  { %2948 = vrcp.f32 %v2006_v2 }
0x13d9   :  { %v2949_v9 = vpop.eup %2948 }
0x13da   :  { %v2019_v46 = vsub.f32 1.0, %v2949_v9  ;;  %v2027_v28 = vmul.f32 %v2949_v9, %v2025_v43 }
0x13f4   :  { %v1569_v57 = vpop.permute.xlu0 %1568 }
0x13f5   :  { %v1571_v18 = vmul.f32 %v1569_v57, %v1566_v50 }
0x13f7   :  { %v3662_v60 = vadd.f32 %v1573_v59, %v1571_v18 }
0x13f9   :  { %2674 = vmatmul.mubr.msk.f32.vlgmr.msra.gmra.mrb[14].mxu0 %vm204_vm2, %v3662_v60 }
0x13fa   :  { %2804 = vmatpush3.bf16.msra.mxu0 %v3348_v29  ;;  %2695 = vmatprep.mubr.msk.f32.mxu0 %vm3154_vm0, %v3153_v1 }
0x13fb   :  { %2805 = vmatprep.subr.bf16.mxu0 %v3152_v0 }
0x13fe   :  { %2807 = vmatpush3.bf16.msra.mxu0 %v3354_v32 }
0x13ff   :  { %2814 = vmatprep.subr.bf16.mxu0 %v3152_v0 }
0x1440   :  { %v1781_v4 = vpop.xlane.xlu1 %1780 }
0x1441   :  { %v1782_v6 = vsub.f32 %v1778_v45, %v1781_v4 }
0x1443   :  { %v1783_v7 = vmul.f32 1.442695, %v1782_v6 }
0x1444   :  { %v2010_v11 = vpop.permute.xlu1 %2009 }
0x1445   :  { %2950 = vpow2.f32 %v1783_v7  ;;  %v2012_v14 = vmul.f32 %v2949_v9, %v2010_v11 }
0x1447   :  { %2014 = vrot.lane.b32.xlu1 %v2012_v14, %s3155_s4  ;;  %v1837_v14 = vrot.slane %v3662_v60, 6 }
0x144f   :  { %v2951_v34 = vpop.eup %2950 }
0x1450   :  { %v1785_v12 = vsel %vm706_vm7, %v2951_v34, 0.0 }
0x1451   :  { %1786 = vadd.xlane.f32.xlu0 %v1785_v12 }
0x14b9   :  { %v2015_v23 = vpop.permute.xlu1 %2014 }
0x14ba   :  { %v2017_v30 = vadd.f32 %v2015_v23, %v3557_v37 }
0x14cc   :  { %v1727_v15 = vpop.f32.mrb[14].mxu0 }
0x14cd   :  { %v2675_v16 = vpop.f32.mrb[15].mxu0  ;;  %v1728_v39 = vadd.f32 %v1727_v15, %v3404_v3 }
0x14cf   :  { %v1803_v49 = vrot.slane %v1728_v39, 6 }
0x14de   :  { %v1787_v33 = vpop.xlane.xlu0 %1786 }
0x14df   :  { %2952 = vrcp.f32 %v1787_v33 }
0x14e0   :  { %2954 = vtanh.f32 %v2017_v30 }
0x14e9   :  { %v2953_v31 = vpop.eup %2952 }
0x14ea   :  { %v3676_v36 = vmul.f32 %v2953_v31, %v2951_v34  ;;  %v2955_v38 = vpop.eup %2954 }
0x14ec   :  { %1792 = vperm.xlu1 %2839, %v3676_v36  }
0x14f0   :  { %2021 = vrot.lane.b32.xlu1 %v2955_v38, %s3156_s13 }
0x156b   :  { %v1793_v13 = vpop.permute.xlu1 %1792 }
0x156c   :  { %v1795_v42 = vmul.f32 %v1793_v13, %v3400_v61 }
0x156e   :  { %1797 = vrot.lane.b32.xlu1 %v1795_v42, %s3156_s13 }
0x156f   :  { %v2022_v45 = vpop.permute.xlu1 %2021 }
0x1570   :  { %v2024_v52 = vmul.f32 %v2022_v45, %v2019_v46 }
0x1572   :  { %v3684_v40 = vadd.f32 %v2027_v28, %v2024_v52  ;;  %1804 = vrot.lane.b32.xlu1 %v1803_v49, %s3156_s13 }
0x1574   :  { %v2037_v41 = vmul.f32 %v3684_v40, %v3328_v54  ;;  %v2118_v51 = vrot.slane %v3684_v40, 4  ;;  %v2029_v55 = vmul.f32 %v3684_v40, %v3313_v48 }
0x1576   :  { %1821 = vrot.lane.b32.xlu1 %v1803_v49, %s3142_s7  ;;  %2039 = vrot.lane.b32.xlu0 %v2037_v41, %s3156_s13 }
0x157a   :  { %2119 = vrot.lane.b32.xlu1 %v2118_v51, %s3156_s13 }
0x157e   :  { %2031 = vrot.lane.b32.xlu1 %v2029_v55, %s3156_s13 }
0x15e0   :  { %v1798_v53 = vpop.permute.xlu1 %1797 }
0x15e1   :  { %v1800_v26 = vadd.f32 %v1798_v53, %v3557_v37  ;;  %v1801_v27 = vadd.f32 %v1798_v53, %v3651_v5 }
0x15e4   :  { %v1805_v47 = vpop.permute.xlu1 %1804 }
0x15e5   :  { %v1807_v50 = vadd.f32 %v1805_v47, %v1800_v26  ;;  %v1814_v57 = vadd.f32 %v1805_v47, %v1801_v27 }
0x15e7   :  { %v2449_v59 = vmul.f32 -1.442695, %v1807_v50  ;;  %v2450_v18 = vmul.f32 -1.442695, %v1814_v57 }
0x15e8   :  { %v2040_v63 = vpop.permute.xlu0 %2039  ;;  %v1822_v25 = vpop.permute.xlu1 %1821 }
0x15e9   :  { %2956 = vpow2.f32 %v2449_v59  ;;  %v2042_v19 = vsel %vm963_vm8, %v2040_v63, 0.0 }
0x15ea   :  { %2958 = vpow2.f32 %v2450_v18  ;;  %2043 = vadd.xlane.f32.xlu0 %v2042_v19 }
0x15ec   :  { %v2120_v2 = vpop.permute.xlu1 %2119 }
0x15ed   :  { %2707 = vmatmul.mubr.msk.f32.vlgmr.msra.gmra.mrb[14].mxu1 %vm204_vm2, %v2120_v2 }
0x15f0   :  { %v2032_v16 = vpop.permute.xlu1 %2031 }
0x15f1   :  { %v2034_v23 = vsel %vm963_vm8, %v2032_v16, 0.0 }
0x15f3   :  { %v2957_v4 = vpop.eup %2956 }
0x15f4   :  { %v2959_v6 = vpop.eup %2958  ;;  %v1811_v7 = vadd.f32 1.0, %v2957_v4 }
0x15f5   :  { %v1818_v9 = vadd.f32 1.0, %v2959_v6 }
0x15f6   :  { %2960 = vrcp.f32 %v1811_v7 }
0x15f7   :  { %2962 = vrcp.f32 %v1818_v9 }
0x1600   :  { %v2961_v11 = vpop.eup %2960 }
0x1601   :  { %v2963_v34 = vpop.eup %2962  ;;  %v1824_v12 = vmul.f32 %v2961_v11, %v1822_v25 }
0x1602   :  { %v1839_v15 = vmul.f32 %v2963_v34, %v1837_v14  ;;  %v1831_v52 = vsub.f32 1.0, %v2963_v34 }
0x1603   :  { %1826 = vrot.lane.b32.xlu1 %v1824_v12, %s3155_s4 }
0x1627   :  { %2035 = vadd.xlane.f32.xlu1 %v2034_v23 }
0x1675   :  { %v1827_v33 = vpop.permute.xlu1 %1826 }
0x1676   :  { %v1829_v30 = vadd.f32 %v1827_v33, %v1801_v27 }
0x1677   :  { %v2044_v38 = vpop.xlane.xlu0 %2043 }
0x1678   :  { %2964 = vtanh.f32 %v1829_v30 }
0x1682   :  { %v2965_v31 = vpop.eup %2964 }
0x1683   :  { %1833 = vrot.lane.b32.xlu1 %v2965_v31, %s3156_s13 }
0x16b4   :  { %v2036_v13 = vpop.xlane.xlu1 %2035 }
0x16b5   :  { %v2045_v39 = vsel %vm425_vm4, %v2036_v13, %v2044_v38 }
0x16b6   :  { %v2046_v42 = vadd.f32 %v2045_v39, %v3342_v10 }
0x16b8   :  { %v2047_v46 = vsel %vm977_vm9, %v2046_v42, -inf }
0x16b9   :  { %2048 = vmax.xlane.f32.xlu0 %v2047_v46 }
0x16c0   :  { %v2189_v43 = vpop.f32.mrb[14].mxu1 }
0x16c1   :  { %v2190_v45 = vadd.f32 %v2189_v43, %v3287_v20  ;;  %v2708_v49 = vpop.f32.mrb[15].mxu1 }
0x16c3   :  { %v2268_v28 = vrot.slane %v2190_v45, 2 }
0x16c5   :  { %2277 = vrot.lane.b32.xlu1 %v2268_v28, %s3155_s4  ;;  %v2270_v26 = vadd.f32 %v2268_v28, %v3557_v37 }
0x16c7   :  { %v2460_v50 = vmul.f32 -1.442695, %v2270_v26 }
0x16f5   :  { %v1834_v41 = vpop.permute.xlu1 %1833 }
0x16f6   :  { %v1836_v51 = vmul.f32 %v1834_v41, %v1831_v52 }
0x16f8   :  { %v3709_v55 = vadd.f32 %v1839_v15, %v1836_v51  ;;  %v2293_v15 = vrot.slane %v3684_v40, 6 }
0x16fa   :  { %v1926_v53 = vrot.slane %v3709_v55, 2 }
0x16fc   :  { %2696 = vmatmul.mubr.msk.f32.vlgmr.msra.gmra.mrb[16].mxu0 %vm204_vm2, %v1926_v53 }
0x16fd   :  { %2816 = vmatpush3.bf16.msra.mxu0 %v3348_v29  ;;  %2717 = vmatprep.mubr.msk.f32.mxu0 %vm3154_vm0, %v3153_v1  ;;  %vm776_vm0 = vcmask 19458  }
0x16fe   :  { %2817 = vmatprep.subr.bf16.mxu0 %v3152_v0 }
0x1701   :  { %2819 = vmatpush3.bf16.msra.mxu0 %v3354_v32 }
0x1737   :  { %v2278_v1 = vpop.permute.xlu1 %2277 }
0x1746   :  { %v2049_v20 = vpop.xlane.xlu0 %2048 }
0x1747   :  { %v2050_v27 = vsub.f32 %v2046_v42, %v2049_v20 }
0x1749   :  { %v2051_v47 = vmul.f32 1.442695, %v2050_v27  ;;  %v2105_v27 = vrot.slane %v3709_v55, 6 }
0x174b   :  { %2966 = vpow2.f32 %v2051_v47 }
0x174c   :  { %2968 = vpow2.f32 %v2460_v50 }
0x1755   :  { %v2967_v57 = vpop.eup %2966 }
0x1756   :  { %v2053_v59 = vsel %vm977_vm9, %v2967_v57, 0.0  ;;  %v2969_v29 = vpop.eup %2968 }
0x1757   :  { %2054 = vadd.xlane.f32.xlu0 %v2053_v59  ;;  %v2274_v18 = vadd.f32 1.0, %v2969_v29 }
0x1759   :  { %2970 = vrcp.f32 %v2274_v18 }
0x1763   :  { %v2971_v63 = vpop.eup %2970 }
0x1764   :  { %v2280_v0 = vmul.f32 %v2971_v63, %v2278_v1  ;;  %v2287_v12 = vsub.f32 1.0, %v2971_v63  ;;  %v2295_v33 = vmul.f32 %v2971_v63, %v2293_v15 }
0x176d   :  { %2282 = vrot.lane.b32.xlu0 %v2280_v0, %s3155_s4 }
0x17cf   :  { %v1995_v32 = vpop.f32.mrb[16].mxu0 }
0x17d0   :  { %v2697_v25 = vpop.f32.mrb[17].mxu0  ;;  %v1996_v14 = vadd.f32 %v1995_v32, %v3404_v3 }
0x17d2   :  { %v2071_v23 = vrot.slane %v1996_v14, 4 }
0x17e4   :  { %v2055_v19 = vpop.xlane.xlu0 %2054 }
0x17e5   :  { %2972 = vrcp.f32 %v2055_v19 }
0x17e8   :  { %v2283_v2 = vpop.permute.xlu0 %2282 }
0x17e9   :  { %v2285_v4 = vadd.f32 %v2283_v2, %v3557_v37 }
0x17eb   :  { %2974 = vtanh.f32 %v2285_v4 }
0x17ef   :  { %v2973_v6 = vpop.eup %2972 }
0x17f0   :  { %v3722_v7 = vmul.f32 %v2973_v6, %v2967_v57 }
0x17f2   :  { %2060 = vperm.xlu1 %2839, %v3722_v7  }
0x17f5   :  { %v2975_v9 = vpop.eup %2974 }
0x17f6   :  { %2289 = vrot.lane.b32.xlu1 %v2975_v9, %s3156_s13 }
0x1871   :  { %v2061_v11 = vpop.permute.xlu1 %2060 }
0x1872   :  { %v2063_v34 = vmul.f32 %v2061_v11, %v3400_v61 }
0x1874   :  { %2065 = vrot.lane.b32.xlu1 %v2063_v34, %s3156_s13 }
0x1875   :  { %v2290_v16 = vpop.permute.xlu1 %2289 }
0x1876   :  { %v2292_v30 = vmul.f32 %v2290_v16, %v2287_v12 }
0x1878   :  { %v3730_v31 = vadd.f32 %v2295_v33, %v2292_v30  ;;  %2072 = vrot.lane.b32.xlu1 %v2071_v23, %s3156_s13 }
0x187a   :  { %v2297_v38 = vmul.f32 %v3730_v31, %v3313_v48  ;;  %v2305_v13 = vmul.f32 %v3730_v31, %v3328_v54 }
0x187c   :  { %2089 = vrot.lane.b32.xlu1 %v2071_v23, %s3142_s7  ;;  %2299 = vrot.lane.b32.xlu0 %v2297_v38, %s3156_s13 }
0x1880   :  { %2307 = vrot.lane.b32.xlu1 %v2305_v13, %s3156_s13 }
0x18e6   :  { %v2066_v40 = vpop.permute.xlu1 %2065 }
0x18e7   :  { %v2068_v39 = vadd.f32 %v2066_v40, %v3557_v37  ;;  %v2069_v42 = vadd.f32 %v2066_v40, %v3651_v5 }
0x18ea   :  { %v2073_v46 = vpop.permute.xlu1 %2072 }
0x18eb   :  { %v2075_v43 = vadd.f32 %v2073_v46, %v2068_v39  ;;  %v2082_v45 = vadd.f32 %v2073_v46, %v2069_v42 }
0x18ed   :  { %v2455_v49 = vmul.f32 -1.442695, %v2075_v43  ;;  %v2456_v28 = vmul.f32 -1.442695, %v2082_v45 }
0x18ee   :  { %v2300_v48 = vpop.permute.xlu0 %2299  ;;  %v2090_v26 = vpop.permute.xlu1 %2089 }
0x18ef   :  { %2976 = vpow2.f32 %v2455_v49  ;;  %v2302_v52 = vsel %vm1234_vm10, %v2300_v48, 0.0 }
0x18f0   :  { %2978 = vpow2.f32 %v2456_v28  ;;  %2303 = vadd.xlane.f32.xlu1 %v2302_v52 }
0x18f2   :  { %v2308_v59 = vpop.permute.xlu1 %2307 }
0x18f3   :  { %v2310_v29 = vsel %vm1234_vm10, %v2308_v59, 0.0 }
0x18f9   :  { %v2977_v41 = vpop.eup %2976 }
0x18fa   :  { %v2979_v54 = vpop.eup %2978  ;;  %v2079_v51 = vadd.f32 1.0, %v2977_v41 }
0x18fb   :  { %v2086_v53 = vadd.f32 1.0, %v2979_v54 }
0x18fc   :  { %2980 = vrcp.f32 %v2079_v51 }
0x18fd   :  { %2982 = vrcp.f32 %v2086_v53 }
0x1906   :  { %v2981_v20 = vpop.eup %2980 }
0x1907   :  { %v2983_v47 = vpop.eup %2982  ;;  %v2092_v50 = vmul.f32 %v2981_v20, %v2090_v26  ;;  %v3000_v20 = vld [vmem:[#allocation10] sm:$0x7f] }
0x1908   :  { %v2107_v57 = vmul.f32 %v2983_v47, %v2105_v27  ;;  %v2099_v4 = vsub.f32 1.0, %v2983_v47 }
0x1909   :  { %2094 = vrot.lane.b32.xlu0 %v2092_v50, %s3155_s4 }
0x1928   :  { %2311 = vadd.xlane.f32.xlu0 %v2310_v29 }
0x197b   :  { %v2095_v18 = vpop.permute.xlu0 %2094 }
0x197c   :  { %v2097_v1 = vadd.f32 %v2095_v18, %v2069_v42 }
0x197d   :  { %v2304_v0 = vpop.xlane.xlu1 %2303 }
0x197e   :  { %2984 = vtanh.f32 %v2097_v1 }
0x1988   :  { %v2985_v63 = vpop.eup %2984 }
0x1989   :  { %2101 = vrot.lane.b32.xlu0 %v2985_v63, %s3156_s13 }
0x19b5   :  { %v2312_v32 = vpop.xlane.xlu0 %2311 }
0x19b6   :  { %v2313_v25 = vsel %vm425_vm4, %v2304_v0, %v2312_v32 }
0x19b7   :  { %v2314_v19 = vadd.f32 %v2313_v25, %v3342_v10 }
0x19b9   :  { %v2315_v2 = vsel %vm1248_vm11, %v2314_v19, -inf }
0x19ba   :  { %2316 = vmax.xlane.f32.xlu1 %v2315_v2 }
0x19fb   :  { %v2102_v6 = vpop.permute.xlu0 %2101 }
0x19fc   :  { %v2104_v9 = vmul.f32 %v2102_v6, %v2099_v4 }
0x19fe   :  { %v3750_v11 = vadd.f32 %v2107_v57, %v2104_v9 }
0x1a00   :  { %v2194_v14 = vrot.slane %v3750_v11, 4 }
0x1a02   :  { %2718 = vmatmul.mubr.msk.f32.vlgmr.msra.gmra.mrb[18].mxu0 %vm204_vm2, %v2194_v14 }
0x1a47   :  { %v2317_v34 = vpop.xlane.xlu1 %2316 }
0x1a48   :  { %v2318_v12 = vsub.f32 %v2314_v19, %v2317_v34 }
0x1a4a   :  { %v2319_v15 = vmul.f32 1.442695, %v2318_v12 }
0x1a4c   :  { %2986 = vpow2.f32 %v2319_v15 }
0x1a56   :  { %v2987_v16 = vpop.eup %2986 }
0x1a57   :  { %v2321_v23 = vsel %vm1248_vm11, %v2987_v16, 0.0 }
0x1a58   :  { %2322 = vadd.xlane.f32.xlu1 %v2321_v23 }
0x1ad5   :  { %v2263_v33 = vpop.f32.mrb[18].mxu0 }
0x1ad6   :  { %v2719_v30 = vpop.f32.mrb[19].mxu0  ;;  %v2264_v40 = vadd.f32 %v2263_v33, %v3404_v3 }
0x1ad7   :  { %v2373_v30 = vrot.slane %v3750_v11, 6 }
0x1ad8   :  { %v2339_v42 = vrot.slane %v2264_v40, 2 }
0x1ae5   :  { %v2323_v38 = vpop.xlane.xlu1 %2322 }
0x1ae6   :  { %2988 = vrcp.f32 %v2323_v38 }
0x1af0   :  { %v2989_v13 = vpop.eup %2988 }
0x1af1   :  { %v3756_v39 = vmul.f32 %v2989_v13, %v2987_v16 }
0x1af3   :  { %2328 = vperm.xlu1 %2839, %v3756_v39  }
0x1af7   :  { %2357 = vrot.lane.b32.xlu1 %v2339_v42, %s3142_s7 }
0x1b72   :  { %v2329_v46 = vpop.permute.xlu1 %2328 }
0x1b73   :  { %v2331_v43 = vmul.f32 %v2329_v46, %v3400_v61  ;;  %v498_v61 = vsub.s32 3, %v3279_v17 }
0x1b75   :  { %2333 = vrot.lane.b32.xlu0 %v2331_v43, %s3156_s13  ;;  %v3769_v26 = vrot.slane %v3000_v20, %v498_v61 }
0x1b76   :  { %v2358_v51 = vpop.permute.xlu1 %2357 }
0x1b77   :  { %v1040_v47 = vmul.f32 %v3545_v35, %v3769_v26  ;;  %v1311_v57 = vmul.f32 %v3604_v21, %v3769_v26  ;;  %v1841_v59 = vmul.f32 %v3709_v55, %v3769_v26  ;;  %v769_v21 = vmul.f32 %v3492_v22, %v3769_v26 }
0x1b78   :  { %v1575_v55 = vmul.f32 %v3662_v60, %v3769_v26 }
0x1b79   :  { %2340 = vrot.lane.b32.xlu0 %v2339_v42, %s3156_s13  ;;  %v1041_v50 = vsel %vm963_vm8, %v1040_v47, 0.0  ;;  %v1312_v17 = vsel %vm1234_vm10, %v1311_v57, 0.0  ;;  %v770_v63 = vsel %vm692_vm6, %v769_v21, 0.0 }
0x1b7a   :  { %v1576_v0 = vsel %vm405_vm3, %v1575_v55, 0.0 }
0x1be7   :  { %v2334_v45 = vpop.permute.xlu0 %2333 }
0x1be8   :  { %v2336_v49 = vadd.f32 %v2334_v45, %v3557_v37  ;;  %v500_v37 = vmul.f32 %v3769_v26, %v3439_v8  ;;  %v1842_v8 = vsel %vm692_vm6, %v1841_v59, 0.0  ;;  %v2337_v29 = vadd.f32 %v2334_v45, %v3651_v5 }
0x1be9   :  { %v2109_v5 = vmul.f32 %v3750_v11, %v3769_v26 }
0x1bea   :  { %v501_v27 = vsel %vm405_vm3, %v500_v37, 0.0 }
0x1beb   :  { %v3764_v28 = vpop.permute.xlu0 %2340  ;;  %v2110_v32 = vsel %vm963_vm8, %v2109_v5, 0.0 }
0x1bec   :  { %v2343_v3 = vadd.f32 %v3764_v28, %v2336_v49 }
0x1bee   :  { %v2461_v48 = vmul.f32 -1.442695, %v2343_v3 }
0x1bf0   :  { %2990 = vpow2.f32 %v2461_v48 }
0x1bfa   :  { %v2991_v52 = vpop.eup %2990 }
0x1bfb   :  { %v2347_v41 = vadd.f32 1.0, %v2991_v52 }
0x1bfd   :  { %2992 = vrcp.f32 %v2347_v41 }
0x1c07   :  { %v2993_v54 = vpop.eup %2992 }
0x1c08   :  { %v2360_v53 = vmul.f32 %v2993_v54, %v2358_v51 }
0x1c0a   :  { %2362 = vrot.lane.b32.xlu0 %v2360_v53, %s3155_s4 }
0x1c29   :  { %502 = vadd.xlane.f32.xlu0 %v501_v27 }
0x1c2d   :  { %1042 = vadd.xlane.f32.xlu0 %v1041_v50 }
0x1c31   :  { %1313 = vadd.xlane.f32.xlu0 %v1312_v17 }
0x1c35   :  { %1843 = vadd.xlane.f32.xlu0 %v1842_v8 }
0x1c7c   :  { %v2363_v18 = vpop.permute.xlu0 %2362 }
0x1c7d   :  { %v2365_v35 = vadd.f32 %v2363_v18, %v2337_v29 }
0x1c7f   :  { %2994 = vtanh.f32 %v2365_v35 }
0x1c89   :  { %v2995_v1 = vpop.eup %2994 }
0x1c8a   :  { %2369 = vrot.lane.b32.xlu1 %v2995_v1, %s3156_s13 }
0x1cae   :  { %771 = vadd.xlane.f32.xlu1 %v770_v63 }
0x1cb2   :  { %1577 = vadd.xlane.f32.xlu1 %v1576_v0 }
0x1cb6   :  { %2111 = vadd.xlane.f32.xlu1 %v2110_v32  ;;  %v503_v25 = vpop.xlane.xlu0 %502 }
0x1cb7   :  { %v504_v22 = vadd.f32 %v503_v25, %v3342_v10 }
0x1cb9   :  { %v506_v19 = vsel %vm505_vm12, %v3388_v58, %v504_v22 }
0x1cba   :  { %508 = vst.msk [vmem:[%s3878_s5] sm:$0x3] %vm507_vm13, %v506_v19  ;;  %v1043_v60 = vpop.xlane.xlu0 %1042 }
0x1cbb   :  { %v1044_v2 = vadd.f32 %v1043_v60, %v3342_v10 }
0x1cbd   :  { %v1045_v4 = vsel %vm505_vm12, %v3513_v24, %v1044_v2 }
0x1cbe   :  { %2433 = vst.msk [vmem:[%s3878_s5] sm:$0x30] %vm1047_vm14, %v1045_v4  ;;  %v1314_v6 = vpop.xlane.xlu0 %1313 }
0x1cbf   :  { %v1315_v58 = vadd.f32 %v1314_v6, %v3342_v10 }
0x1cc1   :  { %v1316_v9 = vsel %vm505_vm12, %v3564_v62, %v1315_v58  ;;  %v2350_v62 = vadd.f32 %v3764_v28, %v2337_v29 }
0x1cc2   :  { %2439 = vst.msk [vmem:[%s3878_s5] sm:$0xc0] %vm1318_vm15, %v1316_v9  ;;  %v1844_v14 = vpop.xlane.xlu0 %1843 }
0x1cc3   :  { %v1845_v24 = vadd.f32 %v1844_v14, %v3342_v10  ;;  %v2462_v12 = vmul.f32 -1.442695, %v2350_v62 }
0x1cc5   :  { %v1846_v34 = vsel %vm505_vm12, %v3676_v36, %v1845_v24  ;;  %2996 = vpow2.f32 %v2462_v12 }
0x1cc6   :  { %2451 = vst.msk [vmem:[%s3878_s5 + $0x8] sm:$0xc] %vm776_vm0, %v1846_v34 }
0x1cc7   :  { %2386 = vrot.lane.b32.xlu1 %v3730_v31, %s3156_s13 }
0x1ccf   :  { %v2997_v15 = vpop.eup %2996 }
0x1cd0   :  { %v2354_v16 = vadd.f32 1.0, %v2997_v15 }
0x1cd2   :  { %2998 = vrcp.f32 %v2354_v16 }
0x1cdc   :  { %v2999_v23 = vpop.eup %2998 }
0x1cdd   :  { %v2367_v33 = vsub.f32 1.0, %v2999_v23  ;;  %v2375_v38 = vmul.f32 %v2999_v23, %v2373_v30 }
0x1cfc   :  { %v2370_v36 = vpop.permute.xlu1 %2369 }
0x1cfd   :  { %v2372_v13 = vmul.f32 %v2370_v36, %v2367_v33 }
0x1cff   :  { %v2376_v40 = vadd.f32 %v2375_v38, %v2372_v13 }
0x1d01   :  { %2391 = vst.msk [vmem:[#allocation11 - $0x4] sm:$0xc0] %vm1234_vm10, %v2376_v40  ;;  %v2377_v42 = vmul.f32 %v2376_v40, %v3769_v26 }
0x1d03   :  { %v2378_v31 = vsel %vm1234_vm10, %v2377_v42, 0.0 }
0x1d04   :  { %2379 = vadd.xlane.f32.xlu0 %v2378_v31 }
0x1d3b   :  { %v772_v46 = vpop.xlane.xlu1 %771 }
0x1d3c   :  { %v773_v43 = vadd.f32 %v772_v46, %v3342_v10 }
0x1d3e   :  { %v774_v45 = vsel %vm505_vm12, %v3462_v44, %v773_v43 }
0x1d3f   :  { %2427 = vst.msk [vmem:[%s3878_s5] sm:$0xc] %vm776_vm0, %v774_v45  ;;  %v1578_v11 = vpop.xlane.xlu1 %1577 }
0x1d40   :  { %v1579_v49 = vadd.f32 %v1578_v11, %v3342_v10 }
0x1d42   :  { %v1580_v28 = vsel %vm505_vm12, %v3622_v56, %v1579_v49 }
0x1d43   :  { %2445 = vst.msk [vmem:[%s3878_s5 + $0x8] sm:$0x3] %vm507_vm13, %v1580_v28  ;;  %v2112_v3 = vpop.xlane.xlu1 %2111 }
0x1d44   :  { %v2113_v44 = vadd.f32 %v2112_v3, %v3342_v10 }
0x1d46   :  { %v2114_v48 = vsel %vm505_vm12, %v3722_v7, %v2113_v44 }
0x1d47   :  { %2457 = vst.msk [vmem:[%s3878_s5 + $0x8] sm:$0x30] %vm1047_vm14, %v2114_v48  ;;  %v2387_v56 = vpop.permute.xlu1 %2386 }
0x1d48   :  { %2389 = vst.msk [vmem:[#allocation11 - $0x6] sm:$0xc0] %vm1234_vm10, %v2387_v56 }
0x1d49   :  { %3122 = shalt.err (!%p3119_p2)
}
0x1d4a   :  { %s3123_s9 = scalar_lea.hbm %s3879_s6, 64 }
0x1d4b   :  { %p3124_p3 = scmp.ne.s32.totalorder %s3879_s6, %s3123_s9  ;;  %p3127_p4 = scmp.lt.u32.totalorder %s3123_s9, %s3879_s6 }
0x1d4d   :  { %p3129_p5 = pnand %p3127_p4, %p3124_p3 }
0x1d4f   :  { %3132 = shalt.err (!%p3129_p5)
}
0x1d50   :  { %2405 = dma.vmem_to_hbm [thread:$0]  %s2400_s25, 64, %s3879_s6, [#allocation4], %s3142_s7, %s3142_s7, %s3143_s8  }
0x1d91   :  { %v2380_v7 = vpop.xlane.xlu0 %2379 }
0x1d92   :  { %v2381_v52 = vadd.f32 %v2380_v7, %v3342_v10 }
0x1d94   :  { %v2382_v41 = vsel %vm505_vm12, %v3756_v39, %v2381_v52 }
0x1d95   :  { %2463 = vst.msk [vmem:[%s3878_s5 + $0x8] sm:$0xc0] %vm1318_vm15, %v2382_v41 }
0x1d96   :  { %3139 = dma.done.wait [#allocation4], 64  }
0x1d97   :  { %3140 = vsyncadd [#allocation4], 4294967232 }
0x1d98   :  { %2411 = vsyncpa [#allocation3], 1 }
0x1d99   :  { %2412 = vsyncpa [#allocation6], 1 }
0x1d9a   :  { %2413 = vsyncpa [#allocation9], 1 }
0x1d9b   :  { %2414 = vsyncpa [#allocation4], 1 }

</bundles_post_ra>
